<compile_context>
chip_gen: v7x
topology: tpu7x:2x2x1
jax: 0.10.0
libtpu: 0.0.40
codegen_flags: <defaults>
</compile_context>

<pallas_src>
import jax
import jax.numpy as jnp
from jax.experimental import pallas as pl
from jax.experimental.pallas import tpu as pltpu


# ----------------------------------------------------------------------------
# Kernel: serial recurrence (layer 0, batched layer-1 input projection,
# layer 1), last-valid-step selection, single FC head at the end.
# ----------------------------------------------------------------------------
def _lstm_recurrence_kernel(last_t_ref, pre0_ref, whh0_ref, wih1_ref, whh1_ref,
                            b1_ref, fcw_ref, fcb_ref, out_ref,
                            h0, c0, h1, c1, h_last, h0blk, pre1blk):
    tb = pl.program_id(0)
    Tt = pre0_ref.shape[0]            # timesteps per grid block (static)
    Bp, Hp = h0.shape                 # padded batch / hidden
    unroll = min(Tt, 8)               # bounded unroll: regalloc-safe, LLO-visible

    @pl.when(tb == 0)
    def _():
        h0[...] = jnp.zeros_like(h0)
        c0[...] = jnp.zeros_like(c0)
        h1[...] = jnp.zeros_like(h1)
        c1[...] = jnp.zeros_like(c1)
        h_last[...] = jnp.zeros_like(h_last)

    # Hoisted once per block (1 vreg); the weights themselves are NOT hoisted.
    last_t = jnp.broadcast_to(last_t_ref[...], (Bp, Hp))      # (Bp, Hp) int32

    def sig(x):
        # sigmoid(x) = 0.5*tanh(0.5*x) + 0.5 : single EUP push per gate.
        return 0.5 * jnp.tanh(0.5 * x) + 0.5

    def gates_to_hc(g, c_prev):
        # Each gate block is Hp lanes wide (multiple of 128): whole-vreg
        # column selects, no sub-lane-width slicing.  Gate math in f32.
        i_g = sig(g[:, 0 * Hp:1 * Hp])
        f_g = sig(g[:, 1 * Hp:2 * Hp])
        g_g = jnp.tanh(g[:, 2 * Hp:3 * Hp])
        o_g = sig(g[:, 3 * Hp:4 * Hp])
        c_new = f_g * c_prev + i_g * g_g
        h_new = o_g * jnp.tanh(c_new)
        return h_new, c_new

    # ---- Layer 0: serial recurrence; stage h0_t into VMEM for the batched
    #      layer-1 input projection.  Weight ref read at the dot site.
    def step0(tt, carry):
        h0v, c0v = carry
        g0 = pre0_ref[tt] + jnp.dot(h0v.astype(jnp.bfloat16), whh0_ref[...],
                                    preferred_element_type=jnp.float32)
        h0n, c0n = gates_to_hc(g0, c0v)
        off = pl.multiple_of(tt * Bp, Bp)                     # sublane-aligned
        h0blk[pl.ds(off, Bp), :] = h0n
        return h0n, c0n

    h0n, c0n = jax.lax.fori_loop(0, Tt, step0, (h0[...], c0[...]),
                                 unroll=unroll)
    h0[...] = h0n
    c0[...] = c0n

    # ---- Layer-1 input projection: ONE large-M (M = Tt*Bp) MXU matmul off
    #      the serial chain; bias b1 folded in here (no per-step broadcast).
    pre1blk[...] = (
        jnp.dot(h0blk[...].astype(jnp.bfloat16), wih1_ref[...],
                preferred_element_type=jnp.float32)
        + b1_ref[...])

    # ---- Layer 1: serial recurrence; only h1 @ W_hh1 on the chain.  Capture
    #      the top-layer hidden state at each row's last valid step.
    def step1(tt, carry):
        h1v, c1v, hl = carry
        t = tb * Tt + tt
        off = pl.multiple_of(tt * Bp, Bp)
        g1 = pre1blk[pl.ds(off, Bp), :] + jnp.dot(
            h1v.astype(jnp.bfloat16), whh1_ref[...],
            preferred_element_type=jnp.float32)
        h1n, c1n = gates_to_hc(g1, c1v)
        hl = jnp.where(last_t == t, h1n, hl)
        return h1n, c1n, hl

    h1n, c1n, hl = jax.lax.fori_loop(0, Tt, step1,
                                     (h1[...], c1[...], h_last[...]),
                                     unroll=unroll)
    h1[...] = h1n
    c1[...] = c1n
    h_last[...] = hl

    # ---- FC head: exactly once, lane-dense (Bp, Op) store.
    @pl.when(tb == pl.num_programs(0) - 1)
    def _():
        out_ref[...] = (jnp.dot(hl.astype(jnp.bfloat16), fcw_ref[...],
                                preferred_element_type=jnp.float32)
                        + fcb_ref[...])


# ----------------------------------------------------------------------------
# Parameter preparation: PyTorch layout -> padded, (in, out)-transposed, bf16
# matmul operands (biases stay f32).  Zero-padding the hidden/gate dims keeps
# the padded hidden units at exactly 0 for all time, so results match.
# ----------------------------------------------------------------------------
def _round_up(x, m):
    return (x + m - 1) // m * m


def _pad_gate_cols(w, H, Hp):
    """(R, 4H) -> (R, 4Hp): zero-pad each of the 4 PyTorch gate blocks [i,f,g,o]."""
    R = w.shape[0]
    w4 = w.reshape(R, 4, H)
    w4 = jnp.pad(w4, ((0, 0), (0, 0), (0, Hp - H)))
    return w4.reshape(R, 4 * Hp)


def prepare_params(p, Hp, Op):
    H = p["w_hh_l0"].shape[1]
    O = p["fc_w"].shape[0]
    bf = jnp.bfloat16
    pad_rows = lambda w: jnp.pad(w, ((0, Hp - H), (0, 0)))

    wih0 = _pad_gate_cols(p["w_ih_l0"].T, H, Hp).astype(bf)              # (I, 4Hp)
    whh0 = pad_rows(_pad_gate_cols(p["w_hh_l0"].T, H, Hp)).astype(bf)    # (Hp, 4Hp)
    b0 = _pad_gate_cols((p["b_ih_l0"] + p["b_hh_l0"])[None, :], H, Hp)   # (1, 4Hp) f32

    wih1 = pad_rows(_pad_gate_cols(p["w_ih_l1"].T, H, Hp)).astype(bf)    # (Hp, 4Hp)
    whh1 = pad_rows(_pad_gate_cols(p["w_hh_l1"].T, H, Hp)).astype(bf)    # (Hp, 4Hp)
    b1 = _pad_gate_cols((p["b_ih_l1"] + p["b_hh_l1"])[None, :], H, Hp)   # (1, 4Hp) f32

    fcw = jnp.pad(p["fc_w"].T, ((0, Hp - H), (0, Op - O))).astype(bf)    # (Hp, Op)
    fcb = jnp.pad(p["fc_b"][None, :], ((0, 0), (0, Op - O)))             # (1, Op) f32
    return dict(wih0_T=wih0, whh0_T=whh0, b0=b0, wih1_T=wih1, whh1_T=whh1,
                b1=b1, fcw_T=fcw, fcb=fcb)


# ----------------------------------------------------------------------------
# Wrapper
# ----------------------------------------------------------------------------
def lstm_policy_forward(x, lengths, params, *, time_block=None):
    """x: (B, T, I) f32, lengths: (B,) int -> (B, O) f32 = fc(h_top[lengths-1])."""
    B, T, I = x.shape
    H = params["w_hh_l0"].shape[1]
    O = params["fc_w"].shape[0]

    # Lane/sublane-dense padded sizes.
    Hp = _round_up(H, 128)
    Op = _round_up(O, 128)
    Bp = _round_up(B, 8)
    # Bigger time blocks amortize the ~0.35us per-grid-step overhead; size so
    # the double-buffered pre0 block + bf16 weights fit the per-chip VMEM.
    Tt = time_block if time_block is not None else min(T, 32)
    Tp = _round_up(T, Tt)
    n_tb = Tp // Tt

    kp = prepare_params(params, Hp, Op)

    # Hoisted, non-recurrent layer-0 input projection: one batched XLA matmul
    # (bf16 inputs, f32 accumulation), time-major so the kernel's per-step load
    # is a leading-dim indexed slice.  Streamed to the kernel in f32.
    x_tm = jnp.swapaxes(x, 0, 1).astype(jnp.bfloat16)                   # (T, B, I)
    pre0 = jnp.einsum("tbi,ig->tbg", x_tm, kp["wih0_T"],
                      preferred_element_type=jnp.float32) + kp["b0"]
    pre0 = jnp.pad(pre0, ((0, Tp - T), (0, Bp - B), (0, 0)))            # (Tp, Bp, 4Hp)

    # Per-row index of the last valid timestep; padded rows get -1 (never hit).
    # TODO(synk): rows with lengths==0 (illegal for pack_padded_sequence) return fc bias only.
    last_t = (lengths.astype(jnp.int32) - 1).reshape(B, 1)
    last_t = jnp.pad(last_t, ((0, Bp - B), (0, 0)), constant_values=-1)

    const = lambda shape: pl.BlockSpec(shape, lambda tb: tuple(0 for _ in shape))

    grid_spec = pltpu.PrefetchScalarGridSpec(
        num_scalar_prefetch=0,
        grid=(n_tb,),
        in_specs=[
            const((Bp, 1)),                                          # last_t
            pl.BlockSpec((Tt, Bp, 4 * Hp), lambda tb: (tb, 0, 0)),   # pre-gates (streamed)
            const((Hp, 4 * Hp)),                                     # W_hh layer 0 (bf16)
            const((Hp, 4 * Hp)),                                     # W_ih layer 1 (bf16)
            const((Hp, 4 * Hp)),                                     # W_hh layer 1 (bf16)
            const((1, 4 * Hp)),                                      # bias layer 1
            const((Hp, Op)),                                         # fc weight (bf16)
            const((1, Op)),                                          # fc bias
        ],
        out_specs=pl.BlockSpec((Bp, Op), lambda tb: (0, 0)),
        scratch_shapes=[pltpu.VMEM((Bp, Hp), jnp.float32)] * 5          # h0,c0,h1,c1,h_last
                       + [pltpu.VMEM((Tt * Bp, Hp), jnp.float32),       # staged h0 block
                          pltpu.VMEM((Tt * Bp, 4 * Hp), jnp.float32)],  # pre-gates layer 1
    )

    out = pl.pallas_call(
        _lstm_recurrence_kernel,
        out_shape=jax.ShapeDtypeStruct((Bp, Op), jnp.float32),
        grid_spec=grid_spec,
        compiler_params=pltpu.CompilerParams(
            dimension_semantics=("arbitrary",)),   # time recurrence is sequential
    )(last_t, pre0, kp["whh0_T"], kp["wih1_T"], kp["whh1_T"], kp["b1"],
      kp["fcw_T"], kp["fcb"])

    return out[:B, :O]


# ----------------------------------------------------------------------------
# Deterministic init (PyTorch parameter shapes, uniform +-1/sqrt(H)) and a
# pure-JAX f32 reference for numerical sanity checking.
# ----------------------------------------------------------------------------
def init_params(key, input_size, hidden_size, output_size):
    H = hidden_size
    k = 1.0 / jnp.sqrt(jnp.float32(H))
    keys = jax.random.split(key, 10)
    u = lambda kk, shape: jax.random.uniform(kk, shape, jnp.float32, -k, k)
    return {
        "w_ih_l0": u(keys[0], (4 * H, input_size)),
        "w_hh_l0": u(keys[1], (4 * H, H)),
        "b_ih_l0": u(keys[2], (4 * H,)),
        "b_hh_l0": u(keys[3], (4 * H,)),
        "w_ih_l1": u(keys[4], (4 * H, H)),
        "w_hh_l1": u(keys[5], (4 * H, H)),
        "b_ih_l1": u(keys[6], (4 * H,)),
        "b_hh_l1": u(keys[7], (4 * H,)),
        "fc_w":    u(keys[8], (output_size, H)),
        "fc_b":    u(keys[9], (output_size,)),
    }


def reference_forward(x, lengths, params):
    B, T, I = x.shape
    H = params["w_hh_l0"].shape[1]
    hi = jax.lax.Precision.HIGHEST

    def cell(x_in, h, c, w_ih, w_hh, b_ih, b_hh):
        g = (jnp.dot(x_in, w_ih.T, precision=hi)
             + jnp.dot(h, w_hh.T, precision=hi) + b_ih + b_hh)
        i = jax.nn.sigmoid(g[:, :H])
        f = jax.nn.sigmoid(g[:, H:2 * H])
        gg = jnp.tanh(g[:, 2 * H:3 * H])
        o = jax.nn.sigmoid(g[:, 3 * H:])
        c = f * c + i * gg
        h = o * jnp.tanh(c)
        return h, c

    def step(carry, x_t):
        h0, c0, h1, c1 = carry
        h0, c0 = cell(x_t, h0, c0, params["w_ih_l0"], params["w_hh_l0"],
                      params["b_ih_l0"], params["b_hh_l0"])
        h1, c1 = cell(h0, h1, c1, params["w_ih_l1"], params["w_hh_l1"],
                      params["b_ih_l1"], params["b_hh_l1"])
        return (h0, c0, h1, c1), h1

    z = jnp.zeros((B, H), jnp.float32)
    _, hs = jax.lax.scan(step, (z, z, z, z), jnp.swapaxes(x, 0, 1))   # (T, B, H)
    hs = jnp.swapaxes(hs, 0, 1)                                       # (B, T, H)
    last_h = hs[jnp.arange(B), lengths - 1]                           # (B, H)
    return jnp.dot(last_h, params["fc_w"].T, precision=hi) + params["fc_b"]


if __name__ == "__main__":
    B, T, I, H, O = 2, 8, 16, 32, 8

    key = jax.random.PRNGKey(0)
    k_params, k_x = jax.random.split(key)
    params = init_params(k_params, I, H, O)

    x = jax.random.normal(k_x, (B, T, I), jnp.float32)
    lengths = jnp.array([8, 5], dtype=jnp.int32)

    out = lstm_policy_forward(x, lengths, params)
    out = jax.block_until_ready(out)

    ref = reference_forward(x, lengths, params)
    assert out.shape == (B, O)
    # bf16 MXU inputs (f32 accumulation) vs an f32-HIGHEST reference: tolerance
    # loosened per review; a wrong gate order / step selection errs by >1e-1.
    assert jnp.allclose(out, ref, atol=2e-2, rtol=2e-2), (out, ref)

    print("KERNEL_OK")
</pallas_src>

<mosaic_0001>
module attributes {stable_mosaic.version = 11 : i64} {
  func.func @_lstm_recurrence_kernel(%arg0: i32, %arg1: memref<8x1xi32, #tpu.memory_space<vmem>>, %arg2: memref<8x8x512xf32, #tpu.memory_space<vmem>>, %arg3: memref<128x512xbf16, #tpu.memory_space<vmem>>, %arg4: memref<128x512xbf16, #tpu.memory_space<vmem>>, %arg5: memref<128x512xbf16, #tpu.memory_space<vmem>>, %arg6: memref<1x512xf32, #tpu.memory_space<vmem>>, %arg7: memref<128x128xbf16, #tpu.memory_space<vmem>>, %arg8: memref<1x128xf32, #tpu.memory_space<vmem>>, %arg9: memref<8x128xf32, #tpu.memory_space<vmem>>, %arg10: memref<8x128xf32, #tpu.memory_space<vmem>>, %arg11: memref<8x128xf32, #tpu.memory_space<vmem>>, %arg12: memref<8x128xf32, #tpu.memory_space<vmem>>, %arg13: memref<8x128xf32, #tpu.memory_space<vmem>>, %arg14: memref<8x128xf32, #tpu.memory_space<vmem>>, %arg15: memref<64x128xf32, #tpu.memory_space<vmem>>, %arg16: memref<64x512xf32, #tpu.memory_space<vmem>>) attributes {dimension_semantics = [#tpu.dimension_semantics<arbitrary>], iteration_bounds = array<i64: 1>, scalar_prefetch = 0 : i64, scratch_operands = 7 : i64, tpu.core_type = #tpu.core_type<tc>, window_params = [{pipeline_mode = #tpu.pipeline_mode<synchronous>, transform_indices = @transform_0, window_bounds = array<i64: 8, 1>}, {transform_indices = @transform_1, window_bounds = array<i64: 8, 8, 512>}, {pipeline_mode = #tpu.pipeline_mode<synchronous>, transform_indices = @transform_2, window_bounds = array<i64: 128, 512>}, {pipeline_mode = #tpu.pipeline_mode<synchronous>, transform_indices = @transform_3, window_bounds = array<i64: 128, 512>}, {pipeline_mode = #tpu.pipeline_mode<synchronous>, transform_indices = @transform_4, window_bounds = array<i64: 128, 512>}, {pipeline_mode = #tpu.pipeline_mode<synchronous>, transform_indices = @transform_5, window_bounds = array<i64: 1, 512>}, {pipeline_mode = #tpu.pipeline_mode<synchronous>, transform_indices = @transform_6, window_bounds = array<i64: 128, 128>}, {pipeline_mode = #tpu.pipeline_mode<synchronous>, transform_indices = @transform_7, window_bounds = array<i64: 1, 128>}, {pipeline_mode = #tpu.pipeline_mode<synchronous>, transform_indices = @transform_8, window_bounds = array<i64: 8, 128>}]} {
    %c0_i32 = arith.constant 0 : i32
    %0 = arith.cmpi eq, %arg0, %c0_i32 : i32
    %1 = arith.extui %0 : i1 to i32
    %c0_i32_0 = arith.constant 0 : i32
    %2 = arith.cmpi ne, %1, %c0_i32_0 : i32
    scf.if %2 {
      %cst_290 = arith.constant 0.000000e+00 : f32
      %715 = vector.broadcast %cst_290 : f32 to vector<8x128xf32>
      %c0_291 = arith.constant 0 : index
      %c0_292 = arith.constant 0 : index
      %716 = vector.load %arg10[%c0_291, %c0_292] : memref<8x128xf32, #tpu.memory_space<vmem>>, vector<8x128xf32>
      tpu.vector_store %arg10[%c0_291, %c0_292], %715 {strides = array<i32>} : memref<8x128xf32, #tpu.memory_space<vmem>>, vector<8x128xf32>,
      %cst_293 = arith.constant 0.000000e+00 : f32
      %717 = vector.broadcast %cst_293 : f32 to vector<8x128xf32>
      %c0_294 = arith.constant 0 : index
      %c0_295 = arith.constant 0 : index
      %718 = vector.load %arg11[%c0_294, %c0_295] : memref<8x128xf32, #tpu.memory_space<vmem>>, vector<8x128xf32>
      tpu.vector_store %arg11[%c0_294, %c0_295], %717 {strides = array<i32>} : memref<8x128xf32, #tpu.memory_space<vmem>>, vector<8x128xf32>,
      %cst_296 = arith.constant 0.000000e+00 : f32
      %719 = vector.broadcast %cst_296 : f32 to vector<8x128xf32>
      %c0_297 = arith.constant 0 : index
      %c0_298 = arith.constant 0 : index
      %720 = vector.load %arg12[%c0_297, %c0_298] : memref<8x128xf32, #tpu.memory_space<vmem>>, vector<8x128xf32>
      tpu.vector_store %arg12[%c0_297, %c0_298], %719 {strides = array<i32>} : memref<8x128xf32, #tpu.memory_space<vmem>>, vector<8x128xf32>,
      %cst_299 = arith.constant 0.000000e+00 : f32
      %721 = vector.broadcast %cst_299 : f32 to vector<8x128xf32>
      %c0_300 = arith.constant 0 : index
      %c0_301 = arith.constant 0 : index
      %722 = vector.load %arg13[%c0_300, %c0_301] : memref<8x128xf32, #tpu.memory_space<vmem>>, vector<8x128xf32>
      tpu.vector_store %arg13[%c0_300, %c0_301], %721 {strides = array<i32>} : memref<8x128xf32, #tpu.memory_space<vmem>>, vector<8x128xf32>,
      %cst_302 = arith.constant 0.000000e+00 : f32
      %723 = vector.broadcast %cst_302 : f32 to vector<8x128xf32>
      %c0_303 = arith.constant 0 : index
      %c0_304 = arith.constant 0 : index
      %724 = vector.load %arg14[%c0_303, %c0_304] : memref<8x128xf32, #tpu.memory_space<vmem>>, vector<8x128xf32>
      tpu.vector_store %arg14[%c0_303, %c0_304], %723 {strides = array<i32>} : memref<8x128xf32, #tpu.memory_space<vmem>>, vector<8x128xf32>,
    } else {
    }
    %c0 = arith.constant 0 : index
    %c0_1 = arith.constant 0 : index
    %3 = vector.load %arg1[%c0, %c0_1] : memref<8x1xi32, #tpu.memory_space<vmem>>, vector<8x1xi32>
    %4 = vector.shape_cast %3 : vector<8x1xi32> to vector<8x1xi32>
    %5 = vector.broadcast %4 : vector<8x1xi32> to vector<8x128xi32>
    %c0_2 = arith.constant 0 : index
    %c0_3 = arith.constant 0 : index
    %6 = vector.load %arg10[%c0_2, %c0_3] : memref<8x128xf32, #tpu.memory_space<vmem>>, vector<8x128xf32>
    %c0_4 = arith.constant 0 : index
    %c0_5 = arith.constant 0 : index
    %7 = vector.load %arg11[%c0_4, %c0_5] : memref<8x128xf32, #tpu.memory_space<vmem>>, vector<8x128xf32>
    %c0_i32_6 = arith.constant 0 : i32
    %8 = arith.index_cast %c0_i32_6 : i32 to index
    %c0_7 = arith.constant 0 : index
    %c0_8 = arith.constant 0 : index
    %9 = vector.load %arg2[%8, %c0_7, %c0_8] : memref<8x8x512xf32, #tpu.memory_space<vmem>>, vector<1x8x512xf32>
    %10 = vector.shape_cast %9 : vector<1x8x512xf32> to vector<8x512xf32>
    %11 = arith.truncf %6 : vector<8x128xf32> to vector<8x128xbf16>
    %c0_9 = arith.constant 0 : index
    %c0_10 = arith.constant 0 : index
    %12 = vector.load %arg3[%c0_9, %c0_10] : memref<128x512xbf16, #tpu.memory_space<vmem>>, vector<128x512xbf16>
    %cst = arith.constant dense<0.000000e+00> : vector<8x512xf32>
    %13 = tpu.matmul %11, %12, %cst {dimension_numbers = #tpu.dot_dimension_numbers<[1], [0], [0], [1], [0, 0, 1, 1], [], []>} : vector<8x128xbf16>, vector<128x512xbf16>, vector<8x512xf32> -> vector<8x512xf32>
    %14 = arith.addf %10, %13 : vector<8x512xf32>
    %15 = vector.extract_strided_slice %14 {offsets = [0, 0], sizes = [8, 128], strides = [1, 1]} : vector<8x512xf32> to vector<8x128xf32>
    %cst_11 = arith.constant 5.000000e-01 : f32
    %16 = vector.broadcast %cst_11 : f32 to vector<8x128xf32>
    %17 = arith.mulf %16, %15 : vector<8x128xf32>
    %18 = math.tanh %17 : vector<8x128xf32>
    %cst_12 = arith.constant 5.000000e-01 : f32
    %19 = vector.broadcast %cst_12 : f32 to vector<8x128xf32>
    %20 = arith.mulf %19, %18 : vector<8x128xf32>
    %cst_13 = arith.constant 5.000000e-01 : f32
    %21 = vector.broadcast %cst_13 : f32 to vector<8x128xf32>
    %22 = arith.addf %20, %21 : vector<8x128xf32>
    %23 = vector.extract_strided_slice %14 {offsets = [0, 128], sizes = [8, 128], strides = [1, 1]} : vector<8x512xf32> to vector<8x128xf32>
    %cst_14 = arith.constant 5.000000e-01 : f32
    %24 = vector.broadcast %cst_14 : f32 to vector<8x128xf32>
    %25 = arith.mulf %24, %23 : vector<8x128xf32>
    %26 = math.tanh %25 : vector<8x128xf32>
    %cst_15 = arith.constant 5.000000e-01 : f32
    %27 = vector.broadcast %cst_15 : f32 to vector<8x128xf32>
    %28 = arith.mulf %27, %26 : vector<8x128xf32>
    %cst_16 = arith.constant 5.000000e-01 : f32
    %29 = vector.broadcast %cst_16 : f32 to vector<8x128xf32>
    %30 = arith.addf %28, %29 : vector<8x128xf32>
    %31 = vector.extract_strided_slice %14 {offsets = [0, 256], sizes = [8, 128], strides = [1, 1]} : vector<8x512xf32> to vector<8x128xf32>
    %32 = math.tanh %31 : vector<8x128xf32>
    %33 = vector.extract_strided_slice %14 {offsets = [0, 384], sizes = [8, 128], strides = [1, 1]} : vector<8x512xf32> to vector<8x128xf32>
    %cst_17 = arith.constant 5.000000e-01 : f32
    %34 = vector.broadcast %cst_17 : f32 to vector<8x128xf32>
    %35 = arith.mulf %34, %33 : vector<8x128xf32>
    %36 = math.tanh %35 : vector<8x128xf32>
    %cst_18 = arith.constant 5.000000e-01 : f32
    %37 = vector.broadcast %cst_18 : f32 to vector<8x128xf32>
    %38 = arith.mulf %37, %36 : vector<8x128xf32>
    %cst_19 = arith.constant 5.000000e-01 : f32
    %39 = vector.broadcast %cst_19 : f32 to vector<8x128xf32>
    %40 = arith.addf %38, %39 : vector<8x128xf32>
    %41 = arith.mulf %30, %7 : vector<8x128xf32>
    %42 = arith.mulf %22, %32 : vector<8x128xf32>
    %43 = arith.addf %41, %42 : vector<8x128xf32>
    %44 = math.tanh %43 : vector<8x128xf32>
    %45 = arith.mulf %40, %44 : vector<8x128xf32>
    %c8_i32 = arith.constant 8 : i32
    %46 = arith.muli %c0_i32_6, %c8_i32 : i32
    %47 = tpu.assume_multiple %46, 8 : i32
    %48 = arith.index_cast %47 : i32 to index
    %c0_20 = arith.constant 0 : index
    %49 = vector.load %arg15[%48, %c0_20] : memref<64x128xf32, #tpu.memory_space<vmem>>, vector<8x128xf32>
    tpu.vector_store %arg15[%48, %c0_20], %45 {strides = array<i32>} : memref<64x128xf32, #tpu.memory_space<vmem>>, vector<8x128xf32>,
    %c1_i32 = arith.constant 1 : i32
    %50 = arith.index_cast %c1_i32 : i32 to index
    %c0_21 = arith.constant 0 : index
    %c0_22 = arith.constant 0 : index
    %51 = vector.load %arg2[%50, %c0_21, %c0_22] : memref<8x8x512xf32, #tpu.memory_space<vmem>>, vector<1x8x512xf32>
    %52 = vector.shape_cast %51 : vector<1x8x512xf32> to vector<8x512xf32>
    %53 = arith.truncf %45 : vector<8x128xf32> to vector<8x128xbf16>
    %c0_23 = arith.constant 0 : index
    %c0_24 = arith.constant 0 : index
    %54 = vector.load %arg3[%c0_23, %c0_24] : memref<128x512xbf16, #tpu.memory_space<vmem>>, vector<128x512xbf16>
    %cst_25 = arith.constant dense<0.000000e+00> : vector<8x512xf32>
    %55 = tpu.matmul %53, %54, %cst_25 {dimension_numbers = #tpu.dot_dimension_numbers<[1], [0], [0], [1], [0, 0, 1, 1], [], []>} : vector<8x128xbf16>, vector<128x512xbf16>, vector<8x512xf32> -> vector<8x512xf32>
    %56 = arith.addf %52, %55 : vector<8x512xf32>
    %57 = vector.extract_strided_slice %56 {offsets = [0, 0], sizes = [8, 128], strides = [1, 1]} : vector<8x512xf32> to vector<8x128xf32>
    %cst_26 = arith.constant 5.000000e-01 : f32
    %58 = vector.broadcast %cst_26 : f32 to vector<8x128xf32>
    %59 = arith.mulf %58, %57 : vector<8x128xf32>
    %60 = math.tanh %59 : vector<8x128xf32>
    %cst_27 = arith.constant 5.000000e-01 : f32
    %61 = vector.broadcast %cst_27 : f32 to vector<8x128xf32>
    %62 = arith.mulf %61, %60 : vector<8x128xf32>
    %cst_28 = arith.constant 5.000000e-01 : f32
    %63 = vector.broadcast %cst_28 : f32 to vector<8x128xf32>
    %64 = arith.addf %62, %63 : vector<8x128xf32>
    %65 = vector.extract_strided_slice %56 {offsets = [0, 128], sizes = [8, 128], strides = [1, 1]} : vector<8x512xf32> to vector<8x128xf32>
    %cst_29 = arith.constant 5.000000e-01 : f32
    %66 = vector.broadcast %cst_29 : f32 to vector<8x128xf32>
    %67 = arith.mulf %66, %65 : vector<8x128xf32>
    %68 = math.tanh %67 : vector<8x128xf32>
    %cst_30 = arith.constant 5.000000e-01 : f32
    %69 = vector.broadcast %cst_30 : f32 to vector<8x128xf32>
    %70 = arith.mulf %69, %68 : vector<8x128xf32>
    %cst_31 = arith.constant 5.000000e-01 : f32
    %71 = vector.broadcast %cst_31 : f32 to vector<8x128xf32>
    %72 = arith.addf %70, %71 : vector<8x128xf32>
    %73 = vector.extract_strided_slice %56 {offsets = [0, 256], sizes = [8, 128], strides = [1, 1]} : vector<8x512xf32> to vector<8x128xf32>
    %74 = math.tanh %73 : vector<8x128xf32>
    %75 = vector.extract_strided_slice %56 {offsets = [0, 384], sizes = [8, 128], strides = [1, 1]} : vector<8x512xf32> to vector<8x128xf32>
    %cst_32 = arith.constant 5.000000e-01 : f32
    %76 = vector.broadcast %cst_32 : f32 to vector<8x128xf32>
    %77 = arith.mulf %76, %75 : vector<8x128xf32>
    %78 = math.tanh %77 : vector<8x128xf32>
    %cst_33 = arith.constant 5.000000e-01 : f32
    %79 = vector.broadcast %cst_33 : f32 to vector<8x128xf32>
    %80 = arith.mulf %79, %78 : vector<8x128xf32>
    %cst_34 = arith.constant 5.000000e-01 : f32
    %81 = vector.broadcast %cst_34 : f32 to vector<8x128xf32>
    %82 = arith.addf %80, %81 : vector<8x128xf32>
    %83 = arith.mulf %72, %43 : vector<8x128xf32>
    %84 = arith.mulf %64, %74 : vector<8x128xf32>
    %85 = arith.addf %83, %84 : vector<8x128xf32>
    %86 = math.tanh %85 : vector<8x128xf32>
    %87 = arith.mulf %82, %86 : vector<8x128xf32>
    %c8_i32_35 = arith.constant 8 : i32
    %88 = arith.muli %c1_i32, %c8_i32_35 : i32
    %89 = tpu.assume_multiple %88, 8 : i32
    %90 = arith.index_cast %89 : i32 to index
    %c0_36 = arith.constant 0 : index
    %91 = vector.load %arg15[%90, %c0_36] : memref<64x128xf32, #tpu.memory_space<vmem>>, vector<8x128xf32>
    tpu.vector_store %arg15[%90, %c0_36], %87 {strides = array<i32>} : memref<64x128xf32, #tpu.memory_space<vmem>>, vector<8x128xf32>,
    %c2_i32 = arith.constant 2 : i32
    %92 = arith.index_cast %c2_i32 : i32 to index
    %c0_37 = arith.constant 0 : index
    %c0_38 = arith.constant 0 : index
    %93 = vector.load %arg2[%92, %c0_37, %c0_38] : memref<8x8x512xf32, #tpu.memory_space<vmem>>, vector<1x8x512xf32>
    %94 = vector.shape_cast %93 : vector<1x8x512xf32> to vector<8x512xf32>
    %95 = arith.truncf %87 : vector<8x128xf32> to vector<8x128xbf16>
    %c0_39 = arith.constant 0 : index
    %c0_40 = arith.constant 0 : index
    %96 = vector.load %arg3[%c0_39, %c0_40] : memref<128x512xbf16, #tpu.memory_space<vmem>>, vector<128x512xbf16>
    %cst_41 = arith.constant dense<0.000000e+00> : vector<8x512xf32>
    %97 = tpu.matmul %95, %96, %cst_41 {dimension_numbers = #tpu.dot_dimension_numbers<[1], [0], [0], [1], [0, 0, 1, 1], [], []>} : vector<8x128xbf16>, vector<128x512xbf16>, vector<8x512xf32> -> vector<8x512xf32>
    %98 = arith.addf %94, %97 : vector<8x512xf32>
    %99 = vector.extract_strided_slice %98 {offsets = [0, 0], sizes = [8, 128], strides = [1, 1]} : vector<8x512xf32> to vector<8x128xf32>
    %cst_42 = arith.constant 5.000000e-01 : f32
    %100 = vector.broadcast %cst_42 : f32 to vector<8x128xf32>
    %101 = arith.mulf %100, %99 : vector<8x128xf32>
    %102 = math.tanh %101 : vector<8x128xf32>
    %cst_43 = arith.constant 5.000000e-01 : f32
    %103 = vector.broadcast %cst_43 : f32 to vector<8x128xf32>
    %104 = arith.mulf %103, %102 : vector<8x128xf32>
    %cst_44 = arith.constant 5.000000e-01 : f32
    %105 = vector.broadcast %cst_44 : f32 to vector<8x128xf32>
    %106 = arith.addf %104, %105 : vector<8x128xf32>
    %107 = vector.extract_strided_slice %98 {offsets = [0, 128], sizes = [8, 128], strides = [1, 1]} : vector<8x512xf32> to vector<8x128xf32>
    %cst_45 = arith.constant 5.000000e-01 : f32
    %108 = vector.broadcast %cst_45 : f32 to vector<8x128xf32>
    %109 = arith.mulf %108, %107 : vector<8x128xf32>
    %110 = math.tanh %109 : vector<8x128xf32>
    %cst_46 = arith.constant 5.000000e-01 : f32
    %111 = vector.broadcast %cst_46 : f32 to vector<8x128xf32>
    %112 = arith.mulf %111, %110 : vector<8x128xf32>
    %cst_47 = arith.constant 5.000000e-01 : f32
    %113 = vector.broadcast %cst_47 : f32 to vector<8x128xf32>
    %114 = arith.addf %112, %113 : vector<8x128xf32>
    %115 = vector.extract_strided_slice %98 {offsets = [0, 256], sizes = [8, 128], strides = [1, 1]} : vector<8x512xf32> to vector<8x128xf32>
    %116 = math.tanh %115 : vector<8x128xf32>
    %117 = vector.extract_strided_slice %98 {offsets = [0, 384], sizes = [8, 128], strides = [1, 1]} : vector<8x512xf32> to vector<8x128xf32>
    %cst_48 = arith.constant 5.000000e-01 : f32
    %118 = vector.broadcast %cst_48 : f32 to vector<8x128xf32>
    %119 = arith.mulf %118, %117 : vector<8x128xf32>
    %120 = math.tanh %119 : vector<8x128xf32>
    %cst_49 = arith.constant 5.000000e-01 : f32
    %121 = vector.broadcast %cst_49 : f32 to vector<8x128xf32>
    %122 = arith.mulf %121, %120 : vector<8x128xf32>
    %cst_50 = arith.constant 5.000000e-01 : f32
    %123 = vector.broadcast %cst_50 : f32 to vector<8x128xf32>
    %124 = arith.addf %122, %123 : vector<8x128xf32>
    %125 = arith.mulf %114, %85 : vector<8x128xf32>
    %126 = arith.mulf %106, %116 : vector<8x128xf32>
    %127 = arith.addf %125, %126 : vector<8x128xf32>
    %128 = math.tanh %127 : vector<8x128xf32>
    %129 = arith.mulf %124, %128 : vector<8x128xf32>
    %c8_i32_51 = arith.constant 8 : i32
    %130 = arith.muli %c2_i32, %c8_i32_51 : i32
    %131 = tpu.assume_multiple %130, 8 : i32
    %132 = arith.index_cast %131 : i32 to index
    %c0_52 = arith.constant 0 : index
    %133 = vector.load %arg15[%132, %c0_52] : memref<64x128xf32, #tpu.memory_space<vmem>>, vector<8x128xf32>
    tpu.vector_store %arg15[%132, %c0_52], %129 {strides = array<i32>} : memref<64x128xf32, #tpu.memory_space<vmem>>, vector<8x128xf32>,
    %c3_i32 = arith.constant 3 : i32
    %134 = arith.index_cast %c3_i32 : i32 to index
    %c0_53 = arith.constant 0 : index
    %c0_54 = arith.constant 0 : index
    %135 = vector.load %arg2[%134, %c0_53, %c0_54] : memref<8x8x512xf32, #tpu.memory_space<vmem>>, vector<1x8x512xf32>
    %136 = vector.shape_cast %135 : vector<1x8x512xf32> to vector<8x512xf32>
    %137 = arith.truncf %129 : vector<8x128xf32> to vector<8x128xbf16>
    %c0_55 = arith.constant 0 : index
    %c0_56 = arith.constant 0 : index
    %138 = vector.load %arg3[%c0_55, %c0_56] : memref<128x512xbf16, #tpu.memory_space<vmem>>, vector<128x512xbf16>
    %cst_57 = arith.constant dense<0.000000e+00> : vector<8x512xf32>
    %139 = tpu.matmul %137, %138, %cst_57 {dimension_numbers = #tpu.dot_dimension_numbers<[1], [0], [0], [1], [0, 0, 1, 1], [], []>} : vector<8x128xbf16>, vector<128x512xbf16>, vector<8x512xf32> -> vector<8x512xf32>
    %140 = arith.addf %136, %139 : vector<8x512xf32>
    %141 = vector.extract_strided_slice %140 {offsets = [0, 0], sizes = [8, 128], strides = [1, 1]} : vector<8x512xf32> to vector<8x128xf32>
    %cst_58 = arith.constant 5.000000e-01 : f32
    %142 = vector.broadcast %cst_58 : f32 to vector<8x128xf32>
    %143 = arith.mulf %142, %141 : vector<8x128xf32>
    %144 = math.tanh %143 : vector<8x128xf32>
    %cst_59 = arith.constant 5.000000e-01 : f32
    %145 = vector.broadcast %cst_59 : f32 to vector<8x128xf32>
    %146 = arith.mulf %145, %144 : vector<8x128xf32>
    %cst_60 = arith.constant 5.000000e-01 : f32
    %147 = vector.broadcast %cst_60 : f32 to vector<8x128xf32>
    %148 = arith.addf %146, %147 : vector<8x128xf32>
    %149 = vector.extract_strided_slice %140 {offsets = [0, 128], sizes = [8, 128], strides = [1, 1]} : vector<8x512xf32> to vector<8x128xf32>
    %cst_61 = arith.constant 5.000000e-01 : f32
    %150 = vector.broadcast %cst_61 : f32 to vector<8x128xf32>
    %151 = arith.mulf %150, %149 : vector<8x128xf32>
    %152 = math.tanh %151 : vector<8x128xf32>
    %cst_62 = arith.constant 5.000000e-01 : f32
    %153 = vector.broadcast %cst_62 : f32 to vector<8x128xf32>
    %154 = arith.mulf %153, %152 : vector<8x128xf32>
    %cst_63 = arith.constant 5.000000e-01 : f32
    %155 = vector.broadcast %cst_63 : f32 to vector<8x128xf32>
    %156 = arith.addf %154, %155 : vector<8x128xf32>
    %157 = vector.extract_strided_slice %140 {offsets = [0, 256], sizes = [8, 128], strides = [1, 1]} : vector<8x512xf32> to vector<8x128xf32>
    %158 = math.tanh %157 : vector<8x128xf32>
    %159 = vector.extract_strided_slice %140 {offsets = [0, 384], sizes = [8, 128], strides = [1, 1]} : vector<8x512xf32> to vector<8x128xf32>
    %cst_64 = arith.constant 5.000000e-01 : f32
    %160 = vector.broadcast %cst_64 : f32 to vector<8x128xf32>
    %161 = arith.mulf %160, %159 : vector<8x128xf32>
    %162 = math.tanh %161 : vector<8x128xf32>
    %cst_65 = arith.constant 5.000000e-01 : f32
    %163 = vector.broadcast %cst_65 : f32 to vector<8x128xf32>
    %164 = arith.mulf %163, %162 : vector<8x128xf32>
    %cst_66 = arith.constant 5.000000e-01 : f32
    %165 = vector.broadcast %cst_66 : f32 to vector<8x128xf32>
    %166 = arith.addf %164, %165 : vector<8x128xf32>
    %167 = arith.mulf %156, %127 : vector<8x128xf32>
    %168 = arith.mulf %148, %158 : vector<8x128xf32>
    %169 = arith.addf %167, %168 : vector<8x128xf32>
    %170 = math.tanh %169 : vector<8x128xf32>
    %171 = arith.mulf %166, %170 : vector<8x128xf32>
    %c8_i32_67 = arith.constant 8 : i32
    %172 = arith.muli %c3_i32, %c8_i32_67 : i32
    %173 = tpu.assume_multiple %172, 8 : i32
    %174 = arith.index_cast %173 : i32 to index
    %c0_68 = arith.constant 0 : index
    %175 = vector.load %arg15[%174, %c0_68] : memref<64x128xf32, #tpu.memory_space<vmem>>, vector<8x128xf32>
    tpu.vector_store %arg15[%174, %c0_68], %171 {strides = array<i32>} : memref<64x128xf32, #tpu.memory_space<vmem>>, vector<8x128xf32>,
    %c4_i32 = arith.constant 4 : i32
    %176 = arith.index_cast %c4_i32 : i32 to index
    %c0_69 = arith.constant 0 : index
    %c0_70 = arith.constant 0 : index
    %177 = vector.load %arg2[%176, %c0_69, %c0_70] : memref<8x8x512xf32, #tpu.memory_space<vmem>>, vector<1x8x512xf32>
    %178 = vector.shape_cast %177 : vector<1x8x512xf32> to vector<8x512xf32>
    %179 = arith.truncf %171 : vector<8x128xf32> to vector<8x128xbf16>
    %c0_71 = arith.constant 0 : index
    %c0_72 = arith.constant 0 : index
    %180 = vector.load %arg3[%c0_71, %c0_72] : memref<128x512xbf16, #tpu.memory_space<vmem>>, vector<128x512xbf16>
    %cst_73 = arith.constant dense<0.000000e+00> : vector<8x512xf32>
    %181 = tpu.matmul %179, %180, %cst_73 {dimension_numbers = #tpu.dot_dimension_numbers<[1], [0], [0], [1], [0, 0, 1, 1], [], []>} : vector<8x128xbf16>, vector<128x512xbf16>, vector<8x512xf32> -> vector<8x512xf32>
    %182 = arith.addf %178, %181 : vector<8x512xf32>
    %183 = vector.extract_strided_slice %182 {offsets = [0, 0], sizes = [8, 128], strides = [1, 1]} : vector<8x512xf32> to vector<8x128xf32>
    %cst_74 = arith.constant 5.000000e-01 : f32
    %184 = vector.broadcast %cst_74 : f32 to vector<8x128xf32>
    %185 = arith.mulf %184, %183 : vector<8x128xf32>
    %186 = math.tanh %185 : vector<8x128xf32>
    %cst_75 = arith.constant 5.000000e-01 : f32
    %187 = vector.broadcast %cst_75 : f32 to vector<8x128xf32>
    %188 = arith.mulf %187, %186 : vector<8x128xf32>
    %cst_76 = arith.constant 5.000000e-01 : f32
    %189 = vector.broadcast %cst_76 : f32 to vector<8x128xf32>
    %190 = arith.addf %188, %189 : vector<8x128xf32>
    %191 = vector.extract_strided_slice %182 {offsets = [0, 128], sizes = [8, 128], strides = [1, 1]} : vector<8x512xf32> to vector<8x128xf32>
    %cst_77 = arith.constant 5.000000e-01 : f32
    %192 = vector.broadcast %cst_77 : f32 to vector<8x128xf32>
    %193 = arith.mulf %192, %191 : vector<8x128xf32>
    %194 = math.tanh %193 : vector<8x128xf32>
    %cst_78 = arith.constant 5.000000e-01 : f32
    %195 = vector.broadcast %cst_78 : f32 to vector<8x128xf32>
    %196 = arith.mulf %195, %194 : vector<8x128xf32>
    %cst_79 = arith.constant 5.000000e-01 : f32
    %197 = vector.broadcast %cst_79 : f32 to vector<8x128xf32>
    %198 = arith.addf %196, %197 : vector<8x128xf32>
    %199 = vector.extract_strided_slice %182 {offsets = [0, 256], sizes = [8, 128], strides = [1, 1]} : vector<8x512xf32> to vector<8x128xf32>
    %200 = math.tanh %199 : vector<8x128xf32>
    %201 = vector.extract_strided_slice %182 {offsets = [0, 384], sizes = [8, 128], strides = [1, 1]} : vector<8x512xf32> to vector<8x128xf32>
    %cst_80 = arith.constant 5.000000e-01 : f32
    %202 = vector.broadcast %cst_80 : f32 to vector<8x128xf32>
    %203 = arith.mulf %202, %201 : vector<8x128xf32>
    %204 = math.tanh %203 : vector<8x128xf32>
    %cst_81 = arith.constant 5.000000e-01 : f32
    %205 = vector.broadcast %cst_81 : f32 to vector<8x128xf32>
    %206 = arith.mulf %205, %204 : vector<8x128xf32>
    %cst_82 = arith.constant 5.000000e-01 : f32
    %207 = vector.broadcast %cst_82 : f32 to vector<8x128xf32>
    %208 = arith.addf %206, %207 : vector<8x128xf32>
    %209 = arith.mulf %198, %169 : vector<8x128xf32>
    %210 = arith.mulf %190, %200 : vector<8x128xf32>
    %211 = arith.addf %209, %210 : vector<8x128xf32>
    %212 = math.tanh %211 : vector<8x128xf32>
    %213 = arith.mulf %208, %212 : vector<8x128xf32>
    %c8_i32_83 = arith.constant 8 : i32
    %214 = arith.muli %c4_i32, %c8_i32_83 : i32
    %215 = tpu.assume_multiple %214, 8 : i32
    %216 = arith.index_cast %215 : i32 to index
    %c0_84 = arith.constant 0 : index
    %217 = vector.load %arg15[%216, %c0_84] : memref<64x128xf32, #tpu.memory_space<vmem>>, vector<8x128xf32>
    tpu.vector_store %arg15[%216, %c0_84], %213 {strides = array<i32>} : memref<64x128xf32, #tpu.memory_space<vmem>>, vector<8x128xf32>,
    %c5_i32 = arith.constant 5 : i32
    %218 = arith.index_cast %c5_i32 : i32 to index
    %c0_85 = arith.constant 0 : index
    %c0_86 = arith.constant 0 : index
    %219 = vector.load %arg2[%218, %c0_85, %c0_86] : memref<8x8x512xf32, #tpu.memory_space<vmem>>, vector<1x8x512xf32>
    %220 = vector.shape_cast %219 : vector<1x8x512xf32> to vector<8x512xf32>
    %221 = arith.truncf %213 : vector<8x128xf32> to vector<8x128xbf16>
    %c0_87 = arith.constant 0 : index
    %c0_88 = arith.constant 0 : index
    %222 = vector.load %arg3[%c0_87, %c0_88] : memref<128x512xbf16, #tpu.memory_space<vmem>>, vector<128x512xbf16>
    %cst_89 = arith.constant dense<0.000000e+00> : vector<8x512xf32>
    %223 = tpu.matmul %221, %222, %cst_89 {dimension_numbers = #tpu.dot_dimension_numbers<[1], [0], [0], [1], [0, 0, 1, 1], [], []>} : vector<8x128xbf16>, vector<128x512xbf16>, vector<8x512xf32> -> vector<8x512xf32>
    %224 = arith.addf %220, %223 : vector<8x512xf32>
    %225 = vector.extract_strided_slice %224 {offsets = [0, 0], sizes = [8, 128], strides = [1, 1]} : vector<8x512xf32> to vector<8x128xf32>
    %cst_90 = arith.constant 5.000000e-01 : f32
    %226 = vector.broadcast %cst_90 : f32 to vector<8x128xf32>
    %227 = arith.mulf %226, %225 : vector<8x128xf32>
    %228 = math.tanh %227 : vector<8x128xf32>
    %cst_91 = arith.constant 5.000000e-01 : f32
    %229 = vector.broadcast %cst_91 : f32 to vector<8x128xf32>
    %230 = arith.mulf %229, %228 : vector<8x128xf32>
    %cst_92 = arith.constant 5.000000e-01 : f32
    %231 = vector.broadcast %cst_92 : f32 to vector<8x128xf32>
    %232 = arith.addf %230, %231 : vector<8x128xf32>
    %233 = vector.extract_strided_slice %224 {offsets = [0, 128], sizes = [8, 128], strides = [1, 1]} : vector<8x512xf32> to vector<8x128xf32>
    %cst_93 = arith.constant 5.000000e-01 : f32
    %234 = vector.broadcast %cst_93 : f32 to vector<8x128xf32>
    %235 = arith.mulf %234, %233 : vector<8x128xf32>
    %236 = math.tanh %235 : vector<8x128xf32>
    %cst_94 = arith.constant 5.000000e-01 : f32
    %237 = vector.broadcast %cst_94 : f32 to vector<8x128xf32>
    %238 = arith.mulf %237, %236 : vector<8x128xf32>
    %cst_95 = arith.constant 5.000000e-01 : f32
    %239 = vector.broadcast %cst_95 : f32 to vector<8x128xf32>
    %240 = arith.addf %238, %239 : vector<8x128xf32>
    %241 = vector.extract_strided_slice %224 {offsets = [0, 256], sizes = [8, 128], strides = [1, 1]} : vector<8x512xf32> to vector<8x128xf32>
    %242 = math.tanh %241 : vector<8x128xf32>
    %243 = vector.extract_strided_slice %224 {offsets = [0, 384], sizes = [8, 128], strides = [1, 1]} : vector<8x512xf32> to vector<8x128xf32>
    %cst_96 = arith.constant 5.000000e-01 : f32
    %244 = vector.broadcast %cst_96 : f32 to vector<8x128xf32>
    %245 = arith.mulf %244, %243 : vector<8x128xf32>
    %246 = math.tanh %245 : vector<8x128xf32>
    %cst_97 = arith.constant 5.000000e-01 : f32
    %247 = vector.broadcast %cst_97 : f32 to vector<8x128xf32>
    %248 = arith.mulf %247, %246 : vector<8x128xf32>
    %cst_98 = arith.constant 5.000000e-01 : f32
    %249 = vector.broadcast %cst_98 : f32 to vector<8x128xf32>
    %250 = arith.addf %248, %249 : vector<8x128xf32>
    %251 = arith.mulf %240, %211 : vector<8x128xf32>
    %252 = arith.mulf %232, %242 : vector<8x128xf32>
    %253 = arith.addf %251, %252 : vector<8x128xf32>
    %254 = math.tanh %253 : vector<8x128xf32>
    %255 = arith.mulf %250, %254 : vector<8x128xf32>
    %c8_i32_99 = arith.constant 8 : i32
    %256 = arith.muli %c5_i32, %c8_i32_99 : i32
    %257 = tpu.assume_multiple %256, 8 : i32
    %258 = arith.index_cast %257 : i32 to index
    %c0_100 = arith.constant 0 : index
    %259 = vector.load %arg15[%258, %c0_100] : memref<64x128xf32, #tpu.memory_space<vmem>>, vector<8x128xf32>
    tpu.vector_store %arg15[%258, %c0_100], %255 {strides = array<i32>} : memref<64x128xf32, #tpu.memory_space<vmem>>, vector<8x128xf32>,
    %c6_i32 = arith.constant 6 : i32
    %260 = arith.index_cast %c6_i32 : i32 to index
    %c0_101 = arith.constant 0 : index
    %c0_102 = arith.constant 0 : index
    %261 = vector.load %arg2[%260, %c0_101, %c0_102] : memref<8x8x512xf32, #tpu.memory_space<vmem>>, vector<1x8x512xf32>
    %262 = vector.shape_cast %261 : vector<1x8x512xf32> to vector<8x512xf32>
    %263 = arith.truncf %255 : vector<8x128xf32> to vector<8x128xbf16>
    %c0_103 = arith.constant 0 : index
    %c0_104 = arith.constant 0 : index
    %264 = vector.load %arg3[%c0_103, %c0_104] : memref<128x512xbf16, #tpu.memory_space<vmem>>, vector<128x512xbf16>
    %cst_105 = arith.constant dense<0.000000e+00> : vector<8x512xf32>
    %265 = tpu.matmul %263, %264, %cst_105 {dimension_numbers = #tpu.dot_dimension_numbers<[1], [0], [0], [1], [0, 0, 1, 1], [], []>} : vector<8x128xbf16>, vector<128x512xbf16>, vector<8x512xf32> -> vector<8x512xf32>
    %266 = arith.addf %262, %265 : vector<8x512xf32>
    %267 = vector.extract_strided_slice %266 {offsets = [0, 0], sizes = [8, 128], strides = [1, 1]} : vector<8x512xf32> to vector<8x128xf32>
    %cst_106 = arith.constant 5.000000e-01 : f32
    %268 = vector.broadcast %cst_106 : f32 to vector<8x128xf32>
    %269 = arith.mulf %268, %267 : vector<8x128xf32>
    %270 = math.tanh %269 : vector<8x128xf32>
    %cst_107 = arith.constant 5.000000e-01 : f32
    %271 = vector.broadcast %cst_107 : f32 to vector<8x128xf32>
    %272 = arith.mulf %271, %270 : vector<8x128xf32>
    %cst_108 = arith.constant 5.000000e-01 : f32
    %273 = vector.broadcast %cst_108 : f32 to vector<8x128xf32>
    %274 = arith.addf %272, %273 : vector<8x128xf32>
    %275 = vector.extract_strided_slice %266 {offsets = [0, 128], sizes = [8, 128], strides = [1, 1]} : vector<8x512xf32> to vector<8x128xf32>
    %cst_109 = arith.constant 5.000000e-01 : f32
    %276 = vector.broadcast %cst_109 : f32 to vector<8x128xf32>
    %277 = arith.mulf %276, %275 : vector<8x128xf32>
    %278 = math.tanh %277 : vector<8x128xf32>
    %cst_110 = arith.constant 5.000000e-01 : f32
    %279 = vector.broadcast %cst_110 : f32 to vector<8x128xf32>
    %280 = arith.mulf %279, %278 : vector<8x128xf32>
    %cst_111 = arith.constant 5.000000e-01 : f32
    %281 = vector.broadcast %cst_111 : f32 to vector<8x128xf32>
    %282 = arith.addf %280, %281 : vector<8x128xf32>
    %283 = vector.extract_strided_slice %266 {offsets = [0, 256], sizes = [8, 128], strides = [1, 1]} : vector<8x512xf32> to vector<8x128xf32>
    %284 = math.tanh %283 : vector<8x128xf32>
    %285 = vector.extract_strided_slice %266 {offsets = [0, 384], sizes = [8, 128], strides = [1, 1]} : vector<8x512xf32> to vector<8x128xf32>
    %cst_112 = arith.constant 5.000000e-01 : f32
    %286 = vector.broadcast %cst_112 : f32 to vector<8x128xf32>
    %287 = arith.mulf %286, %285 : vector<8x128xf32>
    %288 = math.tanh %287 : vector<8x128xf32>
    %cst_113 = arith.constant 5.000000e-01 : f32
    %289 = vector.broadcast %cst_113 : f32 to vector<8x128xf32>
    %290 = arith.mulf %289, %288 : vector<8x128xf32>
    %cst_114 = arith.constant 5.000000e-01 : f32
    %291 = vector.broadcast %cst_114 : f32 to vector<8x128xf32>
    %292 = arith.addf %290, %291 : vector<8x128xf32>
    %293 = arith.mulf %282, %253 : vector<8x128xf32>
    %294 = arith.mulf %274, %284 : vector<8x128xf32>
    %295 = arith.addf %293, %294 : vector<8x128xf32>
    %296 = math.tanh %295 : vector<8x128xf32>
    %297 = arith.mulf %292, %296 : vector<8x128xf32>
    %c8_i32_115 = arith.constant 8 : i32
    %298 = arith.muli %c6_i32, %c8_i32_115 : i32
    %299 = tpu.assume_multiple %298, 8 : i32
    %300 = arith.index_cast %299 : i32 to index
    %c0_116 = arith.constant 0 : index
    %301 = vector.load %arg15[%300, %c0_116] : memref<64x128xf32, #tpu.memory_space<vmem>>, vector<8x128xf32>
    tpu.vector_store %arg15[%300, %c0_116], %297 {strides = array<i32>} : memref<64x128xf32, #tpu.memory_space<vmem>>, vector<8x128xf32>,
    %c7_i32 = arith.constant 7 : i32
    %302 = arith.index_cast %c7_i32 : i32 to index
    %c0_117 = arith.constant 0 : index
    %c0_118 = arith.constant 0 : index
    %303 = vector.load %arg2[%302, %c0_117, %c0_118] : memref<8x8x512xf32, #tpu.memory_space<vmem>>, vector<1x8x512xf32>
    %304 = vector.shape_cast %303 : vector<1x8x512xf32> to vector<8x512xf32>
    %305 = arith.truncf %297 : vector<8x128xf32> to vector<8x128xbf16>
    %c0_119 = arith.constant 0 : index
    %c0_120 = arith.constant 0 : index
    %306 = vector.load %arg3[%c0_119, %c0_120] : memref<128x512xbf16, #tpu.memory_space<vmem>>, vector<128x512xbf16>
    %cst_121 = arith.constant dense<0.000000e+00> : vector<8x512xf32>
    %307 = tpu.matmul %305, %306, %cst_121 {dimension_numbers = #tpu.dot_dimension_numbers<[1], [0], [0], [1], [0, 0, 1, 1], [], []>} : vector<8x128xbf16>, vector<128x512xbf16>, vector<8x512xf32> -> vector<8x512xf32>
    %308 = arith.addf %304, %307 : vector<8x512xf32>
    %309 = vector.extract_strided_slice %308 {offsets = [0, 0], sizes = [8, 128], strides = [1, 1]} : vector<8x512xf32> to vector<8x128xf32>
    %cst_122 = arith.constant 5.000000e-01 : f32
    %310 = vector.broadcast %cst_122 : f32 to vector<8x128xf32>
    %311 = arith.mulf %310, %309 : vector<8x128xf32>
    %312 = math.tanh %311 : vector<8x128xf32>
    %cst_123 = arith.constant 5.000000e-01 : f32
    %313 = vector.broadcast %cst_123 : f32 to vector<8x128xf32>
    %314 = arith.mulf %313, %312 : vector<8x128xf32>
    %cst_124 = arith.constant 5.000000e-01 : f32
    %315 = vector.broadcast %cst_124 : f32 to vector<8x128xf32>
    %316 = arith.addf %314, %315 : vector<8x128xf32>
    %317 = vector.extract_strided_slice %308 {offsets = [0, 128], sizes = [8, 128], strides = [1, 1]} : vector<8x512xf32> to vector<8x128xf32>
    %cst_125 = arith.constant 5.000000e-01 : f32
    %318 = vector.broadcast %cst_125 : f32 to vector<8x128xf32>
    %319 = arith.mulf %318, %317 : vector<8x128xf32>
    %320 = math.tanh %319 : vector<8x128xf32>
    %cst_126 = arith.constant 5.000000e-01 : f32
    %321 = vector.broadcast %cst_126 : f32 to vector<8x128xf32>
    %322 = arith.mulf %321, %320 : vector<8x128xf32>
    %cst_127 = arith.constant 5.000000e-01 : f32
    %323 = vector.broadcast %cst_127 : f32 to vector<8x128xf32>
    %324 = arith.addf %322, %323 : vector<8x128xf32>
    %325 = vector.extract_strided_slice %308 {offsets = [0, 256], sizes = [8, 128], strides = [1, 1]} : vector<8x512xf32> to vector<8x128xf32>
    %326 = math.tanh %325 : vector<8x128xf32>
    %327 = vector.extract_strided_slice %308 {offsets = [0, 384], sizes = [8, 128], strides = [1, 1]} : vector<8x512xf32> to vector<8x128xf32>
    %cst_128 = arith.constant 5.000000e-01 : f32
    %328 = vector.broadcast %cst_128 : f32 to vector<8x128xf32>
    %329 = arith.mulf %328, %327 : vector<8x128xf32>
    %330 = math.tanh %329 : vector<8x128xf32>
    %cst_129 = arith.constant 5.000000e-01 : f32
    %331 = vector.broadcast %cst_129 : f32 to vector<8x128xf32>
    %332 = arith.mulf %331, %330 : vector<8x128xf32>
    %cst_130 = arith.constant 5.000000e-01 : f32
    %333 = vector.broadcast %cst_130 : f32 to vector<8x128xf32>
    %334 = arith.addf %332, %333 : vector<8x128xf32>
    %335 = arith.mulf %324, %295 : vector<8x128xf32>
    %336 = arith.mulf %316, %326 : vector<8x128xf32>
    %337 = arith.addf %335, %336 : vector<8x128xf32>
    %338 = math.tanh %337 : vector<8x128xf32>
    %339 = arith.mulf %334, %338 : vector<8x128xf32>
    %c8_i32_131 = arith.constant 8 : i32
    %340 = arith.muli %c7_i32, %c8_i32_131 : i32
    %341 = tpu.assume_multiple %340, 8 : i32
    %342 = arith.index_cast %341 : i32 to index
    %c0_132 = arith.constant 0 : index
    %343 = vector.load %arg15[%342, %c0_132] : memref<64x128xf32, #tpu.memory_space<vmem>>, vector<8x128xf32>
    tpu.vector_store %arg15[%342, %c0_132], %339 {strides = array<i32>} : memref<64x128xf32, #tpu.memory_space<vmem>>, vector<8x128xf32>,
    %c8_i32_133 = arith.constant 8 : i32
    %c0_134 = arith.constant 0 : index
    %c0_135 = arith.constant 0 : index
    %344 = vector.load %arg10[%c0_134, %c0_135] : memref<8x128xf32, #tpu.memory_space<vmem>>, vector<8x128xf32>
    tpu.vector_store %arg10[%c0_134, %c0_135], %339 {strides = array<i32>} : memref<8x128xf32, #tpu.memory_space<vmem>>, vector<8x128xf32>,
    %c0_136 = arith.constant 0 : index
    %c0_137 = arith.constant 0 : index
    %345 = vector.load %arg11[%c0_136, %c0_137] : memref<8x128xf32, #tpu.memory_space<vmem>>, vector<8x128xf32>
    tpu.vector_store %arg11[%c0_136, %c0_137], %337 {strides = array<i32>} : memref<8x128xf32, #tpu.memory_space<vmem>>, vector<8x128xf32>,
    %c0_138 = arith.constant 0 : index
    %c0_139 = arith.constant 0 : index
    %346 = vector.load %arg15[%c0_138, %c0_139] : memref<64x128xf32, #tpu.memory_space<vmem>>, vector<64x128xf32>
    %347 = arith.truncf %346 : vector<64x128xf32> to vector<64x128xbf16>
    %c0_140 = arith.constant 0 : index
    %c0_141 = arith.constant 0 : index
    %348 = vector.load %arg4[%c0_140, %c0_141] : memref<128x512xbf16, #tpu.memory_space<vmem>>, vector<128x512xbf16>
    %cst_142 = arith.constant dense<0.000000e+00> : vector<64x512xf32>
    %349 = tpu.matmul %347, %348, %cst_142 {dimension_numbers = #tpu.dot_dimension_numbers<[1], [0], [0], [1], [0, 0, 1, 1], [], []>} : vector<64x128xbf16>, vector<128x512xbf16>, vector<64x512xf32> -> vector<64x512xf32>
    %c0_143 = arith.constant 0 : index
    %c0_144 = arith.constant 0 : index
    %350 = vector.load %arg6[%c0_143, %c0_144] : memref<1x512xf32, #tpu.memory_space<vmem>>, vector<1x512xf32>
    %351 = vector.broadcast %350 : vector<1x512xf32> to vector<64x512xf32>
    %352 = arith.addf %349, %351 : vector<64x512xf32>
    %c0_145 = arith.constant 0 : index
    %c0_146 = arith.constant 0 : index
    %353 = vector.load %arg16[%c0_145, %c0_146] : memref<64x512xf32, #tpu.memory_space<vmem>>, vector<64x512xf32>
    tpu.vector_store %arg16[%c0_145, %c0_146], %352 {strides = array<i32>} : memref<64x512xf32, #tpu.memory_space<vmem>>, vector<64x512xf32>,
    %c0_147 = arith.constant 0 : index
    %c0_148 = arith.constant 0 : index
    %354 = vector.load %arg12[%c0_147, %c0_148] : memref<8x128xf32, #tpu.memory_space<vmem>>, vector<8x128xf32>
    %c0_149 = arith.constant 0 : index
    %c0_150 = arith.constant 0 : index
    %355 = vector.load %arg13[%c0_149, %c0_150] : memref<8x128xf32, #tpu.memory_space<vmem>>, vector<8x128xf32>
    %c0_151 = arith.constant 0 : index
    %c0_152 = arith.constant 0 : index
    %356 = vector.load %arg14[%c0_151, %c0_152] : memref<8x128xf32, #tpu.memory_space<vmem>>, vector<8x128xf32>
    %c0_i32_153 = arith.constant 0 : i32
    %c8_i32_154 = arith.constant 8 : i32
    %357 = arith.muli %arg0, %c8_i32_154 : i32
    %358 = arith.addi %357, %c0_i32_153 : i32
    %c8_i32_155 = arith.constant 8 : i32
    %359 = arith.muli %c0_i32_153, %c8_i32_155 : i32
    %360 = tpu.assume_multiple %359, 8 : i32
    %361 = arith.index_cast %360 : i32 to index
    %c0_156 = arith.constant 0 : index
    %362 = vector.load %arg16[%361, %c0_156] : memref<64x512xf32, #tpu.memory_space<vmem>>, vector<8x512xf32>
    %363 = arith.truncf %354 : vector<8x128xf32> to vector<8x128xbf16>
    %c0_157 = arith.constant 0 : index
    %c0_158 = arith.constant 0 : index
    %364 = vector.load %arg5[%c0_157, %c0_158] : memref<128x512xbf16, #tpu.memory_space<vmem>>, vector<128x512xbf16>
    %cst_159 = arith.constant dense<0.000000e+00> : vector<8x512xf32>
    %365 = tpu.matmul %363, %364, %cst_159 {dimension_numbers = #tpu.dot_dimension_numbers<[1], [0], [0], [1], [0, 0, 1, 1], [], []>} : vector<8x128xbf16>, vector<128x512xbf16>, vector<8x512xf32> -> vector<8x512xf32>
    %366 = arith.addf %362, %365 : vector<8x512xf32>
    %367 = vector.extract_strided_slice %366 {offsets = [0, 0], sizes = [8, 128], strides = [1, 1]} : vector<8x512xf32> to vector<8x128xf32>
    %cst_160 = arith.constant 5.000000e-01 : f32
    %368 = vector.broadcast %cst_160 : f32 to vector<8x128xf32>
    %369 = arith.mulf %368, %367 : vector<8x128xf32>
    %370 = math.tanh %369 : vector<8x128xf32>
    %cst_161 = arith.constant 5.000000e-01 : f32
    %371 = vector.broadcast %cst_161 : f32 to vector<8x128xf32>
    %372 = arith.mulf %371, %370 : vector<8x128xf32>
    %cst_162 = arith.constant 5.000000e-01 : f32
    %373 = vector.broadcast %cst_162 : f32 to vector<8x128xf32>
    %374 = arith.addf %372, %373 : vector<8x128xf32>
    %375 = vector.extract_strided_slice %366 {offsets = [0, 128], sizes = [8, 128], strides = [1, 1]} : vector<8x512xf32> to vector<8x128xf32>
    %cst_163 = arith.constant 5.000000e-01 : f32
    %376 = vector.broadcast %cst_163 : f32 to vector<8x128xf32>
    %377 = arith.mulf %376, %375 : vector<8x128xf32>
    %378 = math.tanh %377 : vector<8x128xf32>
    %cst_164 = arith.constant 5.000000e-01 : f32
    %379 = vector.broadcast %cst_164 : f32 to vector<8x128xf32>
    %380 = arith.mulf %379, %378 : vector<8x128xf32>
    %cst_165 = arith.constant 5.000000e-01 : f32
    %381 = vector.broadcast %cst_165 : f32 to vector<8x128xf32>
    %382 = arith.addf %380, %381 : vector<8x128xf32>
    %383 = vector.extract_strided_slice %366 {offsets = [0, 256], sizes = [8, 128], strides = [1, 1]} : vector<8x512xf32> to vector<8x128xf32>
    %384 = math.tanh %383 : vector<8x128xf32>
    %385 = vector.extract_strided_slice %366 {offsets = [0, 384], sizes = [8, 128], strides = [1, 1]} : vector<8x512xf32> to vector<8x128xf32>
    %cst_166 = arith.constant 5.000000e-01 : f32
    %386 = vector.broadcast %cst_166 : f32 to vector<8x128xf32>
    %387 = arith.mulf %386, %385 : vector<8x128xf32>
    %388 = math.tanh %387 : vector<8x128xf32>
    %cst_167 = arith.constant 5.000000e-01 : f32
    %389 = vector.broadcast %cst_167 : f32 to vector<8x128xf32>
    %390 = arith.mulf %389, %388 : vector<8x128xf32>
    %cst_168 = arith.constant 5.000000e-01 : f32
    %391 = vector.broadcast %cst_168 : f32 to vector<8x128xf32>
    %392 = arith.addf %390, %391 : vector<8x128xf32>
    %393 = arith.mulf %382, %355 : vector<8x128xf32>
    %394 = arith.mulf %374, %384 : vector<8x128xf32>
    %395 = arith.addf %393, %394 : vector<8x128xf32>
    %396 = math.tanh %395 : vector<8x128xf32>
    %397 = arith.mulf %392, %396 : vector<8x128xf32>
    %398 = vector.broadcast %358 : i32 to vector<8x128xi32>
    %399 = arith.cmpi eq, %5, %398 : vector<8x128xi32>
    %400 = arith.select %399, %397, %356 : vector<8x128xi1>, vector<8x128xf32>
    %c1_i32_169 = arith.constant 1 : i32
    %c8_i32_170 = arith.constant 8 : i32
    %401 = arith.muli %arg0, %c8_i32_170 : i32
    %402 = arith.addi %401, %c1_i32_169 : i32
    %c8_i32_171 = arith.constant 8 : i32
    %403 = arith.muli %c1_i32_169, %c8_i32_171 : i32
    %404 = tpu.assume_multiple %403, 8 : i32
    %405 = arith.index_cast %404 : i32 to index
    %c0_172 = arith.constant 0 : index
    %406 = vector.load %arg16[%405, %c0_172] : memref<64x512xf32, #tpu.memory_space<vmem>>, vector<8x512xf32>
    %407 = arith.truncf %397 : vector<8x128xf32> to vector<8x128xbf16>
    %c0_173 = arith.constant 0 : index
    %c0_174 = arith.constant 0 : index
    %408 = vector.load %arg5[%c0_173, %c0_174] : memref<128x512xbf16, #tpu.memory_space<vmem>>, vector<128x512xbf16>
    %cst_175 = arith.constant dense<0.000000e+00> : vector<8x512xf32>
    %409 = tpu.matmul %407, %408, %cst_175 {dimension_numbers = #tpu.dot_dimension_numbers<[1], [0], [0], [1], [0, 0, 1, 1], [], []>} : vector<8x128xbf16>, vector<128x512xbf16>, vector<8x512xf32> -> vector<8x512xf32>
    %410 = arith.addf %406, %409 : vector<8x512xf32>
    %411 = vector.extract_strided_slice %410 {offsets = [0, 0], sizes = [8, 128], strides = [1, 1]} : vector<8x512xf32> to vector<8x128xf32>
    %cst_176 = arith.constant 5.000000e-01 : f32
    %412 = vector.broadcast %cst_176 : f32 to vector<8x128xf32>
    %413 = arith.mulf %412, %411 : vector<8x128xf32>
    %414 = math.tanh %413 : vector<8x128xf32>
    %cst_177 = arith.constant 5.000000e-01 : f32
    %415 = vector.broadcast %cst_177 : f32 to vector<8x128xf32>
    %416 = arith.mulf %415, %414 : vector<8x128xf32>
    %cst_178 = arith.constant 5.000000e-01 : f32
    %417 = vector.broadcast %cst_178 : f32 to vector<8x128xf32>
    %418 = arith.addf %416, %417 : vector<8x128xf32>
    %419 = vector.extract_strided_slice %410 {offsets = [0, 128], sizes = [8, 128], strides = [1, 1]} : vector<8x512xf32> to vector<8x128xf32>
    %cst_179 = arith.constant 5.000000e-01 : f32
    %420 = vector.broadcast %cst_179 : f32 to vector<8x128xf32>
    %421 = arith.mulf %420, %419 : vector<8x128xf32>
    %422 = math.tanh %421 : vector<8x128xf32>
    %cst_180 = arith.constant 5.000000e-01 : f32
    %423 = vector.broadcast %cst_180 : f32 to vector<8x128xf32>
    %424 = arith.mulf %423, %422 : vector<8x128xf32>
    %cst_181 = arith.constant 5.000000e-01 : f32
    %425 = vector.broadcast %cst_181 : f32 to vector<8x128xf32>
    %426 = arith.addf %424, %425 : vector<8x128xf32>
    %427 = vector.extract_strided_slice %410 {offsets = [0, 256], sizes = [8, 128], strides = [1, 1]} : vector<8x512xf32> to vector<8x128xf32>
    %428 = math.tanh %427 : vector<8x128xf32>
    %429 = vector.extract_strided_slice %410 {offsets = [0, 384], sizes = [8, 128], strides = [1, 1]} : vector<8x512xf32> to vector<8x128xf32>
    %cst_182 = arith.constant 5.000000e-01 : f32
    %430 = vector.broadcast %cst_182 : f32 to vector<8x128xf32>
    %431 = arith.mulf %430, %429 : vector<8x128xf32>
    %432 = math.tanh %431 : vector<8x128xf32>
    %cst_183 = arith.constant 5.000000e-01 : f32
    %433 = vector.broadcast %cst_183 : f32 to vector<8x128xf32>
    %434 = arith.mulf %433, %432 : vector<8x128xf32>
    %cst_184 = arith.constant 5.000000e-01 : f32
    %435 = vector.broadcast %cst_184 : f32 to vector<8x128xf32>
    %436 = arith.addf %434, %435 : vector<8x128xf32>
    %437 = arith.mulf %426, %395 : vector<8x128xf32>
    %438 = arith.mulf %418, %428 : vector<8x128xf32>
    %439 = arith.addf %437, %438 : vector<8x128xf32>
    %440 = math.tanh %439 : vector<8x128xf32>
    %441 = arith.mulf %436, %440 : vector<8x128xf32>
    %442 = vector.broadcast %402 : i32 to vector<8x128xi32>
    %443 = arith.cmpi eq, %5, %442 : vector<8x128xi32>
    %444 = arith.select %443, %441, %400 : vector<8x128xi1>, vector<8x128xf32>
    %c2_i32_185 = arith.constant 2 : i32
    %c8_i32_186 = arith.constant 8 : i32
    %445 = arith.muli %arg0, %c8_i32_186 : i32
    %446 = arith.addi %445, %c2_i32_185 : i32
    %c8_i32_187 = arith.constant 8 : i32
    %447 = arith.muli %c2_i32_185, %c8_i32_187 : i32
    %448 = tpu.assume_multiple %447, 8 : i32
    %449 = arith.index_cast %448 : i32 to index
    %c0_188 = arith.constant 0 : index
    %450 = vector.load %arg16[%449, %c0_188] : memref<64x512xf32, #tpu.memory_space<vmem>>, vector<8x512xf32>
    %451 = arith.truncf %441 : vector<8x128xf32> to vector<8x128xbf16>
    %c0_189 = arith.constant 0 : index
    %c0_190 = arith.constant 0 : index
    %452 = vector.load %arg5[%c0_189, %c0_190] : memref<128x512xbf16, #tpu.memory_space<vmem>>, vector<128x512xbf16>
    %cst_191 = arith.constant dense<0.000000e+00> : vector<8x512xf32>
    %453 = tpu.matmul %451, %452, %cst_191 {dimension_numbers = #tpu.dot_dimension_numbers<[1], [0], [0], [1], [0, 0, 1, 1], [], []>} : vector<8x128xbf16>, vector<128x512xbf16>, vector<8x512xf32> -> vector<8x512xf32>
    %454 = arith.addf %450, %453 : vector<8x512xf32>
    %455 = vector.extract_strided_slice %454 {offsets = [0, 0], sizes = [8, 128], strides = [1, 1]} : vector<8x512xf32> to vector<8x128xf32>
    %cst_192 = arith.constant 5.000000e-01 : f32
    %456 = vector.broadcast %cst_192 : f32 to vector<8x128xf32>
    %457 = arith.mulf %456, %455 : vector<8x128xf32>
    %458 = math.tanh %457 : vector<8x128xf32>
    %cst_193 = arith.constant 5.000000e-01 : f32
    %459 = vector.broadcast %cst_193 : f32 to vector<8x128xf32>
    %460 = arith.mulf %459, %458 : vector<8x128xf32>
    %cst_194 = arith.constant 5.000000e-01 : f32
    %461 = vector.broadcast %cst_194 : f32 to vector<8x128xf32>
    %462 = arith.addf %460, %461 : vector<8x128xf32>
    %463 = vector.extract_strided_slice %454 {offsets = [0, 128], sizes = [8, 128], strides = [1, 1]} : vector<8x512xf32> to vector<8x128xf32>
    %cst_195 = arith.constant 5.000000e-01 : f32
    %464 = vector.broadcast %cst_195 : f32 to vector<8x128xf32>
    %465 = arith.mulf %464, %463 : vector<8x128xf32>
    %466 = math.tanh %465 : vector<8x128xf32>
    %cst_196 = arith.constant 5.000000e-01 : f32
    %467 = vector.broadcast %cst_196 : f32 to vector<8x128xf32>
    %468 = arith.mulf %467, %466 : vector<8x128xf32>
    %cst_197 = arith.constant 5.000000e-01 : f32
    %469 = vector.broadcast %cst_197 : f32 to vector<8x128xf32>
    %470 = arith.addf %468, %469 : vector<8x128xf32>
    %471 = vector.extract_strided_slice %454 {offsets = [0, 256], sizes = [8, 128], strides = [1, 1]} : vector<8x512xf32> to vector<8x128xf32>
    %472 = math.tanh %471 : vector<8x128xf32>
    %473 = vector.extract_strided_slice %454 {offsets = [0, 384], sizes = [8, 128], strides = [1, 1]} : vector<8x512xf32> to vector<8x128xf32>
    %cst_198 = arith.constant 5.000000e-01 : f32
    %474 = vector.broadcast %cst_198 : f32 to vector<8x128xf32>
    %475 = arith.mulf %474, %473 : vector<8x128xf32>
    %476 = math.tanh %475 : vector<8x128xf32>
    %cst_199 = arith.constant 5.000000e-01 : f32
    %477 = vector.broadcast %cst_199 : f32 to vector<8x128xf32>
    %478 = arith.mulf %477, %476 : vector<8x128xf32>
    %cst_200 = arith.constant 5.000000e-01 : f32
    %479 = vector.broadcast %cst_200 : f32 to vector<8x128xf32>
    %480 = arith.addf %478, %479 : vector<8x128xf32>
    %481 = arith.mulf %470, %439 : vector<8x128xf32>
    %482 = arith.mulf %462, %472 : vector<8x128xf32>
    %483 = arith.addf %481, %482 : vector<8x128xf32>
    %484 = math.tanh %483 : vector<8x128xf32>
    %485 = arith.mulf %480, %484 : vector<8x128xf32>
    %486 = vector.broadcast %446 : i32 to vector<8x128xi32>
    %487 = arith.cmpi eq, %5, %486 : vector<8x128xi32>
    %488 = arith.select %487, %485, %444 : vector<8x128xi1>, vector<8x128xf32>
    %c3_i32_201 = arith.constant 3 : i32
    %c8_i32_202 = arith.constant 8 : i32
    %489 = arith.muli %arg0, %c8_i32_202 : i32
    %490 = arith.addi %489, %c3_i32_201 : i32
    %c8_i32_203 = arith.constant 8 : i32
    %491 = arith.muli %c3_i32_201, %c8_i32_203 : i32
    %492 = tpu.assume_multiple %491, 8 : i32
    %493 = arith.index_cast %492 : i32 to index
    %c0_204 = arith.constant 0 : index
    %494 = vector.load %arg16[%493, %c0_204] : memref<64x512xf32, #tpu.memory_space<vmem>>, vector<8x512xf32>
    %495 = arith.truncf %485 : vector<8x128xf32> to vector<8x128xbf16>
    %c0_205 = arith.constant 0 : index
    %c0_206 = arith.constant 0 : index
    %496 = vector.load %arg5[%c0_205, %c0_206] : memref<128x512xbf16, #tpu.memory_space<vmem>>, vector<128x512xbf16>
    %cst_207 = arith.constant dense<0.000000e+00> : vector<8x512xf32>
    %497 = tpu.matmul %495, %496, %cst_207 {dimension_numbers = #tpu.dot_dimension_numbers<[1], [0], [0], [1], [0, 0, 1, 1], [], []>} : vector<8x128xbf16>, vector<128x512xbf16>, vector<8x512xf32> -> vector<8x512xf32>
    %498 = arith.addf %494, %497 : vector<8x512xf32>
    %499 = vector.extract_strided_slice %498 {offsets = [0, 0], sizes = [8, 128], strides = [1, 1]} : vector<8x512xf32> to vector<8x128xf32>
    %cst_208 = arith.constant 5.000000e-01 : f32
    %500 = vector.broadcast %cst_208 : f32 to vector<8x128xf32>
    %501 = arith.mulf %500, %499 : vector<8x128xf32>
    %502 = math.tanh %501 : vector<8x128xf32>
    %cst_209 = arith.constant 5.000000e-01 : f32
    %503 = vector.broadcast %cst_209 : f32 to vector<8x128xf32>
    %504 = arith.mulf %503, %502 : vector<8x128xf32>
    %cst_210 = arith.constant 5.000000e-01 : f32
    %505 = vector.broadcast %cst_210 : f32 to vector<8x128xf32>
    %506 = arith.addf %504, %505 : vector<8x128xf32>
    %507 = vector.extract_strided_slice %498 {offsets = [0, 128], sizes = [8, 128], strides = [1, 1]} : vector<8x512xf32> to vector<8x128xf32>
    %cst_211 = arith.constant 5.000000e-01 : f32
    %508 = vector.broadcast %cst_211 : f32 to vector<8x128xf32>
    %509 = arith.mulf %508, %507 : vector<8x128xf32>
    %510 = math.tanh %509 : vector<8x128xf32>
    %cst_212 = arith.constant 5.000000e-01 : f32
    %511 = vector.broadcast %cst_212 : f32 to vector<8x128xf32>
    %512 = arith.mulf %511, %510 : vector<8x128xf32>
    %cst_213 = arith.constant 5.000000e-01 : f32
    %513 = vector.broadcast %cst_213 : f32 to vector<8x128xf32>
    %514 = arith.addf %512, %513 : vector<8x128xf32>
    %515 = vector.extract_strided_slice %498 {offsets = [0, 256], sizes = [8, 128], strides = [1, 1]} : vector<8x512xf32> to vector<8x128xf32>
    %516 = math.tanh %515 : vector<8x128xf32>
    %517 = vector.extract_strided_slice %498 {offsets = [0, 384], sizes = [8, 128], strides = [1, 1]} : vector<8x512xf32> to vector<8x128xf32>
    %cst_214 = arith.constant 5.000000e-01 : f32
    %518 = vector.broadcast %cst_214 : f32 to vector<8x128xf32>
    %519 = arith.mulf %518, %517 : vector<8x128xf32>
    %520 = math.tanh %519 : vector<8x128xf32>
    %cst_215 = arith.constant 5.000000e-01 : f32
    %521 = vector.broadcast %cst_215 : f32 to vector<8x128xf32>
    %522 = arith.mulf %521, %520 : vector<8x128xf32>
    %cst_216 = arith.constant 5.000000e-01 : f32
    %523 = vector.broadcast %cst_216 : f32 to vector<8x128xf32>
    %524 = arith.addf %522, %523 : vector<8x128xf32>
    %525 = arith.mulf %514, %483 : vector<8x128xf32>
    %526 = arith.mulf %506, %516 : vector<8x128xf32>
    %527 = arith.addf %525, %526 : vector<8x128xf32>
    %528 = math.tanh %527 : vector<8x128xf32>
    %529 = arith.mulf %524, %528 : vector<8x128xf32>
    %530 = vector.broadcast %490 : i32 to vector<8x128xi32>
    %531 = arith.cmpi eq, %5, %530 : vector<8x128xi32>
    %532 = arith.select %531, %529, %488 : vector<8x128xi1>, vector<8x128xf32>
    %c4_i32_217 = arith.constant 4 : i32
    %c8_i32_218 = arith.constant 8 : i32
    %533 = arith.muli %arg0, %c8_i32_218 : i32
    %534 = arith.addi %533, %c4_i32_217 : i32
    %c8_i32_219 = arith.constant 8 : i32
    %535 = arith.muli %c4_i32_217, %c8_i32_219 : i32
    %536 = tpu.assume_multiple %535, 8 : i32
    %537 = arith.index_cast %536 : i32 to index
    %c0_220 = arith.constant 0 : index
    %538 = vector.load %arg16[%537, %c0_220] : memref<64x512xf32, #tpu.memory_space<vmem>>, vector<8x512xf32>
    %539 = arith.truncf %529 : vector<8x128xf32> to vector<8x128xbf16>
    %c0_221 = arith.constant 0 : index
    %c0_222 = arith.constant 0 : index
    %540 = vector.load %arg5[%c0_221, %c0_222] : memref<128x512xbf16, #tpu.memory_space<vmem>>, vector<128x512xbf16>
    %cst_223 = arith.constant dense<0.000000e+00> : vector<8x512xf32>
    %541 = tpu.matmul %539, %540, %cst_223 {dimension_numbers = #tpu.dot_dimension_numbers<[1], [0], [0], [1], [0, 0, 1, 1], [], []>} : vector<8x128xbf16>, vector<128x512xbf16>, vector<8x512xf32> -> vector<8x512xf32>
    %542 = arith.addf %538, %541 : vector<8x512xf32>
    %543 = vector.extract_strided_slice %542 {offsets = [0, 0], sizes = [8, 128], strides = [1, 1]} : vector<8x512xf32> to vector<8x128xf32>
    %cst_224 = arith.constant 5.000000e-01 : f32
    %544 = vector.broadcast %cst_224 : f32 to vector<8x128xf32>
    %545 = arith.mulf %544, %543 : vector<8x128xf32>
    %546 = math.tanh %545 : vector<8x128xf32>
    %cst_225 = arith.constant 5.000000e-01 : f32
    %547 = vector.broadcast %cst_225 : f32 to vector<8x128xf32>
    %548 = arith.mulf %547, %546 : vector<8x128xf32>
    %cst_226 = arith.constant 5.000000e-01 : f32
    %549 = vector.broadcast %cst_226 : f32 to vector<8x128xf32>
    %550 = arith.addf %548, %549 : vector<8x128xf32>
    %551 = vector.extract_strided_slice %542 {offsets = [0, 128], sizes = [8, 128], strides = [1, 1]} : vector<8x512xf32> to vector<8x128xf32>
    %cst_227 = arith.constant 5.000000e-01 : f32
    %552 = vector.broadcast %cst_227 : f32 to vector<8x128xf32>
    %553 = arith.mulf %552, %551 : vector<8x128xf32>
    %554 = math.tanh %553 : vector<8x128xf32>
    %cst_228 = arith.constant 5.000000e-01 : f32
    %555 = vector.broadcast %cst_228 : f32 to vector<8x128xf32>
    %556 = arith.mulf %555, %554 : vector<8x128xf32>
    %cst_229 = arith.constant 5.000000e-01 : f32
    %557 = vector.broadcast %cst_229 : f32 to vector<8x128xf32>
    %558 = arith.addf %556, %557 : vector<8x128xf32>
    %559 = vector.extract_strided_slice %542 {offsets = [0, 256], sizes = [8, 128], strides = [1, 1]} : vector<8x512xf32> to vector<8x128xf32>
    %560 = math.tanh %559 : vector<8x128xf32>
    %561 = vector.extract_strided_slice %542 {offsets = [0, 384], sizes = [8, 128], strides = [1, 1]} : vector<8x512xf32> to vector<8x128xf32>
    %cst_230 = arith.constant 5.000000e-01 : f32
    %562 = vector.broadcast %cst_230 : f32 to vector<8x128xf32>
    %563 = arith.mulf %562, %561 : vector<8x128xf32>
    %564 = math.tanh %563 : vector<8x128xf32>
    %cst_231 = arith.constant 5.000000e-01 : f32
    %565 = vector.broadcast %cst_231 : f32 to vector<8x128xf32>
    %566 = arith.mulf %565, %564 : vector<8x128xf32>
    %cst_232 = arith.constant 5.000000e-01 : f32
    %567 = vector.broadcast %cst_232 : f32 to vector<8x128xf32>
    %568 = arith.addf %566, %567 : vector<8x128xf32>
    %569 = arith.mulf %558, %527 : vector<8x128xf32>
    %570 = arith.mulf %550, %560 : vector<8x128xf32>
    %571 = arith.addf %569, %570 : vector<8x128xf32>
    %572 = math.tanh %571 : vector<8x128xf32>
    %573 = arith.mulf %568, %572 : vector<8x128xf32>
    %574 = vector.broadcast %534 : i32 to vector<8x128xi32>
    %575 = arith.cmpi eq, %5, %574 : vector<8x128xi32>
    %576 = arith.select %575, %573, %532 : vector<8x128xi1>, vector<8x128xf32>
    %c5_i32_233 = arith.constant 5 : i32
    %c8_i32_234 = arith.constant 8 : i32
    %577 = arith.muli %arg0, %c8_i32_234 : i32
    %578 = arith.addi %577, %c5_i32_233 : i32
    %c8_i32_235 = arith.constant 8 : i32
    %579 = arith.muli %c5_i32_233, %c8_i32_235 : i32
    %580 = tpu.assume_multiple %579, 8 : i32
    %581 = arith.index_cast %580 : i32 to index
    %c0_236 = arith.constant 0 : index
    %582 = vector.load %arg16[%581, %c0_236] : memref<64x512xf32, #tpu.memory_space<vmem>>, vector<8x512xf32>
    %583 = arith.truncf %573 : vector<8x128xf32> to vector<8x128xbf16>
    %c0_237 = arith.constant 0 : index
    %c0_238 = arith.constant 0 : index
    %584 = vector.load %arg5[%c0_237, %c0_238] : memref<128x512xbf16, #tpu.memory_space<vmem>>, vector<128x512xbf16>
    %cst_239 = arith.constant dense<0.000000e+00> : vector<8x512xf32>
    %585 = tpu.matmul %583, %584, %cst_239 {dimension_numbers = #tpu.dot_dimension_numbers<[1], [0], [0], [1], [0, 0, 1, 1], [], []>} : vector<8x128xbf16>, vector<128x512xbf16>, vector<8x512xf32> -> vector<8x512xf32>
    %586 = arith.addf %582, %585 : vector<8x512xf32>
    %587 = vector.extract_strided_slice %586 {offsets = [0, 0], sizes = [8, 128], strides = [1, 1]} : vector<8x512xf32> to vector<8x128xf32>
    %cst_240 = arith.constant 5.000000e-01 : f32
    %588 = vector.broadcast %cst_240 : f32 to vector<8x128xf32>
    %589 = arith.mulf %588, %587 : vector<8x128xf32>
    %590 = math.tanh %589 : vector<8x128xf32>
    %cst_241 = arith.constant 5.000000e-01 : f32
    %591 = vector.broadcast %cst_241 : f32 to vector<8x128xf32>
    %592 = arith.mulf %591, %590 : vector<8x128xf32>
    %cst_242 = arith.constant 5.000000e-01 : f32
    %593 = vector.broadcast %cst_242 : f32 to vector<8x128xf32>
    %594 = arith.addf %592, %593 : vector<8x128xf32>
    %595 = vector.extract_strided_slice %586 {offsets = [0, 128], sizes = [8, 128], strides = [1, 1]} : vector<8x512xf32> to vector<8x128xf32>
    %cst_243 = arith.constant 5.000000e-01 : f32
    %596 = vector.broadcast %cst_243 : f32 to vector<8x128xf32>
    %597 = arith.mulf %596, %595 : vector<8x128xf32>
    %598 = math.tanh %597 : vector<8x128xf32>
    %cst_244 = arith.constant 5.000000e-01 : f32
    %599 = vector.broadcast %cst_244 : f32 to vector<8x128xf32>
    %600 = arith.mulf %599, %598 : vector<8x128xf32>
    %cst_245 = arith.constant 5.000000e-01 : f32
    %601 = vector.broadcast %cst_245 : f32 to vector<8x128xf32>
    %602 = arith.addf %600, %601 : vector<8x128xf32>
    %603 = vector.extract_strided_slice %586 {offsets = [0, 256], sizes = [8, 128], strides = [1, 1]} : vector<8x512xf32> to vector<8x128xf32>
    %604 = math.tanh %603 : vector<8x128xf32>
    %605 = vector.extract_strided_slice %586 {offsets = [0, 384], sizes = [8, 128], strides = [1, 1]} : vector<8x512xf32> to vector<8x128xf32>
    %cst_246 = arith.constant 5.000000e-01 : f32
    %606 = vector.broadcast %cst_246 : f32 to vector<8x128xf32>
    %607 = arith.mulf %606, %605 : vector<8x128xf32>
    %608 = math.tanh %607 : vector<8x128xf32>
    %cst_247 = arith.constant 5.000000e-01 : f32
    %609 = vector.broadcast %cst_247 : f32 to vector<8x128xf32>
    %610 = arith.mulf %609, %608 : vector<8x128xf32>
    %cst_248 = arith.constant 5.000000e-01 : f32
    %611 = vector.broadcast %cst_248 : f32 to vector<8x128xf32>
    %612 = arith.addf %610, %611 : vector<8x128xf32>
    %613 = arith.mulf %602, %571 : vector<8x128xf32>
    %614 = arith.mulf %594, %604 : vector<8x128xf32>
    %615 = arith.addf %613, %614 : vector<8x128xf32>
    %616 = math.tanh %615 : vector<8x128xf32>
    %617 = arith.mulf %612, %616 : vector<8x128xf32>
    %618 = vector.broadcast %578 : i32 to vector<8x128xi32>
    %619 = arith.cmpi eq, %5, %618 : vector<8x128xi32>
    %620 = arith.select %619, %617, %576 : vector<8x128xi1>, vector<8x128xf32>
    %c6_i32_249 = arith.constant 6 : i32
    %c8_i32_250 = arith.constant 8 : i32
    %621 = arith.muli %arg0, %c8_i32_250 : i32
    %622 = arith.addi %621, %c6_i32_249 : i32
    %c8_i32_251 = arith.constant 8 : i32
    %623 = arith.muli %c6_i32_249, %c8_i32_251 : i32
    %624 = tpu.assume_multiple %623, 8 : i32
    %625 = arith.index_cast %624 : i32 to index
    %c0_252 = arith.constant 0 : index
    %626 = vector.load %arg16[%625, %c0_252] : memref<64x512xf32, #tpu.memory_space<vmem>>, vector<8x512xf32>
    %627 = arith.truncf %617 : vector<8x128xf32> to vector<8x128xbf16>
    %c0_253 = arith.constant 0 : index
    %c0_254 = arith.constant 0 : index
    %628 = vector.load %arg5[%c0_253, %c0_254] : memref<128x512xbf16, #tpu.memory_space<vmem>>, vector<128x512xbf16>
    %cst_255 = arith.constant dense<0.000000e+00> : vector<8x512xf32>
    %629 = tpu.matmul %627, %628, %cst_255 {dimension_numbers = #tpu.dot_dimension_numbers<[1], [0], [0], [1], [0, 0, 1, 1], [], []>} : vector<8x128xbf16>, vector<128x512xbf16>, vector<8x512xf32> -> vector<8x512xf32>
    %630 = arith.addf %626, %629 : vector<8x512xf32>
    %631 = vector.extract_strided_slice %630 {offsets = [0, 0], sizes = [8, 128], strides = [1, 1]} : vector<8x512xf32> to vector<8x128xf32>
    %cst_256 = arith.constant 5.000000e-01 : f32
    %632 = vector.broadcast %cst_256 : f32 to vector<8x128xf32>
    %633 = arith.mulf %632, %631 : vector<8x128xf32>
    %634 = math.tanh %633 : vector<8x128xf32>
    %cst_257 = arith.constant 5.000000e-01 : f32
    %635 = vector.broadcast %cst_257 : f32 to vector<8x128xf32>
    %636 = arith.mulf %635, %634 : vector<8x128xf32>
    %cst_258 = arith.constant 5.000000e-01 : f32
    %637 = vector.broadcast %cst_258 : f32 to vector<8x128xf32>
    %638 = arith.addf %636, %637 : vector<8x128xf32>
    %639 = vector.extract_strided_slice %630 {offsets = [0, 128], sizes = [8, 128], strides = [1, 1]} : vector<8x512xf32> to vector<8x128xf32>
    %cst_259 = arith.constant 5.000000e-01 : f32
    %640 = vector.broadcast %cst_259 : f32 to vector<8x128xf32>
    %641 = arith.mulf %640, %639 : vector<8x128xf32>
    %642 = math.tanh %641 : vector<8x128xf32>
    %cst_260 = arith.constant 5.000000e-01 : f32
    %643 = vector.broadcast %cst_260 : f32 to vector<8x128xf32>
    %644 = arith.mulf %643, %642 : vector<8x128xf32>
    %cst_261 = arith.constant 5.000000e-01 : f32
    %645 = vector.broadcast %cst_261 : f32 to vector<8x128xf32>
    %646 = arith.addf %644, %645 : vector<8x128xf32>
    %647 = vector.extract_strided_slice %630 {offsets = [0, 256], sizes = [8, 128], strides = [1, 1]} : vector<8x512xf32> to vector<8x128xf32>
    %648 = math.tanh %647 : vector<8x128xf32>
    %649 = vector.extract_strided_slice %630 {offsets = [0, 384], sizes = [8, 128], strides = [1, 1]} : vector<8x512xf32> to vector<8x128xf32>
    %cst_262 = arith.constant 5.000000e-01 : f32
    %650 = vector.broadcast %cst_262 : f32 to vector<8x128xf32>
    %651 = arith.mulf %650, %649 : vector<8x128xf32>
    %652 = math.tanh %651 : vector<8x128xf32>
    %cst_263 = arith.constant 5.000000e-01 : f32
    %653 = vector.broadcast %cst_263 : f32 to vector<8x128xf32>
    %654 = arith.mulf %653, %652 : vector<8x128xf32>
    %cst_264 = arith.constant 5.000000e-01 : f32
    %655 = vector.broadcast %cst_264 : f32 to vector<8x128xf32>
    %656 = arith.addf %654, %655 : vector<8x128xf32>
    %657 = arith.mulf %646, %615 : vector<8x128xf32>
    %658 = arith.mulf %638, %648 : vector<8x128xf32>
    %659 = arith.addf %657, %658 : vector<8x128xf32>
    %660 = math.tanh %659 : vector<8x128xf32>
    %661 = arith.mulf %656, %660 : vector<8x128xf32>
    %662 = vector.broadcast %622 : i32 to vector<8x128xi32>
    %663 = arith.cmpi eq, %5, %662 : vector<8x128xi32>
    %664 = arith.select %663, %661, %620 : vector<8x128xi1>, vector<8x128xf32>
    %c7_i32_265 = arith.constant 7 : i32
    %c8_i32_266 = arith.constant 8 : i32
    %665 = arith.muli %arg0, %c8_i32_266 : i32
    %666 = arith.addi %665, %c7_i32_265 : i32
    %c8_i32_267 = arith.constant 8 : i32
    %667 = arith.muli %c7_i32_265, %c8_i32_267 : i32
    %668 = tpu.assume_multiple %667, 8 : i32
    %669 = arith.index_cast %668 : i32 to index
    %c0_268 = arith.constant 0 : index
    %670 = vector.load %arg16[%669, %c0_268] : memref<64x512xf32, #tpu.memory_space<vmem>>, vector<8x512xf32>
    %671 = arith.truncf %661 : vector<8x128xf32> to vector<8x128xbf16>
    %c0_269 = arith.constant 0 : index
    %c0_270 = arith.constant 0 : index
    %672 = vector.load %arg5[%c0_269, %c0_270] : memref<128x512xbf16, #tpu.memory_space<vmem>>, vector<128x512xbf16>
    %cst_271 = arith.constant dense<0.000000e+00> : vector<8x512xf32>
    %673 = tpu.matmul %671, %672, %cst_271 {dimension_numbers = #tpu.dot_dimension_numbers<[1], [0], [0], [1], [0, 0, 1, 1], [], []>} : vector<8x128xbf16>, vector<128x512xbf16>, vector<8x512xf32> -> vector<8x512xf32>
    %674 = arith.addf %670, %673 : vector<8x512xf32>
    %675 = vector.extract_strided_slice %674 {offsets = [0, 0], sizes = [8, 128], strides = [1, 1]} : vector<8x512xf32> to vector<8x128xf32>
    %cst_272 = arith.constant 5.000000e-01 : f32
    %676 = vector.broadcast %cst_272 : f32 to vector<8x128xf32>
    %677 = arith.mulf %676, %675 : vector<8x128xf32>
    %678 = math.tanh %677 : vector<8x128xf32>
    %cst_273 = arith.constant 5.000000e-01 : f32
    %679 = vector.broadcast %cst_273 : f32 to vector<8x128xf32>
    %680 = arith.mulf %679, %678 : vector<8x128xf32>
    %cst_274 = arith.constant 5.000000e-01 : f32
    %681 = vector.broadcast %cst_274 : f32 to vector<8x128xf32>
    %682 = arith.addf %680, %681 : vector<8x128xf32>
    %683 = vector.extract_strided_slice %674 {offsets = [0, 128], sizes = [8, 128], strides = [1, 1]} : vector<8x512xf32> to vector<8x128xf32>
    %cst_275 = arith.constant 5.000000e-01 : f32
    %684 = vector.broadcast %cst_275 : f32 to vector<8x128xf32>
    %685 = arith.mulf %684, %683 : vector<8x128xf32>
    %686 = math.tanh %685 : vector<8x128xf32>
    %cst_276 = arith.constant 5.000000e-01 : f32
    %687 = vector.broadcast %cst_276 : f32 to vector<8x128xf32>
    %688 = arith.mulf %687, %686 : vector<8x128xf32>
    %cst_277 = arith.constant 5.000000e-01 : f32
    %689 = vector.broadcast %cst_277 : f32 to vector<8x128xf32>
    %690 = arith.addf %688, %689 : vector<8x128xf32>
    %691 = vector.extract_strided_slice %674 {offsets = [0, 256], sizes = [8, 128], strides = [1, 1]} : vector<8x512xf32> to vector<8x128xf32>
    %692 = math.tanh %691 : vector<8x128xf32>
    %693 = vector.extract_strided_slice %674 {offsets = [0, 384], sizes = [8, 128], strides = [1, 1]} : vector<8x512xf32> to vector<8x128xf32>
    %cst_278 = arith.constant 5.000000e-01 : f32
    %694 = vector.broadcast %cst_278 : f32 to vector<8x128xf32>
    %695 = arith.mulf %694, %693 : vector<8x128xf32>
    %696 = math.tanh %695 : vector<8x128xf32>
    %cst_279 = arith.constant 5.000000e-01 : f32
    %697 = vector.broadcast %cst_279 : f32 to vector<8x128xf32>
    %698 = arith.mulf %697, %696 : vector<8x128xf32>
    %cst_280 = arith.constant 5.000000e-01 : f32
    %699 = vector.broadcast %cst_280 : f32 to vector<8x128xf32>
    %700 = arith.addf %698, %699 : vector<8x128xf32>
    %701 = arith.mulf %690, %659 : vector<8x128xf32>
    %702 = arith.mulf %682, %692 : vector<8x128xf32>
    %703 = arith.addf %701, %702 : vector<8x128xf32>
    %704 = math.tanh %703 : vector<8x128xf32>
    %705 = arith.mulf %700, %704 : vector<8x128xf32>
    %706 = vector.broadcast %666 : i32 to vector<8x128xi32>
    %707 = arith.cmpi eq, %5, %706 : vector<8x128xi32>
    %708 = arith.select %707, %705, %664 : vector<8x128xi1>, vector<8x128xf32>
    %c8_i32_281 = arith.constant 8 : i32
    %c0_282 = arith.constant 0 : index
    %c0_283 = arith.constant 0 : index
    %709 = vector.load %arg12[%c0_282, %c0_283] : memref<8x128xf32, #tpu.memory_space<vmem>>, vector<8x128xf32>
    tpu.vector_store %arg12[%c0_282, %c0_283], %705 {strides = array<i32>} : memref<8x128xf32, #tpu.memory_space<vmem>>, vector<8x128xf32>,
    %c0_284 = arith.constant 0 : index
    %c0_285 = arith.constant 0 : index
    %710 = vector.load %arg13[%c0_284, %c0_285] : memref<8x128xf32, #tpu.memory_space<vmem>>, vector<8x128xf32>
    tpu.vector_store %arg13[%c0_284, %c0_285], %703 {strides = array<i32>} : memref<8x128xf32, #tpu.memory_space<vmem>>, vector<8x128xf32>,
    %c0_286 = arith.constant 0 : index
    %c0_287 = arith.constant 0 : index
    %711 = vector.load %arg14[%c0_286, %c0_287] : memref<8x128xf32, #tpu.memory_space<vmem>>, vector<8x128xf32>
    tpu.vector_store %arg14[%c0_286, %c0_287], %708 {strides = array<i32>} : memref<8x128xf32, #tpu.memory_space<vmem>>, vector<8x128xf32>,
    %c0_i32_288 = arith.constant 0 : i32
    %712 = arith.cmpi eq, %arg0, %c0_i32_288 : i32
    %713 = arith.extui %712 : i1 to i32
    %c0_i32_289 = arith.constant 0 : i32
    %714 = arith.cmpi ne, %713, %c0_i32_289 : i32
    scf.if %714 {
      %715 = arith.truncf %708 : vector<8x128xf32> to vector<8x128xbf16>
      %c0_290 = arith.constant 0 : index
      %c0_291 = arith.constant 0 : index
      %716 = vector.load %arg7[%c0_290, %c0_291] : memref<128x128xbf16, #tpu.memory_space<vmem>>, vector<128x128xbf16>
      %cst_292 = arith.constant dense<0.000000e+00> : vector<8x128xf32>
      %717 = tpu.matmul %715, %716, %cst_292 {dimension_numbers = #tpu.dot_dimension_numbers<[1], [0], [0], [1], [0, 0, 1, 1], [], []>} : vector<8x128xbf16>, vector<128x128xbf16>, vector<8x128xf32> -> vector<8x128xf32>
      %c0_293 = arith.constant 0 : index
      %c0_294 = arith.constant 0 : index
      %718 = vector.load %arg8[%c0_293, %c0_294] : memref<1x128xf32, #tpu.memory_space<vmem>>, vector<1x128xf32>
      %719 = vector.broadcast %718 : vector<1x128xf32> to vector<8x128xf32>
      %720 = arith.addf %717, %719 : vector<8x128xf32>
      %c0_295 = arith.constant 0 : index
      %c0_296 = arith.constant 0 : index
      %721 = vector.load %arg9[%c0_295, %c0_296] : memref<8x128xf32, #tpu.memory_space<vmem>>, vector<8x128xf32>
      tpu.vector_store %arg9[%c0_295, %c0_296], %720 {strides = array<i32>} : memref<8x128xf32, #tpu.memory_space<vmem>>, vector<8x128xf32>,
    } else {
    }
    return
  }
  func.func @transform_0(%arg0: i32) -> (i32, i32) {
    %c0_i32 = arith.constant 0 : i32
    %c0_i32_0 = arith.constant 0 : i32
    %c0_i32_1 = arith.constant 0 : i32
    return %c0_i32, %c0_i32_0 : i32, i32
  }
  func.func @transform_1(%arg0: i32) -> (i32, i32, i32) {
    %c0_i32 = arith.constant 0 : i32
    %c0_i32_0 = arith.constant 0 : i32
    %c0_i32_1 = arith.constant 0 : i32
    return %arg0, %c0_i32, %c0_i32_0 : i32, i32, i32
  }
  func.func @transform_2(%arg0: i32) -> (i32, i32) {
    %c0_i32 = arith.constant 0 : i32
    %c0_i32_0 = arith.constant 0 : i32
    %c0_i32_1 = arith.constant 0 : i32
    return %c0_i32, %c0_i32_0 : i32, i32
  }
  func.func @transform_3(%arg0: i32) -> (i32, i32) {
    %c0_i32 = arith.constant 0 : i32
    %c0_i32_0 = arith.constant 0 : i32
    %c0_i32_1 = arith.constant 0 : i32
    return %c0_i32, %c0_i32_0 : i32, i32
  }
  func.func @transform_4(%arg0: i32) -> (i32, i32) {
    %c0_i32 = arith.constant 0 : i32
    %c0_i32_0 = arith.constant 0 : i32
    %c0_i32_1 = arith.constant 0 : i32
    return %c0_i32, %c0_i32_0 : i32, i32
  }
  func.func @transform_5(%arg0: i32) -> (i32, i32) {
    %c0_i32 = arith.constant 0 : i32
    %c0_i32_0 = arith.constant 0 : i32
    %c0_i32_1 = arith.constant 0 : i32
    return %c0_i32, %c0_i32_0 : i32, i32
  }
  func.func @transform_6(%arg0: i32) -> (i32, i32) {
    %c0_i32 = arith.constant 0 : i32
    %c0_i32_0 = arith.constant 0 : i32
    %c0_i32_1 = arith.constant 0 : i32
    return %c0_i32, %c0_i32_0 : i32, i32
  }
  func.func @transform_7(%arg0: i32) -> (i32, i32) {
    %c0_i32 = arith.constant 0 : i32
    %c0_i32_0 = arith.constant 0 : i32
    %c0_i32_1 = arith.constant 0 : i32
    return %c0_i32, %c0_i32_0 : i32, i32
  }
  func.func @transform_8(%arg0: i32) -> (i32, i32) {
    %c0_i32 = arith.constant 0 : i32
    %c0_i32_0 = arith.constant 0 : i32
    %c0_i32_1 = arith.constant 0 : i32
    return %c0_i32, %c0_i32_0 : i32, i32
  }
}

</mosaic_0001>

<bundles_post_ra>
// kernel: tpu_custom_call.1
= control target key start
LH: loop header
LB: loop body
LE: loop exit
PB: predicated region body
PF: predicated region fallthrough
CT: control target
= control target key end

     0   :  { %13 = vsyncpa [#allocation10], 0  ;;  %s6341_s0 = inlined_call_operand.vmem [shape: s32[8,1], index: 0, kind: input, shape index: {}]   ;;  %s6342_s1 = inlined_call_operand.hbm [shape: f32[8,8,512], index: 1, kind: input, shape index: {}]   ;;  %s6343_s2 = inlined_call_operand.hbm [shape: bf16[128,512], index: 2, kind: input, shape index: {}]   ;;  %s6344_s3 = inlined_call_operand.hbm [shape: bf16[128,512], index: 3, kind: input, shape index: {}]   ;;  %s6345_s4 = inlined_call_operand.hbm [shape: bf16[128,512], index: 4, kind: input, shape index: {}]   ;;  %s6346_s5 = inlined_call_operand.vmem [shape: f32[1,512], index: 5, kind: input, shape index: {}]   ;;  %s6347_s6 = inlined_call_operand.hbm [shape: bf16[128,128], index: 6, kind: input, shape index: {}]   ;;  %s6348_s7 = inlined_call_operand.vmem [shape: f32[1,128], index: 7, kind: input, shape index: {}]   ;;  %s6349_s8 = inlined_call_operand.hbm [shape: f32[8,128], index: 8, kind: output, shape index: {}]  }
   0x1   :  { %14 = vsyncpa [#allocation13], 0 }
   0x2   :  { %15 = vsyncpa [#allocation16], 0 }
   0x3   :  { %16 = vsyncpa [#allocation11], 0  ;;  %s5123_s27 = smov [#allocation12]   ;;  %s4983_s9 = scalar_lea.hbm %s6343_s2, 4096 }
   0x4   :  { %s36_s28 = sshll.u32 %s5123_s27, 4  ;;  %p4984_p0 = scmp.ne.s32.totalorder %s6343_s2, %s4983_s9  ;;  %s37_s28 = int_to_ptr.vmem [resolvable:$true] %s36_s28 }
   0x5   :  { %p4987_p1 = scmp.lt.u32.totalorder %s4983_s9, %s6343_s2 }
   0x7   :  { %p4989_p2 = pnand %p4987_p1, %p4984_p0 }
   0x9   :  { %4992 = shalt.err (!%p4989_p2)
}
   0xa   :  { %s4993_s14 = scalar_lea.vmem %s37_s28, 4096  ;;  %p4998_p4 = scmp.lt.s32.totalorder %s37_s28, %s37_s28 }
   0xb   :  { %p4994_p3 = scmp.ne.s32.totalorder %s37_s28, %s4993_s14  ;;  %p4999_p5 = scmp.lt.s32.totalorder %s4993_s14, %s4993_s14 }
   0xd   :  { %p5000_p6 = por %p4999_p5, %p4998_p4 }
   0xf   :  { %p5001_p7 = pnand %p5000_p6, %p4994_p3 }
  0x11   :  { %5004 = shalt.err (!%p5001_p7)
}
  0x12   :  { %s5124_s15 = smov 256   ;;  %s5125_s16 = smov 16  }
  0x13   :  { %42 = dma.hbm_to_vmem [thread:$0]  %s6343_s2, 4096, %s37_s28, [#allocation13], %s5124_s15, %s5124_s15, %s5125_s16  }
  0x14   :  { %s5126_s19 = smov [#allocation15]   ;;  %s5127_s21 = smov [#allocation9]  }
  0x15   :  { %s60_s20 = sshll.u32 %s5126_s19, 4  ;;  %s24_s22 = sshll.u32 %s5127_s21, 4  ;;  %s61_s20 = int_to_ptr.vmem [resolvable:$true] %s60_s20  ;;  %s25_s22 = int_to_ptr.vmem [resolvable:$true] %s24_s22 }
  0x16   :  { %s5005_s25 = scalar_lea.hbm %s6345_s4, 4096 }
  0x17   :  { %p5006_p8 = scmp.ne.s32.totalorder %s6345_s4, %s5005_s25  ;;  %p5009_p9 = scmp.lt.u32.totalorder %s5005_s25, %s6345_s4 }
  0x19   :  { %p5011_p10 = pnand %p5009_p9, %p5006_p8 }
  0x1b   :  { %5014 = shalt.err (!%p5011_p10)
}
  0x1c   :  { %s5015_s2 = scalar_lea.vmem %s61_s20, 4096  ;;  %p5020_p12 = scmp.lt.s32.totalorder %s61_s20, %s61_s20 }
  0x1d   :  { %p5016_p11 = scmp.ne.s32.totalorder %s61_s20, %s5015_s2  ;;  %p5021_p13 = scmp.lt.s32.totalorder %s5015_s2, %s5015_s2 }
  0x1f   :  { %p5022_p0 = por %p5021_p13, %p5020_p12 }
  0x21   :  { %p5023_p1 = pnand %p5022_p0, %p5016_p11 }
  0x23   :  { %5026 = shalt.err (!%p5023_p1)
}
  0x24   :  { %66 = dma.hbm_to_vmem [thread:$0]  %s6345_s4, 4096, %s61_s20, [#allocation16], %s5124_s15, %s5124_s15, %s5125_s16  }
  0x25   :  { %s5027_s12 = scalar_lea.hbm %s6342_s1, 4096 }
  0x26   :  { %p5028_p2 = scmp.ne.s32.totalorder %s6342_s1, %s5027_s12  ;;  %p5031_p3 = scmp.lt.u32.totalorder %s5027_s12, %s6342_s1 }
  0x28   :  { %p5033_p4 = pnand %p5031_p3, %p5028_p2 }
  0x2a   :  { %5036 = shalt.err (!%p5033_p4)
}
  0x2b   :  { %s5037_s19 = scalar_lea.vmem %s25_s22, 4096  ;;  %p5042_p6 = scmp.lt.s32.totalorder %s25_s22, %s25_s22 }
  0x2c   :  { %p5038_p5 = scmp.ne.s32.totalorder %s25_s22, %s5037_s19  ;;  %p5043_p7 = scmp.lt.s32.totalorder %s5037_s19, %s5037_s19 }
  0x2e   :  { %p5044_p8 = por %p5043_p7, %p5042_p6 }
  0x30   :  { %p5045_p9 = pnand %p5044_p8, %p5038_p5 }
  0x32   :  { %5048 = shalt.err (!%p5045_p9)
}
  0x33   :  { %s5128_s4 = smov 512   ;;  %s5129_s20 = smov 32  }
  0x34   :  { %30 = dma.hbm_to_vmem [thread:$0]  %s6342_s1, 4096, %s25_s22, [#allocation10], %s5128_s4, %s5128_s4, %s5129_s20  }
  0x35   :  { %s5130_s24 = smov [#allocation14]   ;;  %s5131_s26 = smov [#allocation17]  }
  0x36   :  { %s48_s25 = sshll.u32 %s5130_s24, 4  ;;  %s74_s27 = sshll.u32 %s5131_s26, 4  ;;  %s49_s25 = int_to_ptr.vmem [resolvable:$true] %s48_s25  ;;  %s75_s27 = int_to_ptr.vmem [resolvable:$true] %s74_s27 }
  0x37   :  { %s5049_s2 = scalar_lea.hbm %s6344_s3, 4096 }
  0x38   :  { %p5050_p10 = scmp.ne.s32.totalorder %s6344_s3, %s5049_s2  ;;  %p5053_p11 = scmp.lt.u32.totalorder %s5049_s2, %s6344_s3 }
  0x3a   :  { %p5055_p12 = pnand %p5053_p11, %p5050_p10 }
  0x3c   :  { %5058 = shalt.err (!%p5055_p12)
}
  0x3d   :  { %s5059_s1 = scalar_lea.vmem %s49_s25, 4096  ;;  %p5064_p0 = scmp.lt.s32.totalorder %s49_s25, %s49_s25 }
  0x3e   :  { %p5060_p13 = scmp.ne.s32.totalorder %s49_s25, %s5059_s1  ;;  %p5065_p1 = scmp.lt.s32.totalorder %s5059_s1, %s5059_s1 }
  0x40   :  { %p5066_p2 = por %p5065_p1, %p5064_p0 }
  0x42   :  { %p5067_p3 = pnand %p5066_p2, %p5060_p13 }
  0x44   :  { %5070 = shalt.err (!%p5067_p3)
}
  0x45   :  { %54 = dma.hbm_to_vmem [thread:$0]  %s6344_s3, 4096, %s49_s25, [#allocation13], %s5124_s15, %s5124_s15, %s5125_s16  }
  0x46   :  { %s5071_s17 = scalar_lea.hbm %s6347_s6, 1024 }
  0x47   :  { %p5072_p4 = scmp.ne.s32.totalorder %s6347_s6, %s5071_s17  ;;  %p5075_p5 = scmp.lt.u32.totalorder %s5071_s17, %s6347_s6 }
  0x49   :  { %p5077_p6 = pnand %p5075_p5, %p5072_p4 }
  0x4b   :  { %5080 = shalt.err (!%p5077_p6)
}
  0x4c   :  { %s5081_s21 = scalar_lea.vmem %s75_s27, 1024  ;;  %p5086_p8 = scmp.lt.s32.totalorder %s75_s27, %s75_s27 }
  0x4d   :  { %p5082_p7 = scmp.ne.s32.totalorder %s75_s27, %s5081_s21  ;;  %p5087_p9 = scmp.lt.s32.totalorder %s5081_s21, %s5081_s21 }
  0x4f   :  { %p5088_p10 = por %p5087_p9, %p5086_p8 }
  0x51   :  { %p5089_p11 = pnand %p5088_p10, %p5082_p7 }
  0x53   :  { %5092 = shalt.err (!%p5089_p11)
}
  0x54   :  { %s5132_s3 = smov 64   ;;  %s5133_s15 = smov 4  }
  0x55   :  { %80 = dma.hbm_to_vmem [thread:$0]  %s6347_s6, 1024, %s75_s27, [#allocation16], %s5132_s3, %s5132_s3, %s5133_s15  }
  0x56   :  { %5115 = dma.done.wait [#allocation10], 4096  }
  0x57   :  { %5116 = vsyncadd [#allocation10], 4294963200 }
  0x58   :  { %5117 = dma.done.wait [#allocation13], 8192  }
  0x59   :  { %5118 = vsyncadd [#allocation13], 4294959104 }
  0x5a   :  { %5119 = dma.done.wait [#allocation16], 5120  }
  0x5b   :  { %5120 = vsyncadd [#allocation16], 4294962176  ;;  %v6350_v0 = vmov 0   ;;  %v5256_v1 = vld [vmem:[#allocation12 + $0x4] ss:$16 sps:$4 sm:$0xff]   ;;  %v5135_v33 = vmov 0.0|0.0  }
  0x5c   :  { %343 = vmatprep.mubr.bf16.mxu0 %v6350_v0  ;;  %384 = vmatprep.mubr.bf16.mxu1 %v6350_v0  ;;  %v5258_v2 = vld [vmem:[#allocation12] ss:$16 sps:$4 sm:$0xff]   ;;  %v5261_v3 = vld [vmem:[#allocation12 + $0x24] ss:$16 sps:$4 sm:$0xff]   ;;  %v5264_v4 = vld [vmem:[#allocation12 + $0xc] ss:$16 sps:$4 sm:$0xff]  }
  0x5d   :  { %4590 = vset.pattern.permute.xlu0 %v6350_v0  ;;  %311 = vmatprep.subr.bf16.mxu0 %v5256_v1  ;;  %v5266_v5 = vld [vmem:[#allocation12 + $0x20] ss:$16 sps:$4 sm:$0xff]   ;;  %v5268_v6 = vld [vmem:[#allocation12 + $0x8] ss:$16 sps:$4 sm:$0xff]   ;;  %v5271_v7 = vld [vmem:[#allocation12 + $0x44] ss:$16 sps:$4 sm:$0xff]  }
  0x5e   :  { %312 = vmatpush1.bf16.msra.mxu0 %v5258_v2  ;;  %352 = vmatprep.subr.bf16.mxu1 %v5264_v4  ;;  %v5274_v8 = vld [vmem:[#allocation12 + $0x2c] ss:$16 sps:$4 sm:$0xff]   ;;  %v5277_v9 = vld [vmem:[#allocation12 + $0x28] ss:$16 sps:$4 sm:$0xff]   ;;  %v5281_v10 = vld [vmem:[#allocation12 + $0x40] ss:$16 sps:$4 sm:$0xff]  }
  0x5f   :  { %313 = vmatprep.subr.bf16.mxu0 %v5261_v3  ;;  %353 = vmatpush1.bf16.msra.mxu1 %v5268_v6  ;;  %v5284_v11 = vld [vmem:[#allocation12 + $0x64] ss:$16 sps:$4 sm:$0xff]   ;;  %v5286_v12 = vld [vmem:[#allocation12 + $0x4c] ss:$16 sps:$4 sm:$0xff]   ;;  %v5289_v13 = vld [vmem:[#allocation12 + $0x48] ss:$16 sps:$4 sm:$0xff]  }
  0x60   :  { %354 = vmatprep.subr.bf16.mxu1 %v5274_v8  ;;  %v5293_v14 = vld [vmem:[#allocation12 + $0x60] ss:$16 sps:$4 sm:$0xff]   ;;  %v5295_v15 = vld [vmem:[#allocation12 + $0x6c] ss:$16 sps:$4 sm:$0xff]   ;;  %v5298_v16 = vld [vmem:[#allocation12 + $0x84] ss:$16 sps:$4 sm:$0xff]  }
  0x61   :  { %v5301_v17 = vld [vmem:[#allocation12 + $0x80] ss:$16 sps:$4 sm:$0xff]   ;;  %v5303_v18 = vld [vmem:[#allocation12 + $0x68] ss:$16 sps:$4 sm:$0xff]   ;;  %v5307_v19 = vld [vmem:[#allocation12 + $0x8c] ss:$16 sps:$4 sm:$0xff]  }
  0x62   :  { %314 = vmatpush1.bf16.msra.mxu0 %v5266_v5  ;;  %v5310_v20 = vld [vmem:[#allocation12 + $0xa4] ss:$16 sps:$4 sm:$0xff]   ;;  %v5313_v21 = vld [vmem:[#allocation12 + $0x88] ss:$16 sps:$4 sm:$0xff]   ;;  %v5317_v22 = vld [vmem:[#allocation12 + $0xa0] ss:$16 sps:$4 sm:$0xff]  }
  0x63   :  { %315 = vmatprep.subr.bf16.mxu0 %v5271_v7  ;;  %355 = vmatpush1.bf16.msra.mxu1 %v5277_v9  ;;  %v5319_v23 = vld [vmem:[#allocation12 + $0xac] ss:$16 sps:$4 sm:$0xff]   ;;  %v5322_v24 = vld [vmem:[#allocation12 + $0xc4] ss:$16 sps:$4 sm:$0xff]   ;;  %v5324_v25 = vld [vmem:[#allocation12 + $0xc0] ss:$16 sps:$4 sm:$0xff]  }
  0x64   :  { %356 = vmatprep.subr.bf16.mxu1 %v5286_v12  ;;  %v5326_v26 = vld [vmem:[#allocation12 + $0xa8] ss:$16 sps:$4 sm:$0xff]   ;;  %v5328_v27 = vld [vmem:[#allocation12 + $0xcc] ss:$16 sps:$4 sm:$0xff]   ;;  %v5331_v28 = vld [vmem:[#allocation12 + $0xe4] ss:$16 sps:$4 sm:$0xff]  }
  0x65   :  { %v5336_v29 = vld [vmem:[#allocation12 + $0xc8] ss:$16 sps:$4 sm:$0xff]   ;;  %v5338_v30 = vld [vmem:[#allocation12 + $0xe0] ss:$16 sps:$4 sm:$0xff]   ;;  %v5340_v31 = vld [vmem:[#allocation12 + $0xec] ss:$16 sps:$4 sm:$0xff]  }
  0x66   :  { %316 = vmatpush1.bf16.msra.mxu0 %v5281_v10  ;;  %v5346_v32 = vld [vmem:[#allocation12 + $0xe8] ss:$16 sps:$4 sm:$0xff]   ;;  %v114_v34 = vld [vmem:[#allocation9] sm:$0xff]  ;;  %v116_v39 = vld [vmem:[#allocation9 + $0x10] sm:$0xff]  ;;  %vm5137_vm7 = vmmov 0   ;;  %s5138_s27 = smov [#allocation18]  }
  0x67   :  { %317 = vmatprep.subr.bf16.mxu0 %v5284_v11  ;;  %357 = vmatpush1.bf16.msra.mxu1 %v5289_v13  ;;  %v115_v35 = vld [vmem:[#allocation9 + $0x8] sm:$0xff]  ;;  %v117_v49 = vld [vmem:[#allocation9 + $0x18] sm:$0xff]  ;;  %s4198_s29 = sshll.u32 %s5138_s27, 4  ;;  %s4199_s29 = int_to_ptr.vmem [resolvable:$true] %s4198_s29 }
  0x68   :  { %358 = vmatprep.subr.bf16.mxu1 %v5295_v15  ;;  %s5093_s30 = scalar_lea.vmem %s4199_s29, 128  ;;  %p5098_p13 = scmp.lt.s32.totalorder %s4199_s29, %s4199_s29 }
  0x69   :  { %p5094_p12 = scmp.ne.s32.totalorder %s4199_s29, %s5093_s30  ;;  %p5099_p0 = scmp.lt.s32.totalorder %s5093_s30, %s5093_s30 }
  0x6a   :  { %318 = vmatpush1.bf16.msra.mxu0 %v5293_v14 }
  0x6b   :  { %319 = vmatprep.subr.bf16.mxu0 %v5298_v16  ;;  %359 = vmatpush1.bf16.msra.mxu1 %v5303_v18  ;;  %p5100_p1 = por %p5099_p0, %p5098_p13 }
  0x6c   :  { %360 = vmatprep.subr.bf16.mxu1 %v5307_v19 }
  0x6d   :  { %p5101_p2 = pnand %p5100_p1, %p5094_p12 }
  0x6e   :  { %320 = vmatpush1.bf16.msra.mxu0 %v5301_v17 }
  0x6f   :  { %321 = vmatprep.subr.bf16.mxu0 %v5310_v20  ;;  %361 = vmatpush1.bf16.msra.mxu1 %v5313_v21 }
  0x70   :  { %362 = vmatprep.subr.bf16.mxu1 %v5319_v23 }
  0x72   :  { %322 = vmatpush1.bf16.msra.mxu0 %v5317_v22 }
  0x73   :  { %323 = vmatprep.subr.bf16.mxu0 %v5322_v24  ;;  %363 = vmatpush1.bf16.msra.mxu1 %v5326_v26 }
  0x74   :  { %364 = vmatprep.subr.bf16.mxu1 %v5328_v27 }
  0x76   :  { %324 = vmatpush1.bf16.msra.mxu0 %v5324_v25 }
  0x77   :  { %325 = vmatprep.subr.bf16.mxu0 %v5331_v28  ;;  %365 = vmatpush1.bf16.msra.mxu1 %v5336_v29 }
  0x78   :  { %366 = vmatprep.subr.bf16.mxu1 %v5340_v31 }
  0x7a   :  { %326 = vmatpush1.bf16.msra.mxu0 %v5338_v30 }
  0x7b   :  { %614 = vmatprep.subr.bf16.mxu0 %v5256_v1  ;;  %367 = vmatpush1.bf16.msra.mxu1 %v5346_v32 }
  0x7c   :  { %655 = vmatprep.subr.bf16.mxu1 %v5264_v4 }
  0x7d   :  { %344 = vmatmul.mubr.bf16.vlgmr.msra.gmra.mrb[0].mxu0 %v5135_v33 }
  0x7e   :  { %615 = vmatpush1.bf16.msra.mxu0 %v5258_v2  ;;  %646 = vmatprep.mubr.bf16.mxu0 %v6350_v0 }
  0x7f   :  { %616 = vmatprep.subr.bf16.mxu0 %v5261_v3  ;;  %385 = vmatmul.mubr.bf16.vlgmr.msra.gmra.mrb[0].mxu1 %v5135_v33 }
  0x80   :  { %656 = vmatpush1.bf16.msra.mxu1 %v5268_v6  ;;  %687 = vmatprep.mubr.bf16.mxu1 %v6350_v0 }
  0x81   :  { %657 = vmatprep.subr.bf16.mxu1 %v5274_v8 }
  0x82   :  { %617 = vmatpush1.bf16.msra.mxu0 %v5266_v5 }
  0x83   :  { %618 = vmatprep.subr.bf16.mxu0 %v5271_v7 }
  0x84   :  { %658 = vmatpush1.bf16.msra.mxu1 %v5277_v9 }
  0x85   :  { %659 = vmatprep.subr.bf16.mxu1 %v5286_v12 }
  0x86   :  { %619 = vmatpush1.bf16.msra.mxu0 %v5281_v10 }
  0x87   :  { %620 = vmatprep.subr.bf16.mxu0 %v5284_v11 }
  0x88   :  { %660 = vmatpush1.bf16.msra.mxu1 %v5289_v13 }
  0x89   :  { %661 = vmatprep.subr.bf16.mxu1 %v5295_v15 }
  0x8a   :  { %621 = vmatpush1.bf16.msra.mxu0 %v5293_v14 }
  0x8b   :  { %622 = vmatprep.subr.bf16.mxu0 %v5298_v16 }
  0x8c   :  { %662 = vmatpush1.bf16.msra.mxu1 %v5303_v18 }
  0x8d   :  { %663 = vmatprep.subr.bf16.mxu1 %v5307_v19 }
  0x8e   :  { %623 = vmatpush1.bf16.msra.mxu0 %v5301_v17 }
  0x8f   :  { %624 = vmatprep.subr.bf16.mxu0 %v5310_v20 }
  0x90   :  { %664 = vmatpush1.bf16.msra.mxu1 %v5313_v21 }
  0x91   :  { %665 = vmatprep.subr.bf16.mxu1 %v5319_v23 }
  0x92   :  { %625 = vmatpush1.bf16.msra.mxu0 %v5317_v22 }
  0x93   :  { %626 = vmatprep.subr.bf16.mxu0 %v5322_v24 }
  0x94   :  { %666 = vmatpush1.bf16.msra.mxu1 %v5326_v26 }
  0x95   :  { %667 = vmatprep.subr.bf16.mxu1 %v5328_v27 }
  0x96   :  { %627 = vmatpush1.bf16.msra.mxu0 %v5324_v25 }
  0x97   :  { %628 = vmatprep.subr.bf16.mxu0 %v5331_v28 }
  0x98   :  { %668 = vmatpush1.bf16.msra.mxu1 %v5336_v29 }
  0x99   :  { %669 = vmatprep.subr.bf16.mxu1 %v5340_v31 }
  0x9a   :  { %629 = vmatpush1.bf16.msra.mxu0 %v5338_v30 }
  0x9b   :  { %918 = vmatprep.subr.bf16.mxu0 %v5256_v1 }
  0x9c   :  { %670 = vmatpush1.bf16.msra.mxu1 %v5346_v32 }
  0x9d   :  { %959 = vmatprep.subr.bf16.mxu1 %v5264_v4 }
 0x150   :  { %v345_v36 = vpop.f32.mrb[0].mxu0 }
 0x151   :  { %v393_v37 = vadd.f32 %v345_v36, %v114_v34  ;;  %v347_v38 = vpop.f32.mrb[1].mxu0 }
 0x152   :  { %v394_v40 = vadd.f32 %v347_v38, %v115_v35  ;;  %v349_v41 = vpop.f32.mrb[2].mxu0  ;;  %v386_v44 = vpop.f32.mrb[0].mxu1 }
 0x153   :  { %v397_v42 = vmul.f32 0.5, %v393_v37  ;;  %v350_v43 = vpop.f32.mrb[3].mxu0  ;;  %v395_v46 = vadd.f32 %v386_v44, %v116_v39  ;;  %v388_v47 = vpop.f32.mrb[1].mxu1  ;;  %v417_v39 = vld [vmem:[#allocation9 + $0x20] sm:$0xff] }
 0x154   :  { %v401_v45 = vmul.f32 0.5, %v394_v40  ;;  %v390_v48 = vpop.f32.mrb[2].mxu1  ;;  %v396_v51 = vadd.f32 %v388_v47, %v117_v49  ;;  %v418_v40 = vld [vmem:[#allocation9 + $0x28] sm:$0xff] }
 0x155   :  { %4791 = vtanh.f32 %v397_v42  ;;  %v391_v50 = vpop.f32.mrb[3].mxu1 }
 0x156   :  { %4793 = vtanh.f32 %v401_v45  ;;  %v406_v52 = vmul.f32 0.5, %v396_v51 }
 0x157   :  { %4795 = vtanh.f32 %v395_v46  ;;  %v419_v46 = vld [vmem:[#allocation9 + $0x30] sm:$0xff] }
 0x158   :  { %4797 = vtanh.f32 %v406_v52 }
 0x15f   :  { %v4792_v53 = vpop.eup %4791 }
 0x160   :  { %v4794_v54 = vpop.eup %4793  ;;  %v399_v55 = vmul.f32 0.5, %v4792_v53 }
 0x161   :  { %v4796_v56 = vpop.eup %4795  ;;  %v403_v57 = vmul.f32 0.5, %v4794_v54 }
 0x162   :  { %v400_v58 = vadd.f32 0.5, %v399_v55  ;;  %v4798_v63 = vpop.eup %4797 }
 0x163   :  { %v404_v59 = vadd.f32 0.5, %v403_v57  ;;  %v408_v34 = vmul.f32 0.5, %v4798_v63 }
 0x164   :  { %v411_v60 = vmul.f32 %v4796_v56, %v400_v58 }
 0x165   :  { %v410_v61 = vmul.f32 0.0, %v404_v59  ;;  %v409_v35 = vadd.f32 0.5, %v408_v34 }
 0x167   :  { %v5390_v62 = vadd.f32 %v411_v60, %v410_v61 }
 0x169   :  { %4799 = vtanh.f32 %v5390_v62 }
 0x173   :  { %v4800_v36 = vpop.eup %4799 }
 0x174   :  { %v5393_v37 = vmul.f32 %v4800_v36, %v409_v35 }
 0x176   :  { %v421_v38 = vpack.c.bf16 %v5393_v37, %v5393_v37 }
 0x178   :  { %647 = vmatmul.mubr.bf16.vlgmr.msra.gmra.mrb[4].mxu0 %v421_v38  ;;  %688 = vmatmul.mubr.bf16.vlgmr.msra.gmra.mrb[4].mxu1 %v421_v38 }
 0x179   :  { %919 = vmatpush1.bf16.msra.mxu0 %v5258_v2  ;;  %960 = vmatpush1.bf16.msra.mxu1 %v5268_v6 }
 0x17a   :  { %920 = vmatprep.subr.bf16.mxu0 %v5261_v3  ;;  %961 = vmatprep.subr.bf16.mxu1 %v5274_v8 }
 0x17b   :  { %950 = vmatprep.mubr.bf16.mxu0 %v6350_v0  ;;  %991 = vmatprep.mubr.bf16.mxu1 %v6350_v0 }
 0x17d   :  { %921 = vmatpush1.bf16.msra.mxu0 %v5266_v5  ;;  %962 = vmatpush1.bf16.msra.mxu1 %v5277_v9 }
 0x17e   :  { %922 = vmatprep.subr.bf16.mxu0 %v5271_v7  ;;  %963 = vmatprep.subr.bf16.mxu1 %v5286_v12 }
 0x181   :  { %923 = vmatpush1.bf16.msra.mxu0 %v5281_v10  ;;  %964 = vmatpush1.bf16.msra.mxu1 %v5289_v13 }
 0x182   :  { %924 = vmatprep.subr.bf16.mxu0 %v5284_v11  ;;  %965 = vmatprep.subr.bf16.mxu1 %v5295_v15 }
 0x185   :  { %925 = vmatpush1.bf16.msra.mxu0 %v5293_v14  ;;  %966 = vmatpush1.bf16.msra.mxu1 %v5303_v18 }
 0x186   :  { %926 = vmatprep.subr.bf16.mxu0 %v5298_v16  ;;  %967 = vmatprep.subr.bf16.mxu1 %v5307_v19 }
 0x189   :  { %927 = vmatpush1.bf16.msra.mxu0 %v5301_v17  ;;  %968 = vmatpush1.bf16.msra.mxu1 %v5313_v21 }
 0x18a   :  { %928 = vmatprep.subr.bf16.mxu0 %v5310_v20  ;;  %969 = vmatprep.subr.bf16.mxu1 %v5319_v23 }
 0x18d   :  { %929 = vmatpush1.bf16.msra.mxu0 %v5317_v22  ;;  %970 = vmatpush1.bf16.msra.mxu1 %v5326_v26 }
 0x18e   :  { %930 = vmatprep.subr.bf16.mxu0 %v5322_v24  ;;  %971 = vmatprep.subr.bf16.mxu1 %v5328_v27 }
 0x191   :  { %931 = vmatpush1.bf16.msra.mxu0 %v5324_v25  ;;  %972 = vmatpush1.bf16.msra.mxu1 %v5336_v29 }
 0x192   :  { %932 = vmatprep.subr.bf16.mxu0 %v5331_v28  ;;  %973 = vmatprep.subr.bf16.mxu1 %v5340_v31 }
 0x195   :  { %933 = vmatpush1.bf16.msra.mxu0 %v5338_v30  ;;  %974 = vmatpush1.bf16.msra.mxu1 %v5346_v32 }
 0x196   :  { %1222 = vmatprep.subr.bf16.mxu0 %v5256_v1  ;;  %1263 = vmatprep.subr.bf16.mxu1 %v5264_v4  ;;  %v420_v1 = vld [vmem:[#allocation9 + $0x38] sm:$0xff] }
 0x24b   :  { %v648_v41 = vpop.f32.mrb[4].mxu0  ;;  %v689_v42 = vpop.f32.mrb[4].mxu1 }
 0x24c   :  { %v696_v43 = vadd.f32 %v648_v41, %v417_v39  ;;  %v650_v44 = vpop.f32.mrb[5].mxu0  ;;  %v691_v45 = vpop.f32.mrb[5].mxu1  ;;  %v698_v54 = vadd.f32 %v689_v42, %v419_v46 }
 0x24d   :  { %v697_v47 = vadd.f32 %v650_v44, %v418_v40  ;;  %v652_v48 = vpop.f32.mrb[6].mxu0  ;;  %v693_v49 = vpop.f32.mrb[6].mxu1  ;;  %v699_v4 = vadd.f32 %v691_v45, %v420_v1  ;;  %v5499_v1 = vld [vmem:[#allocation12 + $0x28] ss:$16 sps:$4 sm:$0xff]  }
 0x24e   :  { %v700_v50 = vmul.f32 0.5, %v696_v43  ;;  %v653_v51 = vpop.f32.mrb[7].mxu0  ;;  %v694_v52 = vpop.f32.mrb[7].mxu1  ;;  %v5481_v48 = vld [vmem:[#allocation12 + $0x4] ss:$16 sps:$4 sm:$0xff]  }
 0x24f   :  { %v704_v53 = vmul.f32 0.5, %v697_v47  ;;  %v709_v55 = vmul.f32 0.5, %v699_v4  ;;  %v5483_v49 = vld [vmem:[#allocation12 + $0xc] ss:$16 sps:$4 sm:$0xff]   ;;  %v5487_v51 = vld [vmem:[#allocation12 + $0x8] ss:$16 sps:$4 sm:$0xff]  }
 0x250   :  { %4801 = vtanh.f32 %v700_v50  ;;  %v5485_v50 = vld [vmem:[#allocation12] ss:$16 sps:$4 sm:$0xff]   ;;  %v5493_v52 = vld [vmem:[#allocation12 + $0x24] ss:$16 sps:$4 sm:$0xff]  }
 0x251   :  { %4803 = vtanh.f32 %v704_v53  ;;  %v5495_v53 = vld [vmem:[#allocation12 + $0x2c] ss:$16 sps:$4 sm:$0xff]   ;;  %v5505_v4 = vld [vmem:[#allocation12 + $0x44] ss:$16 sps:$4 sm:$0xff]  }
 0x252   :  { %4805 = vtanh.f32 %v698_v54  ;;  %v5497_v54 = vld [vmem:[#allocation12 + $0x20] ss:$16 sps:$4 sm:$0xff]  }
 0x253   :  { %4807 = vtanh.f32 %v709_v55  ;;  %v5507_v55 = vld [vmem:[#allocation12 + $0x4c] ss:$16 sps:$4 sm:$0xff]  }
 0x25a   :  { %v4802_v56 = vpop.eup %4801 }
 0x25b   :  { %v4804_v57 = vpop.eup %4803  ;;  %v702_v58 = vmul.f32 0.5, %v4802_v56  ;;  %v5509_v56 = vld [vmem:[#allocation12 + $0x40] ss:$16 sps:$4 sm:$0xff]  }
 0x25c   :  { %v706_v59 = vmul.f32 0.5, %v4804_v57  ;;  %v4806_v61 = vpop.eup %4805  ;;  %v5511_v57 = vld [vmem:[#allocation12 + $0x48] ss:$16 sps:$4 sm:$0xff]  }
 0x25d   :  { %v703_v60 = vadd.f32 0.5, %v702_v58  ;;  %v4808_v38 = vpop.eup %4807  ;;  %v5517_v58 = vld [vmem:[#allocation12 + $0x64] ss:$16 sps:$4 sm:$0xff]  }
 0x25e   :  { %v707_v63 = vadd.f32 0.5, %v706_v59  ;;  %v711_v39 = vmul.f32 0.5, %v4808_v38  ;;  %v5519_v59 = vld [vmem:[#allocation12 + $0x6c] ss:$16 sps:$4 sm:$0xff]   ;;  %v5541_v38 = vld [vmem:[#allocation12 + $0xa4] ss:$16 sps:$4 sm:$0xff]  }
 0x25f   :  { %v714_v34 = vmul.f32 %v4806_v61, %v703_v60  ;;  %v5521_v60 = vld [vmem:[#allocation12 + $0x60] ss:$16 sps:$4 sm:$0xff]   ;;  %v5523_v61 = vld [vmem:[#allocation12 + $0x68] ss:$16 sps:$4 sm:$0xff]  }
 0x260   :  { %v713_v35 = vmul.f32 %v707_v63, %v5390_v62  ;;  %v712_v40 = vadd.f32 0.5, %v711_v39  ;;  %v5529_v63 = vld [vmem:[#allocation12 + $0x84] ss:$16 sps:$4 sm:$0xff]   ;;  %v5543_v39 = vld [vmem:[#allocation12 + $0xac] ss:$16 sps:$4 sm:$0xff]  }
 0x262   :  { %v5432_v36 = vadd.f32 %v714_v34, %v713_v35  ;;  %v5531_v34 = vld [vmem:[#allocation12 + $0x8c] ss:$16 sps:$4 sm:$0xff]   ;;  %v5533_v35 = vld [vmem:[#allocation12 + $0x80] ss:$16 sps:$4 sm:$0xff]  }
 0x264   :  { %4809 = vtanh.f32 %v5432_v36 }
 0x26e   :  { %v4810_v41 = vpop.eup %4809 }
 0x26f   :  { %v5435_v42 = vmul.f32 %v4810_v41, %v712_v40  ;;  %v5545_v40 = vld [vmem:[#allocation12 + $0xa0] ss:$16 sps:$4 sm:$0xff]   ;;  %v5547_v41 = vld [vmem:[#allocation12 + $0xa8] ss:$16 sps:$4 sm:$0xff]  }
 0x271   :  { %v725_v43 = vpack.c.bf16 %v5435_v42, %v5435_v42 }
 0x273   :  { %951 = vmatmul.mubr.bf16.vlgmr.msra.gmra.mrb[8].mxu0 %v725_v43  ;;  %992 = vmatmul.mubr.bf16.vlgmr.msra.gmra.mrb[8].mxu1 %v725_v43  ;;  %v5553_v43 = vld [vmem:[#allocation12 + $0xc4] ss:$16 sps:$4 sm:$0xff]  }
 0x274   :  { %1223 = vmatpush1.bf16.msra.mxu0 %v5258_v2  ;;  %1264 = vmatpush1.bf16.msra.mxu1 %v5268_v6  ;;  %v721_v2 = vld [vmem:[#allocation9 + $0x40] sm:$0xff] }
 0x275   :  { %1224 = vmatprep.subr.bf16.mxu0 %v5261_v3  ;;  %1265 = vmatprep.subr.bf16.mxu1 %v5274_v8  ;;  %v722_v3 = vld [vmem:[#allocation9 + $0x48] sm:$0xff] }
 0x276   :  { %1254 = vmatprep.mubr.bf16.mxu0 %v6350_v0  ;;  %1295 = vmatprep.mubr.bf16.mxu1 %v6350_v0 }
 0x278   :  { %1225 = vmatpush1.bf16.msra.mxu0 %v5266_v5  ;;  %1266 = vmatpush1.bf16.msra.mxu1 %v5277_v9 }
 0x279   :  { %1226 = vmatprep.subr.bf16.mxu0 %v5271_v7  ;;  %1267 = vmatprep.subr.bf16.mxu1 %v5286_v12 }
 0x27c   :  { %1227 = vmatpush1.bf16.msra.mxu0 %v5281_v10  ;;  %1268 = vmatpush1.bf16.msra.mxu1 %v5289_v13  ;;  %v723_v10 = vld [vmem:[#allocation9 + $0x50] sm:$0xff] }
 0x27d   :  { %1228 = vmatprep.subr.bf16.mxu0 %v5284_v11  ;;  %1269 = vmatprep.subr.bf16.mxu1 %v5295_v15 }
 0x280   :  { %1229 = vmatpush1.bf16.msra.mxu0 %v5293_v14  ;;  %1270 = vmatpush1.bf16.msra.mxu1 %v5303_v18 }
 0x281   :  { %1230 = vmatprep.subr.bf16.mxu0 %v5298_v16  ;;  %1271 = vmatprep.subr.bf16.mxu1 %v5307_v19  ;;  %v724_v19 = vld [vmem:[#allocation9 + $0x58] sm:$0xff] }
 0x284   :  { %1231 = vmatpush1.bf16.msra.mxu0 %v5301_v17  ;;  %1272 = vmatpush1.bf16.msra.mxu1 %v5313_v21 }
 0x285   :  { %1232 = vmatprep.subr.bf16.mxu0 %v5310_v20  ;;  %1273 = vmatprep.subr.bf16.mxu1 %v5319_v23 }
 0x288   :  { %1233 = vmatpush1.bf16.msra.mxu0 %v5317_v22  ;;  %1274 = vmatpush1.bf16.msra.mxu1 %v5326_v26 }
 0x289   :  { %1234 = vmatprep.subr.bf16.mxu0 %v5322_v24  ;;  %1275 = vmatprep.subr.bf16.mxu1 %v5328_v27 }
 0x28c   :  { %1235 = vmatpush1.bf16.msra.mxu0 %v5324_v25  ;;  %1276 = vmatpush1.bf16.msra.mxu1 %v5336_v29 }
 0x28d   :  { %1236 = vmatprep.subr.bf16.mxu0 %v5331_v28  ;;  %1277 = vmatprep.subr.bf16.mxu1 %v5340_v31 }
 0x290   :  { %1237 = vmatpush1.bf16.msra.mxu0 %v5338_v30  ;;  %1278 = vmatpush1.bf16.msra.mxu1 %v5346_v32 }
 0x291   :  { %1526 = vmatprep.subr.bf16.mxu0 %v5481_v48  ;;  %1567 = vmatprep.subr.bf16.mxu1 %v5483_v49 }
 0x346   :  { %v952_v5 = vpop.f32.mrb[8].mxu0  ;;  %v993_v6 = vpop.f32.mrb[8].mxu1 }
 0x347   :  { %v1000_v7 = vadd.f32 %v952_v5, %v721_v2  ;;  %v954_v8 = vpop.f32.mrb[9].mxu0  ;;  %v995_v9 = vpop.f32.mrb[9].mxu1  ;;  %v1002_v18 = vadd.f32 %v993_v6, %v723_v10  ;;  %v5555_v2 = vld [vmem:[#allocation12 + $0xcc] ss:$16 sps:$4 sm:$0xff]   ;;  %v5559_v5 = vld [vmem:[#allocation12 + $0xc8] ss:$16 sps:$4 sm:$0xff]  }
 0x348   :  { %v1001_v11 = vadd.f32 %v954_v8, %v722_v3  ;;  %v956_v12 = vpop.f32.mrb[10].mxu0  ;;  %v997_v13 = vpop.f32.mrb[10].mxu1  ;;  %v1003_v20 = vadd.f32 %v995_v9, %v724_v19  ;;  %v5557_v3 = vld [vmem:[#allocation12 + $0xc0] ss:$16 sps:$4 sm:$0xff]   ;;  %v5565_v6 = vld [vmem:[#allocation12 + $0xe4] ss:$16 sps:$4 sm:$0xff]  }
 0x349   :  { %v1004_v14 = vmul.f32 0.5, %v1000_v7  ;;  %v957_v15 = vpop.f32.mrb[11].mxu0  ;;  %v998_v16 = vpop.f32.mrb[11].mxu1  ;;  %v5567_v7 = vld [vmem:[#allocation12 + $0xec] ss:$16 sps:$4 sm:$0xff]   ;;  %v1025_v10 = vld [vmem:[#allocation9 + $0x60] sm:$0xff] }
 0x34a   :  { %v1008_v17 = vmul.f32 0.5, %v1001_v11  ;;  %v1013_v21 = vmul.f32 0.5, %v1003_v20  ;;  %v5569_v8 = vld [vmem:[#allocation12 + $0xe0] ss:$16 sps:$4 sm:$0xff]   ;;  %v5571_v9 = vld [vmem:[#allocation12 + $0xe8] ss:$16 sps:$4 sm:$0xff]  }
 0x34b   :  { %4811 = vtanh.f32 %v1004_v14  ;;  %v1026_v11 = vld [vmem:[#allocation9 + $0x68] sm:$0xff] }
 0x34c   :  { %4813 = vtanh.f32 %v1008_v17  ;;  %v1027_v17 = vld [vmem:[#allocation9 + $0x70] sm:$0xff] }
 0x34d   :  { %4815 = vtanh.f32 %v1002_v18 }
 0x34e   :  { %4817 = vtanh.f32 %v1013_v21 }
 0x355   :  { %v4812_v22 = vpop.eup %4811 }
 0x356   :  { %v4814_v23 = vpop.eup %4813  ;;  %v1006_v24 = vmul.f32 0.5, %v4812_v22 }
 0x357   :  { %v1010_v25 = vmul.f32 0.5, %v4814_v23  ;;  %v4816_v27 = vpop.eup %4815 }
 0x358   :  { %v1007_v26 = vadd.f32 0.5, %v1006_v24  ;;  %v4818_v32 = vpop.eup %4817 }
 0x359   :  { %v1011_v28 = vadd.f32 0.5, %v1010_v25  ;;  %v1015_v62 = vmul.f32 0.5, %v4818_v32 }
 0x35a   :  { %v1018_v29 = vmul.f32 %v4816_v27, %v1007_v26  ;;  %v1028_v26 = vld [vmem:[#allocation9 + $0x78] sm:$0xff] }
 0x35b   :  { %v1017_v30 = vmul.f32 %v1011_v28, %v5432_v36  ;;  %v1016_v44 = vadd.f32 0.5, %v1015_v62  ;;  %v5535_v36 = vld [vmem:[#allocation12 + $0x88] ss:$16 sps:$4 sm:$0xff]  }
 0x35d   :  { %v5472_v31 = vadd.f32 %v1018_v29, %v1017_v30 }
 0x35f   :  { %4819 = vtanh.f32 %v5472_v31 }
 0x369   :  { %v4820_v45 = vpop.eup %4819 }
 0x36a   :  { %v5475_v46 = vmul.f32 %v4820_v45, %v1016_v44 }
 0x36c   :  { %v1029_v47 = vpack.c.bf16 %v5475_v46, %v5475_v46 }
 0x36e   :  { %1255 = vmatmul.mubr.bf16.vlgmr.msra.gmra.mrb[12].mxu0 %v1029_v47  ;;  %1296 = vmatmul.mubr.bf16.vlgmr.msra.gmra.mrb[12].mxu1 %v1029_v47 }
 0x36f   :  { %1558 = vmatprep.mubr.bf16.mxu0 %v6350_v0  ;;  %1599 = vmatprep.mubr.bf16.mxu1 %v6350_v0 }
 0x370   :  { %1527 = vmatpush1.bf16.msra.mxu0 %v5485_v50  ;;  %1568 = vmatpush1.bf16.msra.mxu1 %v5487_v51 }
 0x371   :  { %1528 = vmatprep.subr.bf16.mxu0 %v5493_v52  ;;  %1569 = vmatprep.subr.bf16.mxu1 %v5495_v53 }
 0x374   :  { %1529 = vmatpush1.bf16.msra.mxu0 %v5497_v54  ;;  %1570 = vmatpush1.bf16.msra.mxu1 %v5499_v1 }
 0x375   :  { %1530 = vmatprep.subr.bf16.mxu0 %v5505_v4  ;;  %1571 = vmatprep.subr.bf16.mxu1 %v5507_v55 }
 0x378   :  { %1531 = vmatpush1.bf16.msra.mxu0 %v5509_v56  ;;  %1572 = vmatpush1.bf16.msra.mxu1 %v5511_v57 }
 0x379   :  { %1532 = vmatprep.subr.bf16.mxu0 %v5517_v58  ;;  %1573 = vmatprep.subr.bf16.mxu1 %v5519_v59 }
 0x37c   :  { %1533 = vmatpush1.bf16.msra.mxu0 %v5521_v60  ;;  %1574 = vmatpush1.bf16.msra.mxu1 %v5523_v61 }
 0x37d   :  { %1534 = vmatprep.subr.bf16.mxu0 %v5529_v63  ;;  %1575 = vmatprep.subr.bf16.mxu1 %v5531_v34 }
 0x380   :  { %1535 = vmatpush1.bf16.msra.mxu0 %v5533_v35  ;;  %1576 = vmatpush1.bf16.msra.mxu1 %v5535_v36 }
 0x381   :  { %1536 = vmatprep.subr.bf16.mxu0 %v5541_v38  ;;  %1577 = vmatprep.subr.bf16.mxu1 %v5543_v39 }
 0x384   :  { %1537 = vmatpush1.bf16.msra.mxu0 %v5545_v40  ;;  %1578 = vmatpush1.bf16.msra.mxu1 %v5547_v41 }
 0x385   :  { %1538 = vmatprep.subr.bf16.mxu0 %v5553_v43  ;;  %1579 = vmatprep.subr.bf16.mxu1 %v5555_v2 }
 0x388   :  { %1539 = vmatpush1.bf16.msra.mxu0 %v5557_v3  ;;  %1580 = vmatpush1.bf16.msra.mxu1 %v5559_v5 }
 0x389   :  { %1540 = vmatprep.subr.bf16.mxu0 %v5565_v6  ;;  %1581 = vmatprep.subr.bf16.mxu1 %v5567_v7 }
 0x38c   :  { %1541 = vmatpush1.bf16.msra.mxu0 %v5569_v8  ;;  %1582 = vmatpush1.bf16.msra.mxu1 %v5571_v9 }
 0x38d   :  { %1830 = vmatprep.subr.bf16.mxu0 %v5481_v48  ;;  %1871 = vmatprep.subr.bf16.mxu1 %v5483_v49 }
 0x441   :  { %v1256_v12 = vpop.f32.mrb[12].mxu0  ;;  %v1297_v13 = vpop.f32.mrb[12].mxu1 }
 0x442   :  { %v1304_v14 = vadd.f32 %v1256_v12, %v1025_v10  ;;  %v1258_v15 = vpop.f32.mrb[13].mxu0  ;;  %v1299_v16 = vpop.f32.mrb[13].mxu1  ;;  %v1306_v25 = vadd.f32 %v1297_v13, %v1027_v17 }
 0x443   :  { %v1305_v18 = vadd.f32 %v1258_v15, %v1026_v11  ;;  %v1260_v19 = vpop.f32.mrb[14].mxu0  ;;  %v1301_v20 = vpop.f32.mrb[14].mxu1  ;;  %v1307_v27 = vadd.f32 %v1299_v16, %v1028_v26 }
 0x444   :  { %v1308_v21 = vmul.f32 0.5, %v1304_v14  ;;  %v1261_v22 = vpop.f32.mrb[15].mxu0  ;;  %v1302_v23 = vpop.f32.mrb[15].mxu1  ;;  %v1330_v19 = vld [vmem:[#allocation9 + $0x88] sm:$0xff] }
 0x445   :  { %v1312_v24 = vmul.f32 0.5, %v1305_v18  ;;  %v1317_v28 = vmul.f32 0.5, %v1307_v27 }
 0x446   :  { %4821 = vtanh.f32 %v1308_v21 }
 0x447   :  { %4823 = vtanh.f32 %v1312_v24 }
 0x448   :  { %4825 = vtanh.f32 %v1306_v25  ;;  %v1331_v25 = vld [vmem:[#allocation9 + $0x90] sm:$0xff] }
 0x449   :  { %4827 = vtanh.f32 %v1317_v28 }
 0x450   :  { %v4822_v29 = vpop.eup %4821 }
 0x451   :  { %v4824_v30 = vpop.eup %4823  ;;  %v1310_v32 = vmul.f32 0.5, %v4822_v29 }
 0x452   :  { %v1314_v62 = vmul.f32 0.5, %v4824_v30  ;;  %v4826_v45 = vpop.eup %4825 }
 0x453   :  { %v1311_v44 = vadd.f32 0.5, %v1310_v32  ;;  %v4828_v13 = vpop.eup %4827 }
 0x454   :  { %v1315_v47 = vadd.f32 0.5, %v1314_v62  ;;  %v1319_v14 = vmul.f32 0.5, %v4828_v13 }
 0x455   :  { %v1322_v10 = vmul.f32 %v4826_v45, %v1311_v44  ;;  %v1332_v45 = vld [vmem:[#allocation9 + $0x98] sm:$0xff] }
 0x456   :  { %v1321_v11 = vmul.f32 %v1315_v47, %v5472_v31  ;;  %v1320_v15 = vadd.f32 0.5, %v1319_v14  ;;  %v1329_v31 = vld [vmem:[#allocation9 + $0x80] sm:$0xff] }
 0x458   :  { %v5580_v12 = vadd.f32 %v1322_v10, %v1321_v11 }
 0x45a   :  { %4829 = vtanh.f32 %v5580_v12 }
 0x464   :  { %v4830_v16 = vpop.eup %4829 }
 0x465   :  { %v5583_v17 = vmul.f32 %v4830_v16, %v1320_v15 }
 0x467   :  { %v1333_v18 = vpack.c.bf16 %v5583_v17, %v5583_v17 }
 0x469   :  { %1559 = vmatmul.mubr.bf16.vlgmr.msra.gmra.mrb[16].mxu0 %v1333_v18  ;;  %1600 = vmatmul.mubr.bf16.vlgmr.msra.gmra.mrb[16].mxu1 %v1333_v18 }
 0x46a   :  { %1831 = vmatpush1.bf16.msra.mxu0 %v5485_v50  ;;  %1872 = vmatpush1.bf16.msra.mxu1 %v5487_v51 }
 0x46b   :  { %1832 = vmatprep.subr.bf16.mxu0 %v5493_v52  ;;  %1873 = vmatprep.subr.bf16.mxu1 %v5495_v53 }
 0x46c   :  { %1862 = vmatprep.mubr.bf16.mxu0 %v6350_v0  ;;  %1903 = vmatprep.mubr.bf16.mxu1 %v6350_v0 }
 0x46e   :  { %1833 = vmatpush1.bf16.msra.mxu0 %v5497_v54  ;;  %1874 = vmatpush1.bf16.msra.mxu1 %v5499_v1 }
 0x46f   :  { %1834 = vmatprep.subr.bf16.mxu0 %v5505_v4  ;;  %1875 = vmatprep.subr.bf16.mxu1 %v5507_v55 }
 0x472   :  { %1835 = vmatpush1.bf16.msra.mxu0 %v5509_v56  ;;  %1876 = vmatpush1.bf16.msra.mxu1 %v5511_v57 }
 0x473   :  { %1836 = vmatprep.subr.bf16.mxu0 %v5517_v58  ;;  %1877 = vmatprep.subr.bf16.mxu1 %v5519_v59 }
 0x476   :  { %1837 = vmatpush1.bf16.msra.mxu0 %v5521_v60  ;;  %1878 = vmatpush1.bf16.msra.mxu1 %v5523_v61 }
 0x477   :  { %1838 = vmatprep.subr.bf16.mxu0 %v5529_v63  ;;  %1879 = vmatprep.subr.bf16.mxu1 %v5531_v34 }
 0x47a   :  { %1839 = vmatpush1.bf16.msra.mxu0 %v5533_v35  ;;  %1880 = vmatpush1.bf16.msra.mxu1 %v5535_v36 }
 0x47b   :  { %1840 = vmatprep.subr.bf16.mxu0 %v5541_v38  ;;  %1881 = vmatprep.subr.bf16.mxu1 %v5543_v39 }
 0x47e   :  { %1841 = vmatpush1.bf16.msra.mxu0 %v5545_v40  ;;  %1882 = vmatpush1.bf16.msra.mxu1 %v5547_v41 }
 0x47f   :  { %1842 = vmatprep.subr.bf16.mxu0 %v5553_v43  ;;  %1883 = vmatprep.subr.bf16.mxu1 %v5555_v2 }
 0x482   :  { %1843 = vmatpush1.bf16.msra.mxu0 %v5557_v3  ;;  %1884 = vmatpush1.bf16.msra.mxu1 %v5559_v5 }
 0x483   :  { %1844 = vmatprep.subr.bf16.mxu0 %v5565_v6  ;;  %1885 = vmatprep.subr.bf16.mxu1 %v5567_v7 }
 0x486   :  { %1845 = vmatpush1.bf16.msra.mxu0 %v5569_v8  ;;  %1886 = vmatpush1.bf16.msra.mxu1 %v5571_v9 }
 0x487   :  { %2134 = vmatprep.subr.bf16.mxu0 %v5481_v48  ;;  %2175 = vmatprep.subr.bf16.mxu1 %v5483_v49 }
 0x53c   :  { %v1560_v20 = vpop.f32.mrb[16].mxu0  ;;  %v1601_v21 = vpop.f32.mrb[16].mxu1 }
 0x53d   :  { %v1608_v22 = vadd.f32 %v1560_v20, %v1329_v31  ;;  %v1562_v23 = vpop.f32.mrb[17].mxu0  ;;  %v1603_v24 = vpop.f32.mrb[17].mxu1  ;;  %v1610_v44 = vadd.f32 %v1601_v21, %v1331_v25 }
 0x53e   :  { %v1609_v26 = vadd.f32 %v1562_v23, %v1330_v19  ;;  %v1564_v27 = vpop.f32.mrb[18].mxu0  ;;  %v1605_v28 = vpop.f32.mrb[18].mxu1  ;;  %v1611_v47 = vadd.f32 %v1603_v24, %v1332_v45  ;;  %v1635_v45 = vld [vmem:[#allocation9 + $0xb0] sm:$0xff] }
 0x53f   :  { %v1612_v29 = vmul.f32 0.5, %v1608_v22  ;;  %v1565_v30 = vpop.f32.mrb[19].mxu0  ;;  %v1606_v32 = vpop.f32.mrb[19].mxu1  ;;  %v1634_v28 = vld [vmem:[#allocation9 + $0xa8] sm:$0xff] }
 0x540   :  { %v1616_v62 = vmul.f32 0.5, %v1609_v26  ;;  %v1621_v10 = vmul.f32 0.5, %v1611_v47 }
 0x541   :  { %4831 = vtanh.f32 %v1612_v29 }
 0x542   :  { %4833 = vtanh.f32 %v1616_v62 }
 0x543   :  { %4835 = vtanh.f32 %v1610_v44 }
 0x544   :  { %4837 = vtanh.f32 %v1621_v10 }
 0x54b   :  { %v4832_v11 = vpop.eup %4831 }
 0x54c   :  { %v4834_v13 = vpop.eup %4833  ;;  %v1614_v14 = vmul.f32 0.5, %v4832_v11 }
 0x54d   :  { %v1618_v15 = vmul.f32 0.5, %v4834_v13  ;;  %v4836_v18 = vpop.eup %4835 }
 0x54e   :  { %v1615_v16 = vadd.f32 0.5, %v1614_v14  ;;  %v4838_v21 = vpop.eup %4837 }
 0x54f   :  { %v1619_v31 = vadd.f32 0.5, %v1618_v15  ;;  %v1623_v23 = vmul.f32 0.5, %v4838_v21 }
 0x550   :  { %v1626_v19 = vmul.f32 %v4836_v18, %v1615_v16 }
 0x551   :  { %v1625_v20 = vmul.f32 %v1619_v31, %v5580_v12  ;;  %v1624_v25 = vadd.f32 0.5, %v1623_v23  ;;  %v1633_v12 = vld [vmem:[#allocation9 + $0xa0] sm:$0xff] }
 0x553   :  { %v5622_v22 = vadd.f32 %v1626_v19, %v1625_v20 }
 0x555   :  { %4839 = vtanh.f32 %v5622_v22 }
 0x55f   :  { %v4840_v24 = vpop.eup %4839 }
 0x560   :  { %v5625_v26 = vmul.f32 %v4840_v24, %v1624_v25 }
 0x562   :  { %v1637_v27 = vpack.c.bf16 %v5625_v26, %v5625_v26 }
 0x564   :  { %1863 = vmatmul.mubr.bf16.vlgmr.msra.gmra.mrb[20].mxu0 %v1637_v27  ;;  %1904 = vmatmul.mubr.bf16.vlgmr.msra.gmra.mrb[20].mxu1 %v1637_v27 }
 0x565   :  { %2135 = vmatpush1.bf16.msra.mxu0 %v5485_v50  ;;  %2176 = vmatpush1.bf16.msra.mxu1 %v5487_v51 }
 0x566   :  { %2136 = vmatprep.subr.bf16.mxu0 %v5493_v52  ;;  %2177 = vmatprep.subr.bf16.mxu1 %v5495_v53 }
 0x567   :  { %2166 = vmatprep.mubr.bf16.mxu0 %v6350_v0  ;;  %2207 = vmatprep.mubr.bf16.mxu1 %v6350_v0 }
 0x569   :  { %2137 = vmatpush1.bf16.msra.mxu0 %v5497_v54  ;;  %2178 = vmatpush1.bf16.msra.mxu1 %v5499_v1 }
 0x56a   :  { %2138 = vmatprep.subr.bf16.mxu0 %v5505_v4  ;;  %2179 = vmatprep.subr.bf16.mxu1 %v5507_v55 }
 0x56d   :  { %2139 = vmatpush1.bf16.msra.mxu0 %v5509_v56  ;;  %2180 = vmatpush1.bf16.msra.mxu1 %v5511_v57 }
 0x56e   :  { %2140 = vmatprep.subr.bf16.mxu0 %v5517_v58  ;;  %2181 = vmatprep.subr.bf16.mxu1 %v5519_v59 }
 0x571   :  { %2141 = vmatpush1.bf16.msra.mxu0 %v5521_v60  ;;  %2182 = vmatpush1.bf16.msra.mxu1 %v5523_v61 }
 0x572   :  { %2142 = vmatprep.subr.bf16.mxu0 %v5529_v63  ;;  %2183 = vmatprep.subr.bf16.mxu1 %v5531_v34 }
 0x575   :  { %2143 = vmatpush1.bf16.msra.mxu0 %v5533_v35  ;;  %2184 = vmatpush1.bf16.msra.mxu1 %v5535_v36 }
 0x576   :  { %2144 = vmatprep.subr.bf16.mxu0 %v5541_v38  ;;  %2185 = vmatprep.subr.bf16.mxu1 %v5543_v39 }
 0x579   :  { %2145 = vmatpush1.bf16.msra.mxu0 %v5545_v40  ;;  %2186 = vmatpush1.bf16.msra.mxu1 %v5547_v41 }
 0x57a   :  { %2146 = vmatprep.subr.bf16.mxu0 %v5553_v43  ;;  %2187 = vmatprep.subr.bf16.mxu1 %v5555_v2 }
 0x57d   :  { %2147 = vmatpush1.bf16.msra.mxu0 %v5557_v3  ;;  %2188 = vmatpush1.bf16.msra.mxu1 %v5559_v5 }
 0x57e   :  { %2148 = vmatprep.subr.bf16.mxu0 %v5565_v6  ;;  %2189 = vmatprep.subr.bf16.mxu1 %v5567_v7 }
 0x581   :  { %2149 = vmatpush1.bf16.msra.mxu0 %v5569_v8  ;;  %2190 = vmatpush1.bf16.msra.mxu1 %v5571_v9 }
 0x582   :  { %2438 = vmatprep.subr.bf16.mxu0 %v5481_v48  ;;  %2479 = vmatprep.subr.bf16.mxu1 %v5483_v49  ;;  %v1636_v48 = vld [vmem:[#allocation9 + $0xb8] sm:$0xff] }
 0x637   :  { %v1864_v29 = vpop.f32.mrb[20].mxu0  ;;  %v1905_v30 = vpop.f32.mrb[20].mxu1 }
 0x638   :  { %v1912_v32 = vadd.f32 %v1864_v29, %v1633_v12  ;;  %v1866_v62 = vpop.f32.mrb[21].mxu0  ;;  %v1907_v44 = vpop.f32.mrb[21].mxu1  ;;  %v1914_v18 = vadd.f32 %v1905_v30, %v1635_v45 }
 0x639   :  { %v1913_v47 = vadd.f32 %v1866_v62, %v1634_v28  ;;  %v1868_v10 = vpop.f32.mrb[22].mxu0  ;;  %v1909_v11 = vpop.f32.mrb[22].mxu1  ;;  %v1915_v49 = vadd.f32 %v1907_v44, %v1636_v48 }
 0x63a   :  { %v1916_v13 = vmul.f32 0.5, %v1912_v32  ;;  %v1869_v14 = vpop.f32.mrb[23].mxu0  ;;  %v1910_v15 = vpop.f32.mrb[23].mxu1 }
 0x63b   :  { %v1920_v16 = vmul.f32 0.5, %v1913_v47  ;;  %v1925_v31 = vmul.f32 0.5, %v1915_v49  ;;  %v4695_v49 = vld [vmem:[#allocation14 + $0x24] ss:$16 sps:$4 sm:$0xff]  }
 0x63c   :  { %4841 = vtanh.f32 %v1916_v13 }
 0x63d   :  { %4843 = vtanh.f32 %v1920_v16  ;;  %v4687_v16 = vld [vmem:[#allocation14] ss:$16 sps:$4 sm:$0xff]  }
 0x63e   :  { %4845 = vtanh.f32 %v1914_v18  ;;  %v4690_v18 = vld [vmem:[#allocation14 + $0x8] ss:$16 sps:$4 sm:$0xff]  }
 0x63f   :  { %4847 = vtanh.f32 %v1925_v31  ;;  %v4698_v31 = vld [vmem:[#allocation14 + $0x2c] ss:$16 sps:$4 sm:$0xff]  }
 0x646   :  { %v4842_v19 = vpop.eup %4841 }
 0x647   :  { %v4844_v20 = vpop.eup %4843  ;;  %v1918_v21 = vmul.f32 0.5, %v4842_v19  ;;  %v4693_v19 = vld [vmem:[#allocation14 + $0x20] ss:$16 sps:$4 sm:$0xff]  }
 0x648   :  { %v1922_v23 = vmul.f32 0.5, %v4844_v20  ;;  %v4846_v24 = vpop.eup %4845  ;;  %v4696_v20 = vld [vmem:[#allocation14 + $0x28] ss:$16 sps:$4 sm:$0xff]  }
 0x649   :  { %v1919_v25 = vadd.f32 0.5, %v1918_v21  ;;  %v4848_v30 = vpop.eup %4847  ;;  %v4701_v21 = vld [vmem:[#allocation14 + $0x44] ss:$16 sps:$4 sm:$0xff]  }
 0x64a   :  { %v1923_v27 = vadd.f32 0.5, %v1922_v23  ;;  %v1927_v32 = vmul.f32 0.5, %v4848_v30  ;;  %v4704_v23 = vld [vmem:[#allocation14 + $0x4c] ss:$16 sps:$4 sm:$0xff]   ;;  %v4713_v30 = vld [vmem:[#allocation14 + $0x84] ss:$16 sps:$4 sm:$0xff]  }
 0x64b   :  { %v1930_v12 = vmul.f32 %v4846_v24, %v1919_v25  ;;  %v4699_v25 = vld [vmem:[#allocation14 + $0x40] ss:$16 sps:$4 sm:$0xff]   ;;  %v4702_v24 = vld [vmem:[#allocation14 + $0x48] ss:$16 sps:$4 sm:$0xff]  }
 0x64c   :  { %v1929_v28 = vmul.f32 %v1923_v27, %v5622_v22  ;;  %v1928_v62 = vadd.f32 0.5, %v1927_v32  ;;  %v4707_v27 = vld [vmem:[#allocation14 + $0x64] ss:$16 sps:$4 sm:$0xff]   ;;  %v4716_v32 = vld [vmem:[#allocation14 + $0x8c] ss:$16 sps:$4 sm:$0xff]  }
 0x64e   :  { %v5664_v29 = vadd.f32 %v1930_v12, %v1929_v28  ;;  %v4710_v12 = vld [vmem:[#allocation14 + $0x6c] ss:$16 sps:$4 sm:$0xff]   ;;  %v4705_v28 = vld [vmem:[#allocation14 + $0x60] ss:$16 sps:$4 sm:$0xff]  }
 0x650   :  { %4849 = vtanh.f32 %v5664_v29 }
 0x65a   :  { %v4850_v44 = vpop.eup %4849 }
 0x65b   :  { %v5667_v45 = vmul.f32 %v4850_v44, %v1928_v62  ;;  %v4711_v62 = vld [vmem:[#allocation14 + $0x80] ss:$16 sps:$4 sm:$0xff]   ;;  %v4714_v44 = vld [vmem:[#allocation14 + $0x88] ss:$16 sps:$4 sm:$0xff]  }
 0x65d   :  { %v1941_v47 = vpack.c.bf16 %v5667_v45, %v5667_v45 }
 0x65f   :  { %2167 = vmatmul.mubr.bf16.vlgmr.msra.gmra.mrb[24].mxu0 %v1941_v47  ;;  %2208 = vmatmul.mubr.bf16.vlgmr.msra.gmra.mrb[24].mxu1 %v1941_v47  ;;  %v4719_v47 = vld [vmem:[#allocation14 + $0xa4] ss:$16 sps:$4 sm:$0xff]  }
 0x660   :  { %2439 = vmatpush1.bf16.msra.mxu0 %v5485_v50  ;;  %2480 = vmatpush1.bf16.msra.mxu1 %v5487_v51  ;;  %v4689_v50 = vld [vmem:[#allocation14 + $0x4] ss:$16 sps:$4 sm:$0xff]   ;;  %v4692_v51 = vld [vmem:[#allocation14 + $0xc] ss:$16 sps:$4 sm:$0xff]  }
 0x661   :  { %2440 = vmatprep.subr.bf16.mxu0 %v5493_v52  ;;  %2481 = vmatprep.subr.bf16.mxu1 %v5495_v53  ;;  %v1937_v52 = vld [vmem:[#allocation9 + $0xc0] sm:$0xff]  ;;  %v1938_v53 = vld [vmem:[#allocation9 + $0xc8] sm:$0xff] }
 0x662   :  { %2470 = vmatprep.mubr.bf16.mxu0 %v6350_v0  ;;  %2511 = vmatprep.mubr.bf16.mxu1 %v6350_v0 }
 0x664   :  { %2441 = vmatpush1.bf16.msra.mxu0 %v5497_v54  ;;  %2482 = vmatpush1.bf16.msra.mxu1 %v5499_v1 }
 0x665   :  { %2442 = vmatprep.subr.bf16.mxu0 %v5505_v4  ;;  %2483 = vmatprep.subr.bf16.mxu1 %v5507_v55 }
 0x668   :  { %2443 = vmatpush1.bf16.msra.mxu0 %v5509_v56  ;;  %2484 = vmatpush1.bf16.msra.mxu1 %v5511_v57  ;;  %v1939_v57 = vld [vmem:[#allocation9 + $0xd0] sm:$0xff] }
 0x669   :  { %2444 = vmatprep.subr.bf16.mxu0 %v5517_v58  ;;  %2485 = vmatprep.subr.bf16.mxu1 %v5519_v59 }
 0x66c   :  { %2445 = vmatpush1.bf16.msra.mxu0 %v5521_v60  ;;  %2486 = vmatpush1.bf16.msra.mxu1 %v5523_v61 }
 0x66d   :  { %2446 = vmatprep.subr.bf16.mxu0 %v5529_v63  ;;  %2487 = vmatprep.subr.bf16.mxu1 %v5531_v34 }
 0x670   :  { %2447 = vmatpush1.bf16.msra.mxu0 %v5533_v35  ;;  %2488 = vmatpush1.bf16.msra.mxu1 %v5535_v36 }
 0x671   :  { %2448 = vmatprep.subr.bf16.mxu0 %v5541_v38  ;;  %2489 = vmatprep.subr.bf16.mxu1 %v5543_v39  ;;  %v1940_v38 = vld [vmem:[#allocation9 + $0xd8] sm:$0xff] }
 0x674   :  { %2449 = vmatpush1.bf16.msra.mxu0 %v5545_v40  ;;  %2490 = vmatpush1.bf16.msra.mxu1 %v5547_v41 }
 0x675   :  { %2450 = vmatprep.subr.bf16.mxu0 %v5553_v43  ;;  %2491 = vmatprep.subr.bf16.mxu1 %v5555_v2 }
 0x678   :  { %2451 = vmatpush1.bf16.msra.mxu0 %v5557_v3  ;;  %2492 = vmatpush1.bf16.msra.mxu1 %v5559_v5 }
 0x679   :  { %2452 = vmatprep.subr.bf16.mxu0 %v5565_v6  ;;  %2493 = vmatprep.subr.bf16.mxu1 %v5567_v7 }
 0x67c   :  { %2453 = vmatpush1.bf16.msra.mxu0 %v5569_v8  ;;  %2494 = vmatpush1.bf16.msra.mxu1 %v5571_v9 }
 0x67d   :  { %2772 = vmatprep.subr.bf16.mxu0 %v4689_v50  ;;  %2845 = vmatprep.subr.bf16.mxu1 %v4692_v51  ;;  %v4722_v50 = vld [vmem:[#allocation14 + $0xac] ss:$16 sps:$4 sm:$0xff]   ;;  %v4717_v51 = vld [vmem:[#allocation14 + $0xa0] ss:$16 sps:$4 sm:$0xff]  }
 0x732   :  { %v2168_v54 = vpop.f32.mrb[24].mxu0  ;;  %v2209_v1 = vpop.f32.mrb[24].mxu1 }
 0x733   :  { %v2216_v4 = vadd.f32 %v2168_v54, %v1937_v52  ;;  %v2170_v55 = vpop.f32.mrb[25].mxu0  ;;  %v2211_v56 = vpop.f32.mrb[25].mxu1  ;;  %v2218_v36 = vadd.f32 %v2209_v1, %v1939_v57  ;;  %v4720_v52 = vld [vmem:[#allocation14 + $0xa8] ss:$16 sps:$4 sm:$0xff]   ;;  %v4728_v54 = vld [vmem:[#allocation14 + $0xcc] ss:$16 sps:$4 sm:$0xff]  }
 0x734   :  { %v2217_v58 = vadd.f32 %v2170_v55, %v1938_v53  ;;  %v2172_v59 = vpop.f32.mrb[26].mxu0  ;;  %v2213_v60 = vpop.f32.mrb[26].mxu1  ;;  %v2219_v39 = vadd.f32 %v2211_v56, %v1940_v38  ;;  %v4725_v53 = vld [vmem:[#allocation14 + $0xc4] ss:$16 sps:$4 sm:$0xff]   ;;  %v4723_v1 = vld [vmem:[#allocation14 + $0xc0] ss:$16 sps:$4 sm:$0xff]  }
 0x735   :  { %v2220_v61 = vmul.f32 0.5, %v2216_v4  ;;  %v2173_v63 = vpop.f32.mrb[27].mxu0  ;;  %v2214_v34 = vpop.f32.mrb[27].mxu1  ;;  %v4726_v4 = vld [vmem:[#allocation14 + $0xc8] ss:$16 sps:$4 sm:$0xff]   ;;  %v2554_v59 = vpack.c.bf16 %v5435_v42, %v5393_v37  ;;  %v2555_v60 = vpack.c.bf16 %v5583_v17, %v5475_v46 }
 0x736   :  { %v2224_v35 = vmul.f32 0.5, %v2217_v58  ;;  %v2229_v40 = vmul.f32 0.5, %v2219_v39  ;;  %v4731_v55 = vld [vmem:[#allocation14 + $0xe4] ss:$16 sps:$4 sm:$0xff]   ;;  %v4734_v56 = vld [vmem:[#allocation14 + $0xec] ss:$16 sps:$4 sm:$0xff]  }
 0x737   :  { %4851 = vtanh.f32 %v2220_v61  ;;  %v4729_v57 = vld [vmem:[#allocation14 + $0xe0] ss:$16 sps:$4 sm:$0xff]   ;;  %v4732_v58 = vld [vmem:[#allocation14 + $0xe8] ss:$16 sps:$4 sm:$0xff]   ;;  %v2556_v61 = vpack.c.bf16 %v5667_v45, %v5625_v26  ;;  %v5725_v37 = vld [vmem:[#allocation15 + $0x4] ss:$16 sps:$4 sm:$0xff]  }
 0x738   :  { %4853 = vtanh.f32 %v2224_v35  ;;  %v5727_v42 = vld [vmem:[#allocation15 + $0xc] ss:$16 sps:$4 sm:$0xff]   ;;  %v5729_v46 = vld [vmem:[#allocation15] ss:$16 sps:$4 sm:$0xff]   ;;  %v5731_v17 = vld [vmem:[#allocation15 + $0x8] ss:$16 sps:$4 sm:$0xff]  }
 0x739   :  { %4855 = vtanh.f32 %v2218_v36  ;;  %v5737_v26 = vld [vmem:[#allocation15 + $0x24] ss:$16 sps:$4 sm:$0xff]   ;;  %v5739_v45 = vld [vmem:[#allocation15 + $0x2c] ss:$16 sps:$4 sm:$0xff]   ;;  %v5741_v63 = vld [vmem:[#allocation15 + $0x20] ss:$16 sps:$4 sm:$0xff]  }
 0x73a   :  { %4857 = vtanh.f32 %v2229_v40  ;;  %v5743_v34 = vld [vmem:[#allocation15 + $0x28] ss:$16 sps:$4 sm:$0xff]   ;;  %v5749_v35 = vld [vmem:[#allocation15 + $0x44] ss:$16 sps:$4 sm:$0xff]   ;;  %v5751_v36 = vld [vmem:[#allocation15 + $0x4c] ss:$16 sps:$4 sm:$0xff]  }
 0x73b   :  { %v5753_v38 = vld [vmem:[#allocation15 + $0x40] ss:$16 sps:$4 sm:$0xff]   ;;  %v5755_v39 = vld [vmem:[#allocation15 + $0x48] ss:$16 sps:$4 sm:$0xff]   ;;  %v5759_v40 = vld [vmem:[#allocation15 + $0x64] ss:$16 sps:$4 sm:$0xff]  }
 0x741   :  { %v4852_v41 = vpop.eup %4851 }
 0x742   :  { %v4854_v43 = vpop.eup %4853  ;;  %v2222_v2 = vmul.f32 0.5, %v4852_v41  ;;  %v5761_v41 = vld [vmem:[#allocation15 + $0x6c] ss:$16 sps:$4 sm:$0xff]  }
 0x743   :  { %v2226_v3 = vmul.f32 0.5, %v4854_v43  ;;  %v4856_v6 = vpop.eup %4855  ;;  %v5765_v43 = vld [vmem:[#allocation15 + $0x60] ss:$16 sps:$4 sm:$0xff]  }
 0x744   :  { %v2223_v5 = vadd.f32 0.5, %v2222_v2  ;;  %v4858_v10 = vpop.eup %4857  ;;  %v5767_v2 = vld [vmem:[#allocation15 + $0x68] ss:$16 sps:$4 sm:$0xff]  }
 0x745   :  { %v2227_v7 = vadd.f32 0.5, %v2226_v3  ;;  %v2231_v11 = vmul.f32 0.5, %v4858_v10  ;;  %v5773_v3 = vld [vmem:[#allocation15 + $0x84] ss:$16 sps:$4 sm:$0xff]   ;;  %v5789_v10 = vld [vmem:[#allocation15 + $0xa0] ss:$16 sps:$4 sm:$0xff]  }
 0x746   :  { %v2234_v8 = vmul.f32 %v4856_v6, %v2223_v5  ;;  %v5775_v5 = vld [vmem:[#allocation15 + $0x8c] ss:$16 sps:$4 sm:$0xff]   ;;  %v5777_v6 = vld [vmem:[#allocation15 + $0x80] ss:$16 sps:$4 sm:$0xff]  }
 0x747   :  { %v2233_v9 = vmul.f32 %v2227_v7, %v5664_v29  ;;  %v2232_v13 = vadd.f32 0.5, %v2231_v11  ;;  %v4708_v29 = vld [vmem:[#allocation14 + $0x68] ss:$16 sps:$4 sm:$0xff]  }
 0x748   :  { %v5779_v7 = vld [vmem:[#allocation15 + $0x88] ss:$16 sps:$4 sm:$0xff]  }
 0x749   :  { %v5704_v22 = vadd.f32 %v2234_v8, %v2233_v9  ;;  %v5785_v8 = vld [vmem:[#allocation15 + $0xa4] ss:$16 sps:$4 sm:$0xff]   ;;  %v5787_v9 = vld [vmem:[#allocation15 + $0xac] ss:$16 sps:$4 sm:$0xff]   ;;  %v5791_v11 = vld [vmem:[#allocation15 + $0xa8] ss:$16 sps:$4 sm:$0xff]  }
 0x74b   :  { %4859 = vtanh.f32 %v5704_v22 }
 0x755   :  { %v4860_v14 = vpop.eup %4859 }
 0x756   :  { %v5707_v15 = vmul.f32 %v4860_v14, %v2232_v13  ;;  %v5797_v13 = vld [vmem:[#allocation15 + $0xc4] ss:$16 sps:$4 sm:$0xff]   ;;  %v5799_v14 = vld [vmem:[#allocation15 + $0xcc] ss:$16 sps:$4 sm:$0xff]  }
 0x758   :  { %v2245_v48 = vpack.c.bf16 %v5707_v15, %v5707_v15 }
 0x75a   :  { %2471 = vmatmul.mubr.bf16.vlgmr.msra.gmra.mrb[28].mxu0 %v2245_v48  ;;  %2512 = vmatmul.mubr.bf16.vlgmr.msra.gmra.mrb[28].mxu1 %v2245_v48  ;;  %v5809_v48 = vld [vmem:[#allocation15 + $0xe4] ss:$16 sps:$4 sm:$0xff]  }
 0x75b   :  { %2773 = vmatpush1.bf16.msra.mxu0 %v4687_v16  ;;  %2846 = vmatpush1.bf16.msra.mxu1 %v4690_v18  ;;  %v5801_v16 = vld [vmem:[#allocation15 + $0xc0] ss:$16 sps:$4 sm:$0xff]   ;;  %v5803_v18 = vld [vmem:[#allocation15 + $0xc8] ss:$16 sps:$4 sm:$0xff]  }
 0x75c   :  { %2774 = vmatprep.subr.bf16.mxu0 %v4695_v49  ;;  %2847 = vmatprep.subr.bf16.mxu1 %v4698_v31  ;;  %v5811_v49 = vld [vmem:[#allocation15 + $0xec] ss:$16 sps:$4 sm:$0xff]   ;;  %v5813_v31 = vld [vmem:[#allocation15 + $0xe0] ss:$16 sps:$4 sm:$0xff]  }
 0x75d   :  { %2804 = vmatprep.mubr.bf16.mxu0 %v6350_v0  ;;  %2877 = vmatprep.mubr.bf16.mxu1 %v6350_v0 }
 0x75f   :  { %2775 = vmatpush1.bf16.msra.mxu0 %v4693_v19  ;;  %2848 = vmatpush1.bf16.msra.mxu1 %v4696_v20  ;;  %v5815_v19 = vld [vmem:[#allocation15 + $0xe8] ss:$16 sps:$4 sm:$0xff]   ;;  %v108_v20 = vld [vmem:[%s6341_s0] sm:$0xff] }
 0x760   :  { %2776 = vmatprep.subr.bf16.mxu0 %v4701_v21  ;;  %2849 = vmatprep.subr.bf16.mxu1 %v4704_v23  ;;  %v2241_v21 = vld [vmem:[#allocation9 + $0xe0] sm:$0xff]  ;;  %v2242_v23 = vld [vmem:[#allocation9 + $0xe8] sm:$0xff] }
 0x761   :  { %110 = vperm.xlu0 %4590, %v108_v20  }
 0x763   :  { %2777 = vmatpush1.bf16.msra.mxu0 %v4699_v25  ;;  %2850 = vmatpush1.bf16.msra.mxu1 %v4702_v24 }
 0x764   :  { %2778 = vmatprep.subr.bf16.mxu0 %v4707_v27  ;;  %2851 = vmatprep.subr.bf16.mxu1 %v4710_v12 }
 0x767   :  { %2779 = vmatpush1.bf16.msra.mxu0 %v4705_v28  ;;  %2852 = vmatpush1.bf16.msra.mxu1 %v4708_v29  ;;  %v2243_v29 = vld [vmem:[#allocation9 + $0xf0] sm:$0xff] }
 0x768   :  { %2780 = vmatprep.subr.bf16.mxu0 %v4713_v30  ;;  %2853 = vmatprep.subr.bf16.mxu1 %v4716_v32 }
 0x76b   :  { %2781 = vmatpush1.bf16.msra.mxu0 %v4711_v62  ;;  %2854 = vmatpush1.bf16.msra.mxu1 %v4714_v44 }
 0x76c   :  { %2782 = vmatprep.subr.bf16.mxu0 %v4719_v47  ;;  %2855 = vmatprep.subr.bf16.mxu1 %v4722_v50 }
 0x76f   :  { %2783 = vmatpush1.bf16.msra.mxu0 %v4717_v51  ;;  %2856 = vmatpush1.bf16.msra.mxu1 %v4720_v52 }
 0x770   :  { %2784 = vmatprep.subr.bf16.mxu0 %v4725_v53  ;;  %2857 = vmatprep.subr.bf16.mxu1 %v4728_v54  ;;  %v2244_v53 = vld [vmem:[#allocation9 + $0xf8] sm:$0xff] }
 0x773   :  { %2785 = vmatpush1.bf16.msra.mxu0 %v4723_v1  ;;  %2858 = vmatpush1.bf16.msra.mxu1 %v4726_v4 }
 0x774   :  { %2786 = vmatprep.subr.bf16.mxu0 %v4731_v55  ;;  %2859 = vmatprep.subr.bf16.mxu1 %v4734_v56 }
 0x777   :  { %2787 = vmatpush1.bf16.msra.mxu0 %v4729_v57  ;;  %2860 = vmatpush1.bf16.msra.mxu1 %v4732_v58 }
 0x778   :  { %3154 = vmatprep.subr.bf16.mxu0 %v5725_v37  ;;  %3195 = vmatprep.subr.bf16.mxu1 %v5727_v42 }
 0x77a   :  { %2805 = vmatmul.mubr.bf16.vlgmr.msra.gmra.mrb[32].mxu0 %v2554_v59  ;;  %2878 = vmatmul.mubr.bf16.vlgmr.msra.gmra.mrb[32].mxu1 %v2554_v59 }
 0x77b   :  { %2814 = vmatprep.mubr.bf16.mxu0 %v6350_v0  ;;  %2887 = vmatprep.mubr.bf16.mxu1 %v6350_v0 }
 0x77c   :  { %3155 = vmatpush1.bf16.msra.mxu0 %v5729_v46  ;;  %3196 = vmatpush1.bf16.msra.mxu1 %v5731_v17 }
 0x77d   :  { %3156 = vmatprep.subr.bf16.mxu0 %v5737_v26  ;;  %3197 = vmatprep.subr.bf16.mxu1 %v5739_v45 }
 0x780   :  { %3157 = vmatpush1.bf16.msra.mxu0 %v5741_v63  ;;  %3198 = vmatpush1.bf16.msra.mxu1 %v5743_v34 }
 0x781   :  { %3158 = vmatprep.subr.bf16.mxu0 %v5749_v35  ;;  %3199 = vmatprep.subr.bf16.mxu1 %v5751_v36 }
 0x782   :  { %2815 = vmatmul.mubr.bf16.gmra.mrb[36].mxu0 %v2555_v60  ;;  %2888 = vmatmul.mubr.bf16.gmra.mrb[36].mxu1 %v2555_v60 }
 0x783   :  { %2824 = vmatprep.mubr.bf16.mxu0 %v6350_v0  ;;  %2897 = vmatprep.mubr.bf16.mxu1 %v6350_v0 }
 0x784   :  { %3159 = vmatpush1.bf16.msra.mxu0 %v5753_v38  ;;  %3200 = vmatpush1.bf16.msra.mxu1 %v5755_v39 }
 0x785   :  { %3160 = vmatprep.subr.bf16.mxu0 %v5759_v40  ;;  %3201 = vmatprep.subr.bf16.mxu1 %v5761_v41 }
 0x788   :  { %3161 = vmatpush1.bf16.msra.mxu0 %v5765_v43  ;;  %3202 = vmatpush1.bf16.msra.mxu1 %v5767_v2 }
 0x789   :  { %3162 = vmatprep.subr.bf16.mxu0 %v5773_v3  ;;  %3203 = vmatprep.subr.bf16.mxu1 %v5775_v5 }
 0x78a   :  { %2825 = vmatmul.mubr.bf16.gmra.mrb[40].mxu0 %v2556_v61  ;;  %2898 = vmatmul.mubr.bf16.gmra.mrb[40].mxu1 %v2556_v61 }
 0x78b   :  { %2834 = vmatprep.mubr.bf16.mxu0 %v6350_v0  ;;  %2907 = vmatprep.mubr.bf16.mxu1 %v6350_v0 }
 0x78c   :  { %3163 = vmatpush1.bf16.msra.mxu0 %v5777_v6  ;;  %3204 = vmatpush1.bf16.msra.mxu1 %v5779_v7 }
 0x78d   :  { %3164 = vmatprep.subr.bf16.mxu0 %v5785_v8  ;;  %3205 = vmatprep.subr.bf16.mxu1 %v5787_v9 }
 0x790   :  { %3165 = vmatpush1.bf16.msra.mxu0 %v5789_v10  ;;  %3206 = vmatpush1.bf16.msra.mxu1 %v5791_v11 }
 0x791   :  { %3166 = vmatprep.subr.bf16.mxu0 %v5797_v13  ;;  %3207 = vmatprep.subr.bf16.mxu1 %v5799_v14 }
 0x794   :  { %3167 = vmatpush1.bf16.msra.mxu0 %v5801_v16  ;;  %3208 = vmatpush1.bf16.msra.mxu1 %v5803_v18 }
 0x795   :  { %3168 = vmatprep.subr.bf16.mxu0 %v5809_v48  ;;  %3209 = vmatprep.subr.bf16.mxu1 %v5811_v49 }
 0x798   :  { %3169 = vmatpush1.bf16.msra.mxu0 %v5813_v31  ;;  %3210 = vmatpush1.bf16.msra.mxu1 %v5815_v19 }
 0x799   :  { %3270 = vmatprep.subr.bf16.mxu0 %v5725_v37  ;;  %3311 = vmatprep.subr.bf16.mxu1 %v5727_v42 }
 0x82d   :  { %v2472_v25 = vpop.f32.mrb[28].mxu0  ;;  %v2513_v24 = vpop.f32.mrb[28].mxu1 }
 0x82e   :  { %v2520_v27 = vadd.f32 %v2472_v25, %v2241_v21  ;;  %v2474_v12 = vpop.f32.mrb[29].mxu0  ;;  %v2515_v28 = vpop.f32.mrb[29].mxu1  ;;  %v2522_v52 = vadd.f32 %v2513_v24, %v2243_v29 }
 0x82f   :  { %v2521_v30 = vadd.f32 %v2474_v12, %v2242_v23  ;;  %v2476_v32 = vpop.f32.mrb[30].mxu0  ;;  %v2517_v62 = vpop.f32.mrb[30].mxu1  ;;  %v2523_v54 = vadd.f32 %v2515_v28, %v2244_v53 }
 0x830   :  { %v2524_v44 = vmul.f32 0.5, %v2520_v27  ;;  %v2477_v47 = vpop.f32.mrb[31].mxu0  ;;  %v2518_v50 = vpop.f32.mrb[31].mxu1 }
 0x831   :  { %v2528_v51 = vmul.f32 0.5, %v2521_v30  ;;  %v2533_v1 = vmul.f32 0.5, %v2523_v54 }
 0x832   :  { %4861 = vtanh.f32 %v2524_v44 }
 0x833   :  { %4863 = vtanh.f32 %v2528_v51 }
 0x834   :  { %4865 = vtanh.f32 %v2522_v52 }
 0x835   :  { %4867 = vtanh.f32 %v2533_v1 }
 0x83c   :  { %v4862_v4 = vpop.eup %4861 }
 0x83d   :  { %v4864_v55 = vpop.eup %4863  ;;  %v2526_v56 = vmul.f32 0.5, %v4862_v4 }
 0x83e   :  { %v2530_v57 = vmul.f32 0.5, %v4864_v55  ;;  %v4866_v59 = vpop.eup %4865 }
 0x83f   :  { %v2527_v58 = vadd.f32 0.5, %v2526_v56  ;;  %v4868_v23 = vpop.eup %4867 }
 0x840   :  { %v2531_v60 = vadd.f32 0.5, %v2530_v57  ;;  %v2535_v25 = vmul.f32 0.5, %v4868_v23 }
 0x841   :  { %v2538_v61 = vmul.f32 %v4866_v59, %v2527_v58 }
 0x842   :  { %v2537_v20 = vmul.f32 %v2531_v60, %v5704_v22  ;;  %v2536_v29 = vadd.f32 0.5, %v2535_v25 }
 0x844   :  { %v2539_v21 = vadd.f32 %v2538_v61, %v2537_v20 }
 0x846   :  { %4869 = vtanh.f32 %v2539_v21 }
 0x84d   :  { %v5827_v24 = vpop.f32.mrb[32].mxu0  ;;  %v5829_v27 = vpop.f32.mrb[32].mxu1 }
 0x84e   :  { %v5831_v12 = vpop.f32.mrb[33].mxu0  ;;  %v5833_v28 = vpop.f32.mrb[33].mxu1 }
 0x84f   :  { %v5835_v30 = vpop.f32.mrb[34].mxu0  ;;  %v5837_v32 = vpop.f32.mrb[34].mxu1 }
 0x850   :  { %v4870_v62 = vpop.eup %4869  ;;  %v5839_v44 = vpop.f32.mrb[35].mxu0 }
 0x851   :  { %v5841_v22 = vpop.f32.mrb[35].mxu1  ;;  %v2541_v47 = vmul.f32 %v4870_v62, %v2536_v29  ;;  %v2590_v62 = vld [vmem:[%s6346_s5] sm:$0xf] }
 0x853   :  { %v2557_v50 = vpack.c.bf16 %v2541_v47, %v5707_v15 }
 0x855   :  { %v5844_v51 = vpop.f32.mrb[36].mxu0  ;;  %v5846_v52 = vpop.f32.mrb[36].mxu1  ;;  %2835 = vmatmul.mubr.bf16.gmra.mrb[44].mxu0 %v2557_v50  ;;  %2908 = vmatmul.mubr.bf16.gmra.mrb[44].mxu1 %v2557_v50 }
 0x856   :  { %6352 = vst [vmem:[#allocation23_spill] sm:$0xff] %v5846_v52  ;;  %v5848_v53 = vpop.f32.mrb[37].mxu0  ;;  %v5850_v54 = vpop.f32.mrb[37].mxu1  ;;  %3186 = vmatprep.mubr.bf16.mxu0 %v6350_v0  ;;  %3227 = vmatprep.mubr.bf16.mxu1 %v6350_v0 }
 0x857   :  { %6353 = vst [vmem:[#allocation24_spill] sm:$0xff] %v5848_v53  ;;  %6354 = vst [vmem:[#allocation25_spill] sm:$0xff] %v5850_v54  ;;  %v5854_v1 = vpop.f32.mrb[38].mxu0  ;;  %v5856_v4 = vpop.f32.mrb[38].mxu1 }
 0x858   :  { %6355 = vst [vmem:[#allocation26_spill] sm:$0xff] %v5854_v1  ;;  %6356 = vst [vmem:[#allocation27_spill] sm:$0xff] %v5856_v4  ;;  %v5858_v55 = vpop.f32.mrb[39].mxu0  ;;  %v5860_v15 = vpop.f32.mrb[39].mxu1 }
 0x859   :  { %6357 = vst [vmem:[#allocation28_spill] sm:$0xff] %v5858_v55  ;;  %6358 = vst [vmem:[#allocation29_spill] sm:$0xff] %v5860_v15 }
 0x85d   :  { %v5862_v56 = vpop.f32.mrb[40].mxu0  ;;  %v5864_v57 = vpop.f32.mrb[40].mxu1  ;;  %3187 = vmatmul.mubr.bf16.vlgmr.msra.gmra.mrb[48].mxu0 %v5135_v33  ;;  %3228 = vmatmul.mubr.bf16.vlgmr.msra.gmra.mrb[48].mxu1 %v5135_v33  ;;  %v2592_v33 = vlaneseq }
 0x85e   :  { %6359 = vst [vmem:[#allocation30_spill] sm:$0xff] %v5862_v56  ;;  %6360 = vst [vmem:[#allocation31_spill] sm:$0xff] %v5864_v57  ;;  %v5868_v58 = vpop.f32.mrb[41].mxu0  ;;  %v5870_v59 = vpop.f32.mrb[41].mxu1  ;;  %3271 = vmatpush1.bf16.msra.mxu0 %v5729_v46  ;;  %3312 = vmatpush1.bf16.msra.mxu1 %v5731_v17 }
 0x85f   :  { %6361 = vst [vmem:[#allocation32_spill] sm:$0xff] %v5868_v58  ;;  %6362 = vst [vmem:[#allocation33_spill] sm:$0xff] %v5870_v59  ;;  %v5874_v60 = vpop.f32.mrb[42].mxu0  ;;  %v5876_v61 = vpop.f32.mrb[42].mxu1  ;;  %3272 = vmatprep.subr.bf16.mxu0 %v5737_v26  ;;  %3313 = vmatprep.subr.bf16.mxu1 %v5739_v45  ;;  %v2593_v23 = vshrl.u32 %v2592_v33, 7 }
 0x860   :  { %6363 = vst [vmem:[#allocation34_spill] sm:$0xff] %v5874_v60  ;;  %6364 = vst [vmem:[#allocation35_spill] sm:$0xff] %v5876_v61  ;;  %v5880_v20 = vpop.f32.mrb[43].mxu0  ;;  %v5882_v21 = vpop.f32.mrb[43].mxu1  ;;  %3302 = vmatprep.mubr.bf16.mxu0 %v6350_v0  ;;  %3343 = vmatprep.mubr.bf16.mxu1 %v6350_v0 }
 0x861   :  { %6365 = vst [vmem:[#allocation36_spill] sm:$0xff] %v5880_v20  ;;  %6366 = vst [vmem:[#allocation37_spill] sm:$0xff] %v5882_v21  ;;  %v2594_v25 = vsub.s32 0, %v2593_v23  ;;  %v2602_v29 = vsub.s32 2, %v2593_v23  ;;  %v2598_v47 = vsub.s32 1, %v2593_v23  ;;  %v2606_v50 = vsub.s32 3, %v2593_v23 }
 0x862   :  { %3273 = vmatpush1.bf16.msra.mxu0 %v5741_v63  ;;  %3314 = vmatpush1.bf16.msra.mxu1 %v5743_v34 }
 0x863   :  { %3274 = vmatprep.subr.bf16.mxu0 %v5749_v35  ;;  %3315 = vmatprep.subr.bf16.mxu1 %v5751_v36  ;;  %v5929_v33 = vrot.slane %v2590_v62, %v2594_v25  ;;  %v5931_v58 = vrot.slane %v2590_v62, %v2602_v29  ;;  %v5937_v23 = vrot.slane %v2590_v62, %v2598_v47 }
 0x865   :  { %v2809_v25 = vadd.f32 %v5831_v12, %v5937_v23 }
 0x866   :  { %3275 = vmatpush1.bf16.msra.mxu0 %v5753_v38  ;;  %3316 = vmatpush1.bf16.msra.mxu1 %v5755_v39 }
 0x867   :  { %3276 = vmatprep.subr.bf16.mxu0 %v5759_v40  ;;  %3317 = vmatprep.subr.bf16.mxu1 %v5761_v41 }
 0x86a   :  { %3277 = vmatpush1.bf16.msra.mxu0 %v5765_v43  ;;  %3318 = vmatpush1.bf16.msra.mxu1 %v5767_v2 }
 0x86b   :  { %3278 = vmatprep.subr.bf16.mxu0 %v5773_v3  ;;  %3319 = vmatprep.subr.bf16.mxu1 %v5775_v5 }
 0x86e   :  { %3279 = vmatpush1.bf16.msra.mxu0 %v5777_v6  ;;  %3320 = vmatpush1.bf16.msra.mxu1 %v5779_v7 }
 0x86f   :  { %3280 = vmatprep.subr.bf16.mxu0 %v5785_v8  ;;  %3321 = vmatprep.subr.bf16.mxu1 %v5787_v9 }
 0x872   :  { %3281 = vmatpush1.bf16.msra.mxu0 %v5789_v10  ;;  %3322 = vmatpush1.bf16.msra.mxu1 %v5791_v11 }
 0x873   :  { %3282 = vmatprep.subr.bf16.mxu0 %v5797_v13  ;;  %3323 = vmatprep.subr.bf16.mxu1 %v5799_v14 }
 0x876   :  { %3283 = vmatpush1.bf16.msra.mxu0 %v5801_v16  ;;  %3324 = vmatpush1.bf16.msra.mxu1 %v5803_v18 }
 0x877   :  { %3284 = vmatprep.subr.bf16.mxu0 %v5809_v48  ;;  %3325 = vmatprep.subr.bf16.mxu1 %v5811_v49 }
 0x87a   :  { %3285 = vmatpush1.bf16.msra.mxu0 %v5813_v31  ;;  %3326 = vmatpush1.bf16.msra.mxu1 %v5815_v19 }
 0x87b   :  { %3386 = vmatprep.subr.bf16.mxu0 %v5725_v37  ;;  %3427 = vmatprep.subr.bf16.mxu1 %v5727_v42 }
 0x928   :  { %v5917_v0 = vpop.f32.mrb[44].mxu0  ;;  %v5919_v21 = vpop.f32.mrb[44].mxu1 }
 0x929   :  { %6367 = vst [vmem:[#allocation38_spill] sm:$0xff] %v5917_v0  ;;  %6368 = vst [vmem:[#allocation39_spill] sm:$0xff] %v5919_v21  ;;  %v5921_v20 = vpop.f32.mrb[45].mxu0  ;;  %v5923_v61 = vpop.f32.mrb[45].mxu1  ;;  %v5939_v0 = vrot.slane %v2590_v62, %v2606_v50 }
 0x92a   :  { %6369 = vst [vmem:[#allocation40_spill] sm:$0xff] %v5921_v20  ;;  %6370 = vst [vmem:[#allocation41_spill] sm:$0xff] %v5923_v61  ;;  %v5925_v60 = vpop.f32.mrb[46].mxu0  ;;  %v5927_v59 = vpop.f32.mrb[46].mxu1  ;;  %v2807_v20 = vadd.f32 %v5827_v24, %v5929_v33 }
 0x92b   :  { %6371 = vst [vmem:[#allocation42_spill] sm:$0xff] %v5925_v60  ;;  %6372 = vst [vmem:[#allocation43_spill] sm:$0xff] %v5927_v59  ;;  %v5933_v57 = vpop.f32.mrb[47].mxu0  ;;  %v5935_v56 = vpop.f32.mrb[47].mxu1  ;;  %v2880_v60 = vadd.f32 %v5829_v27, %v5931_v58  ;;  %v2882_v29 = vadd.f32 %v5833_v28, %v5939_v0 }
 0x92c   :  { %6373 = vst [vmem:[#allocation44_spill] sm:$0xff] %v5933_v57  ;;  %6374 = vst [vmem:[#allocation45_spill] sm:$0xff] %v5935_v56 }
 0x930   :  { %v3188_v59 = vpop.f32.mrb[48].mxu0  ;;  %v3229_v57 = vpop.f32.mrb[48].mxu1 }
 0x931   :  { %v3236_v61 = vadd.f32 %v3188_v59, %v2807_v20  ;;  %v3238_v56 = vadd.f32 %v3229_v57, %v2880_v60  ;;  %v3190_v47 = vpop.f32.mrb[49].mxu0  ;;  %v3231_v21 = vpop.f32.mrb[49].mxu1 }
 0x932   :  { %v3237_v62 = vadd.f32 %v3190_v47, %v2809_v25  ;;  %v3239_v50 = vadd.f32 %v3231_v21, %v2882_v29  ;;  %v3192_v15 = vpop.f32.mrb[50].mxu0  ;;  %v3233_v55 = vpop.f32.mrb[50].mxu1  ;;  %v2884_v25 = vadd.f32 %v5837_v32, %v5931_v58  ;;  %v2813_v29 = vadd.f32 %v5839_v44, %v5937_v23 }
 0x933   :  { %v3240_v24 = vmul.f32 0.5, %v3236_v61  ;;  %v3193_v4 = vpop.f32.mrb[51].mxu0  ;;  %v3234_v1 = vpop.f32.mrb[51].mxu1  ;;  %v2886_v47 = vadd.f32 %v5841_v22, %v5939_v0 }
 0x934   :  { %v3244_v27 = vmul.f32 0.5, %v3237_v62  ;;  %v3249_v12 = vmul.f32 0.5, %v3239_v50 }
 0x935   :  { %4871 = vtanh.f32 %v3240_v24 }
 0x936   :  { %4873 = vtanh.f32 %v3244_v27 }
 0x937   :  { %4875 = vtanh.f32 %v3238_v56 }
 0x938   :  { %4877 = vtanh.f32 %v3249_v12 }
 0x93f   :  { %v4872_v54 = vpop.eup %4871 }
 0x940   :  { %v4874_v28 = vpop.eup %4873  ;;  %v3242_v53 = vmul.f32 0.5, %v4872_v54 }
 0x941   :  { %v3246_v52 = vmul.f32 0.5, %v4874_v28  ;;  %v4876_v59 = vpop.eup %4875 }
 0x942   :  { %v3243_v57 = vadd.f32 0.5, %v3242_v53  ;;  %v4878_v1 = vpop.eup %4877  ;;  %v2811_v53 = vadd.f32 %v5835_v30, %v5929_v33 }
 0x943   :  { %v3247_v60 = vadd.f32 0.5, %v3246_v52  ;;  %v3251_v4 = vmul.f32 0.5, %v4878_v1  ;;  %v6375_v52 = vmov 0  }
 0x944   :  { %v3254_v20 = vmul.f32 %v4876_v59, %v3243_v57 }
 0x945   :  { %v3253_v21 = vmul.f32 0.0, %v3247_v60  ;;  %v3252_v55 = vadd.f32 0.5, %v3251_v4 }
 0x947   :  { %v5949_v15 = vadd.f32 %v3254_v20, %v3253_v21 }
 0x949   :  { %4879 = vtanh.f32 %v5949_v15 }
 0x953   :  { %v4880_v61 = vpop.eup %4879 }
 0x954   :  { %v5952_v56 = vmul.f32 %v4880_v61, %v3252_v55 }
 0x956   :  { %v3269_v54 = vpack.c.bf16 %v5952_v56, %v5952_v56 }
 0x958   :  { %3303 = vmatmul.mubr.bf16.vlgmr.msra.gmra.mrb[52].mxu0 %v3269_v54  ;;  %3344 = vmatmul.mubr.bf16.vlgmr.msra.gmra.mrb[52].mxu1 %v3269_v54 }
 0x959   :  { %3387 = vmatpush1.bf16.msra.mxu0 %v5729_v46  ;;  %3428 = vmatpush1.bf16.msra.mxu1 %v5731_v17 }
 0x95a   :  { %3388 = vmatprep.subr.bf16.mxu0 %v5737_v26  ;;  %3429 = vmatprep.subr.bf16.mxu1 %v5739_v45 }
 0x95b   :  { %3418 = vmatprep.mubr.bf16.mxu0 %v6375_v52  ;;  %3459 = vmatprep.mubr.bf16.mxu1 %v6375_v52 }
 0x95d   :  { %3389 = vmatpush1.bf16.msra.mxu0 %v5741_v63  ;;  %3430 = vmatpush1.bf16.msra.mxu1 %v5743_v34 }
 0x95e   :  { %3390 = vmatprep.subr.bf16.mxu0 %v5749_v35  ;;  %3431 = vmatprep.subr.bf16.mxu1 %v5751_v36 }
 0x961   :  { %3391 = vmatpush1.bf16.msra.mxu0 %v5753_v38  ;;  %3432 = vmatpush1.bf16.msra.mxu1 %v5755_v39 }
 0x962   :  { %3392 = vmatprep.subr.bf16.mxu0 %v5759_v40  ;;  %3433 = vmatprep.subr.bf16.mxu1 %v5761_v41 }
 0x965   :  { %3393 = vmatpush1.bf16.msra.mxu0 %v5765_v43  ;;  %3434 = vmatpush1.bf16.msra.mxu1 %v5767_v2 }
 0x966   :  { %3394 = vmatprep.subr.bf16.mxu0 %v5773_v3  ;;  %3435 = vmatprep.subr.bf16.mxu1 %v5775_v5 }
 0x969   :  { %3395 = vmatpush1.bf16.msra.mxu0 %v5777_v6  ;;  %3436 = vmatpush1.bf16.msra.mxu1 %v5779_v7 }
 0x96a   :  { %3396 = vmatprep.subr.bf16.mxu0 %v5785_v8  ;;  %3437 = vmatprep.subr.bf16.mxu1 %v5787_v9 }
 0x96d   :  { %3397 = vmatpush1.bf16.msra.mxu0 %v5789_v10  ;;  %3438 = vmatpush1.bf16.msra.mxu1 %v5791_v11 }
 0x96e   :  { %3398 = vmatprep.subr.bf16.mxu0 %v5797_v13  ;;  %3439 = vmatprep.subr.bf16.mxu1 %v5799_v14 }
 0x971   :  { %3399 = vmatpush1.bf16.msra.mxu0 %v5801_v16  ;;  %3440 = vmatpush1.bf16.msra.mxu1 %v5803_v18 }
 0x972   :  { %3400 = vmatprep.subr.bf16.mxu0 %v5809_v48  ;;  %3441 = vmatprep.subr.bf16.mxu1 %v5811_v49 }
 0x975   :  { %3401 = vmatpush1.bf16.msra.mxu0 %v5813_v31  ;;  %3442 = vmatpush1.bf16.msra.mxu1 %v5815_v19 }
 0x976   :  { %3502 = vmatprep.subr.bf16.mxu0 %v5725_v37  ;;  %3543 = vmatprep.subr.bf16.mxu1 %v5727_v42 }
 0xa2b   :  { %v3304_v62 = vpop.f32.mrb[52].mxu0  ;;  %v3345_v50 = vpop.f32.mrb[52].mxu1 }
 0xa2c   :  { %v3352_v24 = vadd.f32 %v3304_v62, %v2811_v53  ;;  %v3354_v27 = vadd.f32 %v3345_v50, %v2884_v25  ;;  %v3306_v12 = vpop.f32.mrb[53].mxu0  ;;  %v3347_v28 = vpop.f32.mrb[53].mxu1 }
 0xa2d   :  { %v3353_v57 = vadd.f32 %v3306_v12, %v2813_v29  ;;  %v3355_v59 = vadd.f32 %v3347_v28, %v2886_v47  ;;  %v3308_v60 = vpop.f32.mrb[54].mxu0  ;;  %v3349_v20 = vpop.f32.mrb[54].mxu1 }
 0xa2e   :  { %v3356_v30 = vmul.f32 0.5, %v3352_v24  ;;  %v3309_v21 = vpop.f32.mrb[55].mxu0  ;;  %v3350_v1 = vpop.f32.mrb[55].mxu1  ;;  %v6376_v20 = vld [vmem:[#allocation23_spill] sm:$0xff] }
 0xa2f   :  { %v3360_v32 = vmul.f32 0.5, %v3353_v57  ;;  %v3365_v44 = vmul.f32 0.5, %v3355_v59  ;;  %v6002_v12 = vpop.permute.xlu0 %110  ;;  %v6377_v21 = vld [vmem:[#allocation24_spill] sm:$0xff] }
 0xa30   :  { %4881 = vtanh.f32 %v3356_v30  ;;  %vm3259_vm0 = vcmp.eq.s32.totalorder %v6002_v12, 0  ;;  %vm3375_vm1 = vcmp.eq.s32.totalorder %v6002_v12, 1  ;;  %v2890_v30 = vadd.f32 %v6376_v20, %v5931_v58 }
 0xa31   :  { %4883 = vtanh.f32 %v3360_v32  ;;  %v3260_v59 = vsel %vm3259_vm0, %v5952_v56, 0.0  ;;  %v2817_v56 = vadd.f32 %v5844_v51, %v5929_v33  ;;  %v2819_v1 = vadd.f32 %v6377_v21, %v5937_v23  ;;  %v6378_v32 = vld [vmem:[#allocation25_spill] sm:$0xff] }
 0xa32   :  { %4885 = vtanh.f32 %v3354_v27  ;;  %vm3491_vm2 = vcmp.eq.s32.totalorder %v6002_v12, 2  ;;  %vm3607_vm3 = vcmp.eq.s32.totalorder %v6002_v12, 3  ;;  %vm3723_vm4 = vcmp.eq.s32.totalorder %v6002_v12, 4 }
 0xa33   :  { %4887 = vtanh.f32 %v3365_v44  ;;  %v2892_v44 = vadd.f32 %v6378_v32, %v5939_v0  ;;  %vm3839_vm5 = vcmp.eq.s32.totalorder %v6002_v12, 5  ;;  %vm3955_vm6 = vcmp.eq.s32.totalorder %v6002_v12, 6 }
 0xa34   :  { %vm4071_vm8 = vcmp.eq.s32.totalorder %v6002_v12, 7 }
 0xa3a   :  { %v4882_v4 = vpop.eup %4881 }
 0xa3b   :  { %v4884_v22 = vpop.eup %4883  ;;  %v3358_v55 = vmul.f32 0.5, %v4882_v4 }
 0xa3c   :  { %v3362_v61 = vmul.f32 0.5, %v4884_v22  ;;  %v4886_v53 = vpop.eup %4885 }
 0xa3d   :  { %v3359_v54 = vadd.f32 0.5, %v3358_v55  ;;  %v4888_v50 = vpop.eup %4887 }
 0xa3e   :  { %v3363_v25 = vadd.f32 0.5, %v3362_v61  ;;  %v3367_v24 = vmul.f32 0.5, %v4888_v50 }
 0xa3f   :  { %v3370_v29 = vmul.f32 %v4886_v53, %v3359_v54 }
 0xa40   :  { %v3369_v47 = vmul.f32 %v3363_v25, %v5949_v15  ;;  %v3368_v27 = vadd.f32 0.5, %v3367_v24 }
 0xa42   :  { %v5999_v62 = vadd.f32 %v3370_v29, %v3369_v47 }
 0xa44   :  { %4889 = vtanh.f32 %v5999_v62 }
 0xa4e   :  { %v4890_v28 = vpop.eup %4889 }
 0xa4f   :  { %v3373_v57 = vmul.f32 %v4890_v28, %v3368_v27 }
 0xa51   :  { %v6007_v60 = vsel %vm3375_vm1, %v3373_v57, %v3260_v59  ;;  %v3385_v15 = vpack.c.bf16 %v3373_v57, %v3373_v57 }
 0xa53   :  { %3419 = vmatmul.mubr.bf16.vlgmr.msra.gmra.mrb[56].mxu0 %v3385_v15  ;;  %3460 = vmatmul.mubr.bf16.vlgmr.msra.gmra.mrb[56].mxu1 %v3385_v15 }
 0xa54   :  { %3503 = vmatpush1.bf16.msra.mxu0 %v5729_v46  ;;  %3544 = vmatpush1.bf16.msra.mxu1 %v5731_v17 }
 0xa55   :  { %3504 = vmatprep.subr.bf16.mxu0 %v5737_v26  ;;  %3545 = vmatprep.subr.bf16.mxu1 %v5739_v45 }
 0xa56   :  { %3534 = vmatprep.mubr.bf16.mxu0 %v6375_v52  ;;  %3575 = vmatprep.mubr.bf16.mxu1 %v6375_v52 }
 0xa58   :  { %3505 = vmatpush1.bf16.msra.mxu0 %v5741_v63  ;;  %3546 = vmatpush1.bf16.msra.mxu1 %v5743_v34 }
 0xa59   :  { %3506 = vmatprep.subr.bf16.mxu0 %v5749_v35  ;;  %3547 = vmatprep.subr.bf16.mxu1 %v5751_v36 }
 0xa5c   :  { %3507 = vmatpush1.bf16.msra.mxu0 %v5753_v38  ;;  %3548 = vmatpush1.bf16.msra.mxu1 %v5755_v39 }
 0xa5d   :  { %3508 = vmatprep.subr.bf16.mxu0 %v5759_v40  ;;  %3549 = vmatprep.subr.bf16.mxu1 %v5761_v41 }
 0xa60   :  { %3509 = vmatpush1.bf16.msra.mxu0 %v5765_v43  ;;  %3550 = vmatpush1.bf16.msra.mxu1 %v5767_v2 }
 0xa61   :  { %3510 = vmatprep.subr.bf16.mxu0 %v5773_v3  ;;  %3551 = vmatprep.subr.bf16.mxu1 %v5775_v5 }
 0xa64   :  { %3511 = vmatpush1.bf16.msra.mxu0 %v5777_v6  ;;  %3552 = vmatpush1.bf16.msra.mxu1 %v5779_v7 }
 0xa65   :  { %3512 = vmatprep.subr.bf16.mxu0 %v5785_v8  ;;  %3553 = vmatprep.subr.bf16.mxu1 %v5787_v9 }
 0xa68   :  { %3513 = vmatpush1.bf16.msra.mxu0 %v5789_v10  ;;  %3554 = vmatpush1.bf16.msra.mxu1 %v5791_v11 }
 0xa69   :  { %3514 = vmatprep.subr.bf16.mxu0 %v5797_v13  ;;  %3555 = vmatprep.subr.bf16.mxu1 %v5799_v14 }
 0xa6c   :  { %3515 = vmatpush1.bf16.msra.mxu0 %v5801_v16  ;;  %3556 = vmatpush1.bf16.msra.mxu1 %v5803_v18 }
 0xa6d   :  { %3516 = vmatprep.subr.bf16.mxu0 %v5809_v48  ;;  %3557 = vmatprep.subr.bf16.mxu1 %v5811_v49 }
 0xa70   :  { %3517 = vmatpush1.bf16.msra.mxu0 %v5813_v31  ;;  %3558 = vmatpush1.bf16.msra.mxu1 %v5815_v19 }
 0xa71   :  { %3618 = vmatprep.subr.bf16.mxu0 %v5725_v37  ;;  %3659 = vmatprep.subr.bf16.mxu1 %v5727_v42 }
 0xb26   :  { %v3420_v4 = vpop.f32.mrb[56].mxu0  ;;  %v3461_v22 = vpop.f32.mrb[56].mxu1 }
 0xb27   :  { %v3468_v55 = vadd.f32 %v3420_v4, %v2817_v56  ;;  %v3470_v61 = vadd.f32 %v3461_v22, %v2890_v30  ;;  %v3422_v54 = vpop.f32.mrb[57].mxu0  ;;  %v3463_v53 = vpop.f32.mrb[57].mxu1 }
 0xb28   :  { %v3469_v25 = vadd.f32 %v3422_v54, %v2819_v1  ;;  %v3471_v29 = vadd.f32 %v3463_v53, %v2892_v44  ;;  %v3424_v47 = vpop.f32.mrb[58].mxu0  ;;  %v3465_v50 = vpop.f32.mrb[58].mxu1 }
 0xb29   :  { %v3472_v51 = vmul.f32 0.5, %v3468_v55  ;;  %v3425_v24 = vpop.f32.mrb[59].mxu0  ;;  %v3466_v27 = vpop.f32.mrb[59].mxu1  ;;  %v6380_v47 = vld [vmem:[#allocation27_spill] sm:$0xff] }
 0xb2a   :  { %v3476_v28 = vmul.f32 0.5, %v3469_v25  ;;  %v3481_v57 = vmul.f32 0.5, %v3471_v29  ;;  %v2894_v50 = vadd.f32 %v6380_v47, %v5931_v58  ;;  %v6382_v27 = vld [vmem:[#allocation29_spill] sm:$0xff] }
 0xb2b   :  { %4891 = vtanh.f32 %v3472_v51  ;;  %v6381_v51 = vld [vmem:[#allocation28_spill] sm:$0xff] }
 0xb2c   :  { %4893 = vtanh.f32 %v3476_v28  ;;  %v2823_v24 = vadd.f32 %v6381_v51, %v5937_v23  ;;  %v2896_v28 = vadd.f32 %v6382_v27, %v5939_v0 }
 0xb2d   :  { %4895 = vtanh.f32 %v3470_v61 }
 0xb2e   :  { %4897 = vtanh.f32 %v3481_v57 }
 0xb35   :  { %v4892_v59 = vpop.eup %4891 }
 0xb36   :  { %v4894_v15 = vpop.eup %4893  ;;  %v3474_v20 = vmul.f32 0.5, %v4892_v59 }
 0xb37   :  { %v3478_v21 = vmul.f32 0.5, %v4894_v15  ;;  %v4896_v30 = vpop.eup %4895 }
 0xb38   :  { %v3475_v56 = vadd.f32 0.5, %v3474_v20  ;;  %v4898_v22 = vpop.eup %4897 }
 0xb39   :  { %v3479_v32 = vadd.f32 0.5, %v3478_v21  ;;  %v3483_v55 = vmul.f32 0.5, %v4898_v22 }
 0xb3a   :  { %v3486_v1 = vmul.f32 %v4896_v30, %v3475_v56 }
 0xb3b   :  { %v3485_v44 = vmul.f32 %v3479_v32, %v5999_v62  ;;  %v3484_v54 = vadd.f32 0.5, %v3483_v55  ;;  %v6379_v62 = vld [vmem:[#allocation26_spill] sm:$0xff] }
 0xb3d   :  { %v6052_v4 = vadd.f32 %v3486_v1, %v3485_v44 }
 0xb3f   :  { %4899 = vtanh.f32 %v6052_v4 }
 0xb49   :  { %v4900_v61 = vpop.eup %4899 }
 0xb4a   :  { %v3489_v53 = vmul.f32 %v4900_v61, %v3484_v54 }
 0xb4c   :  { %v6057_v25 = vsel %vm3491_vm2, %v3489_v53, %v6007_v60  ;;  %v3501_v29 = vpack.c.bf16 %v3489_v53, %v3489_v53  ;;  %v2821_v60 = vadd.f32 %v6379_v62, %v5929_v33 }
 0xb4e   :  { %3535 = vmatmul.mubr.bf16.vlgmr.msra.gmra.mrb[60].mxu0 %v3501_v29  ;;  %3576 = vmatmul.mubr.bf16.vlgmr.msra.gmra.mrb[60].mxu1 %v3501_v29 }
 0xb4f   :  { %3619 = vmatpush1.bf16.msra.mxu0 %v5729_v46  ;;  %3660 = vmatpush1.bf16.msra.mxu1 %v5731_v17 }
 0xb50   :  { %3620 = vmatprep.subr.bf16.mxu0 %v5737_v26  ;;  %3661 = vmatprep.subr.bf16.mxu1 %v5739_v45 }
 0xb51   :  { %3650 = vmatprep.mubr.bf16.mxu0 %v6375_v52  ;;  %3691 = vmatprep.mubr.bf16.mxu1 %v6375_v52 }
 0xb53   :  { %3621 = vmatpush1.bf16.msra.mxu0 %v5741_v63  ;;  %3662 = vmatpush1.bf16.msra.mxu1 %v5743_v34 }
 0xb54   :  { %3622 = vmatprep.subr.bf16.mxu0 %v5749_v35  ;;  %3663 = vmatprep.subr.bf16.mxu1 %v5751_v36 }
 0xb57   :  { %3623 = vmatpush1.bf16.msra.mxu0 %v5753_v38  ;;  %3664 = vmatpush1.bf16.msra.mxu1 %v5755_v39 }
 0xb58   :  { %3624 = vmatprep.subr.bf16.mxu0 %v5759_v40  ;;  %3665 = vmatprep.subr.bf16.mxu1 %v5761_v41 }
 0xb5b   :  { %3625 = vmatpush1.bf16.msra.mxu0 %v5765_v43  ;;  %3666 = vmatpush1.bf16.msra.mxu1 %v5767_v2 }
 0xb5c   :  { %3626 = vmatprep.subr.bf16.mxu0 %v5773_v3  ;;  %3667 = vmatprep.subr.bf16.mxu1 %v5775_v5 }
 0xb5f   :  { %3627 = vmatpush1.bf16.msra.mxu0 %v5777_v6  ;;  %3668 = vmatpush1.bf16.msra.mxu1 %v5779_v7 }
 0xb60   :  { %3628 = vmatprep.subr.bf16.mxu0 %v5785_v8  ;;  %3669 = vmatprep.subr.bf16.mxu1 %v5787_v9 }
 0xb63   :  { %3629 = vmatpush1.bf16.msra.mxu0 %v5789_v10  ;;  %3670 = vmatpush1.bf16.msra.mxu1 %v5791_v11 }
 0xb64   :  { %3630 = vmatprep.subr.bf16.mxu0 %v5797_v13  ;;  %3671 = vmatprep.subr.bf16.mxu1 %v5799_v14 }
 0xb67   :  { %3631 = vmatpush1.bf16.msra.mxu0 %v5801_v16  ;;  %3672 = vmatpush1.bf16.msra.mxu1 %v5803_v18 }
 0xb68   :  { %3632 = vmatprep.subr.bf16.mxu0 %v5809_v48  ;;  %3673 = vmatprep.subr.bf16.mxu1 %v5811_v49 }
 0xb6b   :  { %3633 = vmatpush1.bf16.msra.mxu0 %v5813_v31  ;;  %3674 = vmatpush1.bf16.msra.mxu1 %v5815_v19 }
 0xb6c   :  { %3734 = vmatprep.subr.bf16.mxu0 %v5725_v37  ;;  %3775 = vmatprep.subr.bf16.mxu1 %v5727_v42 }
 0xc21   :  { %v3536_v57 = vpop.f32.mrb[60].mxu0  ;;  %v3577_v59 = vpop.f32.mrb[60].mxu1 }
 0xc22   :  { %v3584_v15 = vadd.f32 %v3536_v57, %v2821_v60  ;;  %v3586_v20 = vadd.f32 %v3577_v59, %v2894_v50  ;;  %v3538_v21 = vpop.f32.mrb[61].mxu0  ;;  %v3579_v56 = vpop.f32.mrb[61].mxu1 }
 0xc23   :  { %v3585_v30 = vadd.f32 %v3538_v21, %v2823_v24  ;;  %v3587_v32 = vadd.f32 %v3579_v56, %v2896_v28  ;;  %v3540_v1 = vpop.f32.mrb[62].mxu0  ;;  %v3581_v44 = vpop.f32.mrb[62].mxu1 }
 0xc24   :  { %v3588_v22 = vmul.f32 0.5, %v3584_v15  ;;  %v3541_v55 = vpop.f32.mrb[63].mxu0  ;;  %v3582_v54 = vpop.f32.mrb[63].mxu1 }
 0xc25   :  { %v3592_v61 = vmul.f32 0.5, %v3585_v30  ;;  %v3597_v53 = vmul.f32 0.5, %v3587_v32 }
 0xc26   :  { %4901 = vtanh.f32 %v3588_v22 }
 0xc27   :  { %4903 = vtanh.f32 %v3592_v61 }
 0xc28   :  { %4905 = vtanh.f32 %v3586_v20 }
 0xc29   :  { %4907 = vtanh.f32 %v3597_v53  ;;  %v6159_v53 = vld [vmem:[#allocation15] ss:$16 sps:$4 sm:$0xff]  }
 0xc30   :  { %v4902_v29 = vpop.eup %4901 }
 0xc31   :  { %v4904_v62 = vpop.eup %4903  ;;  %v3590_v47 = vmul.f32 0.5, %v4902_v29  ;;  %v6162_v29 = vld [vmem:[#allocation15 + $0x8] ss:$16 sps:$4 sm:$0xff]  }
 0xc32   :  { %v3594_v51 = vmul.f32 0.5, %v4904_v62  ;;  %v4906_v50 = vpop.eup %4905  ;;  %v6165_v62 = vld [vmem:[#allocation15 + $0x24] ss:$16 sps:$4 sm:$0xff]  }
 0xc33   :  { %v3591_v60 = vadd.f32 0.5, %v3590_v47  ;;  %v4908_v59 = vpop.eup %4907  ;;  %v6168_v47 = vld [vmem:[#allocation15 + $0x2c] ss:$16 sps:$4 sm:$0xff]  }
 0xc34   :  { %v3595_v27 = vadd.f32 0.5, %v3594_v51  ;;  %v3599_v15 = vmul.f32 0.5, %v4908_v59  ;;  %v6173_v51 = vld [vmem:[#allocation15 + $0x20] ss:$16 sps:$4 sm:$0xff]   ;;  %v6194_v59 = vld [vmem:[#allocation15 + $0x6c] ss:$16 sps:$4 sm:$0xff]  }
 0xc35   :  { %v3602_v24 = vmul.f32 %v4906_v50, %v3591_v60  ;;  %v6176_v60 = vld [vmem:[#allocation15 + $0x28] ss:$16 sps:$4 sm:$0xff]   ;;  %v6179_v50 = vld [vmem:[#allocation15 + $0x44] ss:$16 sps:$4 sm:$0xff]  }
 0xc36   :  { %v3601_v28 = vmul.f32 %v3595_v27, %v6052_v4  ;;  %v3600_v21 = vadd.f32 0.5, %v3599_v15  ;;  %v6182_v27 = vld [vmem:[#allocation15 + $0x4c] ss:$16 sps:$4 sm:$0xff]   ;;  %v6197_v15 = vld [vmem:[#allocation15 + $0x60] ss:$16 sps:$4 sm:$0xff]  }
 0xc38   :  { %v6102_v57 = vadd.f32 %v3602_v24, %v3601_v28  ;;  %v6185_v24 = vld [vmem:[#allocation15 + $0x40] ss:$16 sps:$4 sm:$0xff]   ;;  %v6188_v28 = vld [vmem:[#allocation15 + $0x48] ss:$16 sps:$4 sm:$0xff]  }
 0xc3a   :  { %4909 = vtanh.f32 %v6102_v57 }
 0xc44   :  { %v4910_v20 = vpop.eup %4909 }
 0xc45   :  { %v3605_v56 = vmul.f32 %v4910_v20, %v3600_v21  ;;  %v6200_v21 = vld [vmem:[#allocation15 + $0x68] ss:$16 sps:$4 sm:$0xff]   ;;  %v6203_v20 = vld [vmem:[#allocation15 + $0x84] ss:$16 sps:$4 sm:$0xff]  }
 0xc47   :  { %v6107_v30 = vsel %vm3607_vm3, %v3605_v56, %v6057_v25  ;;  %v3617_v32 = vpack.c.bf16 %v3605_v56, %v3605_v56  ;;  %v6206_v56 = vld [vmem:[#allocation15 + $0x8c] ss:$16 sps:$4 sm:$0xff]  }
 0xc49   :  { %3651 = vmatmul.mubr.bf16.vlgmr.msra.gmra.mrb[64].mxu0 %v3617_v32  ;;  %3692 = vmatmul.mubr.bf16.vlgmr.msra.gmra.mrb[64].mxu1 %v3617_v32  ;;  %v6212_v32 = vld [vmem:[#allocation15 + $0x88] ss:$16 sps:$4 sm:$0xff]  }
 0xc4a   :  { %3735 = vmatpush1.bf16.msra.mxu0 %v5729_v46  ;;  %3776 = vmatpush1.bf16.msra.mxu1 %v5731_v17  ;;  %v6383_v46 = vld [vmem:[#allocation30_spill] sm:$0xff] }
 0xc4b   :  { %3736 = vmatprep.subr.bf16.mxu0 %v5737_v26  ;;  %3777 = vmatprep.subr.bf16.mxu1 %v5739_v45  ;;  %v2827_v17 = vadd.f32 %v6383_v46, %v5929_v33  ;;  %v6384_v26 = vld [vmem:[#allocation31_spill] sm:$0xff]  ;;  %v6215_v46 = vld [vmem:[#allocation15 + $0xa4] ss:$16 sps:$4 sm:$0xff]  }
 0xc4c   :  { %3766 = vmatprep.mubr.bf16.mxu0 %v6375_v52  ;;  %3807 = vmatprep.mubr.bf16.mxu1 %v6375_v52  ;;  %v2900_v45 = vadd.f32 %v6384_v26, %v5931_v58  ;;  %v6221_v26 = vld [vmem:[#allocation15 + $0xa0] ss:$16 sps:$4 sm:$0xff]  }
 0xc4e   :  { %3737 = vmatpush1.bf16.msra.mxu0 %v5741_v63  ;;  %3778 = vmatpush1.bf16.msra.mxu1 %v5743_v34  ;;  %v6385_v63 = vld [vmem:[#allocation32_spill] sm:$0xff] }
 0xc4f   :  { %3738 = vmatprep.subr.bf16.mxu0 %v5749_v35  ;;  %3779 = vmatprep.subr.bf16.mxu1 %v5751_v36  ;;  %v2829_v34 = vadd.f32 %v6385_v63, %v5937_v23  ;;  %v6386_v35 = vld [vmem:[#allocation33_spill] sm:$0xff]  ;;  %v6227_v63 = vld [vmem:[#allocation15 + $0xc4] ss:$16 sps:$4 sm:$0xff]  }
 0xc50   :  { %v2902_v36 = vadd.f32 %v6386_v35, %v5939_v0  ;;  %v6233_v35 = vld [vmem:[#allocation15 + $0xc0] ss:$16 sps:$4 sm:$0xff]  }
 0xc52   :  { %3739 = vmatpush1.bf16.msra.mxu0 %v5753_v38  ;;  %3780 = vmatpush1.bf16.msra.mxu1 %v5755_v39 }
 0xc53   :  { %3740 = vmatprep.subr.bf16.mxu0 %v5759_v40  ;;  %3781 = vmatprep.subr.bf16.mxu1 %v5761_v41 }
 0xc56   :  { %3741 = vmatpush1.bf16.msra.mxu0 %v5765_v43  ;;  %3782 = vmatpush1.bf16.msra.mxu1 %v5767_v2 }
 0xc57   :  { %3742 = vmatprep.subr.bf16.mxu0 %v5773_v3  ;;  %3783 = vmatprep.subr.bf16.mxu1 %v5775_v5 }
 0xc5a   :  { %3743 = vmatpush1.bf16.msra.mxu0 %v5777_v6  ;;  %3784 = vmatpush1.bf16.msra.mxu1 %v5779_v7 }
 0xc5b   :  { %3744 = vmatprep.subr.bf16.mxu0 %v5785_v8  ;;  %3785 = vmatprep.subr.bf16.mxu1 %v5787_v9 }
 0xc5e   :  { %3745 = vmatpush1.bf16.msra.mxu0 %v5789_v10  ;;  %3786 = vmatpush1.bf16.msra.mxu1 %v5791_v11 }
 0xc5f   :  { %3746 = vmatprep.subr.bf16.mxu0 %v5797_v13  ;;  %3787 = vmatprep.subr.bf16.mxu1 %v5799_v14 }
 0xc62   :  { %3747 = vmatpush1.bf16.msra.mxu0 %v5801_v16  ;;  %3788 = vmatpush1.bf16.msra.mxu1 %v5803_v18 }
 0xc63   :  { %3748 = vmatprep.subr.bf16.mxu0 %v5809_v48  ;;  %3789 = vmatprep.subr.bf16.mxu1 %v5811_v49 }
 0xc66   :  { %3749 = vmatpush1.bf16.msra.mxu0 %v5813_v31  ;;  %3790 = vmatpush1.bf16.msra.mxu1 %v5815_v19 }
 0xc67   :  { %3850 = vmatprep.subr.bf16.mxu0 %v5725_v37  ;;  %3891 = vmatprep.subr.bf16.mxu1 %v5727_v42 }
 0xd1c   :  { %v3652_v38 = vpop.f32.mrb[64].mxu0  ;;  %v3693_v39 = vpop.f32.mrb[64].mxu1 }
 0xd1d   :  { %v3700_v40 = vadd.f32 %v3652_v38, %v2827_v17  ;;  %v3702_v41 = vadd.f32 %v3693_v39, %v2900_v45  ;;  %v3654_v43 = vpop.f32.mrb[65].mxu0  ;;  %v3695_v37 = vpop.f32.mrb[65].mxu1  ;;  %v6218_v17 = vld [vmem:[#allocation15 + $0xac] ss:$16 sps:$4 sm:$0xff]   ;;  %v6224_v45 = vld [vmem:[#allocation15 + $0xa8] ss:$16 sps:$4 sm:$0xff]  }
 0xd1e   :  { %v3701_v2 = vadd.f32 %v3654_v43, %v2829_v34  ;;  %v3703_v42 = vadd.f32 %v3695_v37, %v2902_v36  ;;  %v3656_v3 = vpop.f32.mrb[66].mxu0  ;;  %v3697_v5 = vpop.f32.mrb[66].mxu1  ;;  %v6230_v34 = vld [vmem:[#allocation15 + $0xcc] ss:$16 sps:$4 sm:$0xff]   ;;  %v6236_v36 = vld [vmem:[#allocation15 + $0xc8] ss:$16 sps:$4 sm:$0xff]  }
 0xd1f   :  { %v3704_v6 = vmul.f32 0.5, %v3700_v40  ;;  %v3657_v7 = vpop.f32.mrb[67].mxu0  ;;  %v3698_v8 = vpop.f32.mrb[67].mxu1  ;;  %v6239_v38 = vld [vmem:[#allocation15 + $0xe4] ss:$16 sps:$4 sm:$0xff]   ;;  %v6388_v3 = vld [vmem:[#allocation35_spill] sm:$0xff] }
 0xd20   :  { %v3708_v9 = vmul.f32 0.5, %v3701_v2  ;;  %v3713_v10 = vmul.f32 0.5, %v3703_v42  ;;  %v6242_v39 = vld [vmem:[#allocation15 + $0xec] ss:$16 sps:$4 sm:$0xff]   ;;  %v6245_v40 = vld [vmem:[#allocation15 + $0xe0] ss:$16 sps:$4 sm:$0xff]   ;;  %v2904_v5 = vadd.f32 %v6388_v3, %v5931_v58 }
 0xd21   :  { %4911 = vtanh.f32 %v3704_v6  ;;  %v4981_v43 = vld [vmem:[#allocation15 + $0x4] ss:$16 sps:$4 sm:$0xff]   ;;  %v4982_v37 = vld [vmem:[#allocation15 + $0xc] ss:$16 sps:$4 sm:$0xff]  }
 0xd22   :  { %4913 = vtanh.f32 %v3708_v9  ;;  %v6387_v2 = vld [vmem:[#allocation34_spill] sm:$0xff]  ;;  %v6389_v6 = vld [vmem:[#allocation36_spill] sm:$0xff]  ;;  %v6390_v8 = vld [vmem:[#allocation37_spill] sm:$0xff] }
 0xd23   :  { %4915 = vtanh.f32 %v3702_v41  ;;  %v6248_v41 = vld [vmem:[#allocation15 + $0xe8] ss:$16 sps:$4 sm:$0xff]   ;;  %v2831_v42 = vadd.f32 %v6387_v2, %v5929_v33  ;;  %v2833_v7 = vadd.f32 %v6389_v6, %v5937_v23  ;;  %v2906_v9 = vadd.f32 %v6390_v8, %v5939_v0 }
 0xd24   :  { %4917 = vtanh.f32 %v3713_v10 }
 0xd2b   :  { %v4912_v11 = vpop.eup %4911 }
 0xd2c   :  { %v4914_v13 = vpop.eup %4913  ;;  %v3706_v14 = vmul.f32 0.5, %v4912_v11 }
 0xd2d   :  { %v3710_v16 = vmul.f32 0.5, %v4914_v13  ;;  %v4916_v48 = vpop.eup %4915 }
 0xd2e   :  { %v3707_v18 = vadd.f32 0.5, %v3706_v14  ;;  %v4918_v25 = vpop.eup %4917 }
 0xd2f   :  { %v3711_v49 = vadd.f32 0.5, %v3710_v16  ;;  %v3715_v1 = vmul.f32 0.5, %v4918_v25 }
 0xd30   :  { %v3718_v31 = vmul.f32 %v4916_v48, %v3707_v18 }
 0xd31   :  { %v3717_v19 = vmul.f32 %v3711_v49, %v6102_v57  ;;  %v3716_v44 = vadd.f32 0.5, %v3715_v1  ;;  %v6191_v57 = vld [vmem:[#allocation15 + $0x64] ss:$16 sps:$4 sm:$0xff]  }
 0xd33   :  { %v6152_v4 = vadd.f32 %v3718_v31, %v3717_v19 }
 0xd35   :  { %4919 = vtanh.f32 %v6152_v4 }
 0xd3f   :  { %v4920_v22 = vpop.eup %4919 }
 0xd40   :  { %v3721_v55 = vmul.f32 %v4920_v22, %v3716_v44 }
 0xd42   :  { %v6157_v54 = vsel %vm3723_vm4, %v3721_v55, %v6107_v30  ;;  %v3733_v61 = vpack.c.bf16 %v3721_v55, %v3721_v55  ;;  %v6209_v30 = vld [vmem:[#allocation15 + $0x80] ss:$16 sps:$4 sm:$0xff]  }
 0xd44   :  { %3767 = vmatmul.mubr.bf16.vlgmr.msra.gmra.mrb[68].mxu0 %v3733_v61  ;;  %3808 = vmatmul.mubr.bf16.vlgmr.msra.gmra.mrb[68].mxu1 %v3733_v61 }
 0xd45   :  { %3851 = vmatpush1.bf16.msra.mxu0 %v6159_v53  ;;  %3892 = vmatpush1.bf16.msra.mxu1 %v6162_v29 }
 0xd46   :  { %3852 = vmatprep.subr.bf16.mxu0 %v6165_v62  ;;  %3893 = vmatprep.subr.bf16.mxu1 %v6168_v47 }
 0xd47   :  { %3882 = vmatprep.mubr.bf16.mxu0 %v6375_v52  ;;  %3923 = vmatprep.mubr.bf16.mxu1 %v6375_v52 }
 0xd49   :  { %3853 = vmatpush1.bf16.msra.mxu0 %v6173_v51  ;;  %3894 = vmatpush1.bf16.msra.mxu1 %v6176_v60 }
 0xd4a   :  { %3854 = vmatprep.subr.bf16.mxu0 %v6179_v50  ;;  %3895 = vmatprep.subr.bf16.mxu1 %v6182_v27 }
 0xd4d   :  { %3855 = vmatpush1.bf16.msra.mxu0 %v6185_v24  ;;  %3896 = vmatpush1.bf16.msra.mxu1 %v6188_v28 }
 0xd4e   :  { %3856 = vmatprep.subr.bf16.mxu0 %v6191_v57  ;;  %3897 = vmatprep.subr.bf16.mxu1 %v6194_v59 }
 0xd51   :  { %3857 = vmatpush1.bf16.msra.mxu0 %v6197_v15  ;;  %3898 = vmatpush1.bf16.msra.mxu1 %v6200_v21 }
 0xd52   :  { %3858 = vmatprep.subr.bf16.mxu0 %v6203_v20  ;;  %3899 = vmatprep.subr.bf16.mxu1 %v6206_v56 }
 0xd55   :  { %3859 = vmatpush1.bf16.msra.mxu0 %v6209_v30  ;;  %3900 = vmatpush1.bf16.msra.mxu1 %v6212_v32 }
 0xd56   :  { %3860 = vmatprep.subr.bf16.mxu0 %v6215_v46  ;;  %3901 = vmatprep.subr.bf16.mxu1 %v6218_v17 }
 0xd59   :  { %3861 = vmatpush1.bf16.msra.mxu0 %v6221_v26  ;;  %3902 = vmatpush1.bf16.msra.mxu1 %v6224_v45 }
 0xd5a   :  { %3862 = vmatprep.subr.bf16.mxu0 %v6227_v63  ;;  %3903 = vmatprep.subr.bf16.mxu1 %v6230_v34 }
 0xd5d   :  { %3863 = vmatpush1.bf16.msra.mxu0 %v6233_v35  ;;  %3904 = vmatpush1.bf16.msra.mxu1 %v6236_v36 }
 0xd5e   :  { %3864 = vmatprep.subr.bf16.mxu0 %v6239_v38  ;;  %3905 = vmatprep.subr.bf16.mxu1 %v6242_v39 }
 0xd61   :  { %3865 = vmatpush1.bf16.msra.mxu0 %v6245_v40  ;;  %3906 = vmatpush1.bf16.msra.mxu1 %v6248_v41 }
 0xd62   :  { %3966 = vmatprep.subr.bf16.mxu0 %v4981_v43  ;;  %4007 = vmatprep.subr.bf16.mxu1 %v4982_v37 }
 0xe17   :  { %v3768_v10 = vpop.f32.mrb[68].mxu0  ;;  %v3809_v11 = vpop.f32.mrb[68].mxu1 }
 0xe18   :  { %v3816_v13 = vadd.f32 %v3768_v10, %v2831_v42  ;;  %v3818_v14 = vadd.f32 %v3809_v11, %v2904_v5  ;;  %v3770_v16 = vpop.f32.mrb[69].mxu0  ;;  %v3811_v18 = vpop.f32.mrb[69].mxu1 }
 0xe19   :  { %v3817_v48 = vadd.f32 %v3770_v16, %v2833_v7  ;;  %v3819_v49 = vadd.f32 %v3811_v18, %v2906_v9  ;;  %v3772_v31 = vpop.f32.mrb[70].mxu0  ;;  %v3813_v19 = vpop.f32.mrb[70].mxu1 }
 0xe1a   :  { %v3820_v25 = vmul.f32 0.5, %v3816_v13  ;;  %v3773_v1 = vpop.f32.mrb[71].mxu0  ;;  %v3814_v44 = vpop.f32.mrb[71].mxu1 }
 0xe1b   :  { %v3824_v22 = vmul.f32 0.5, %v3817_v48  ;;  %v3829_v55 = vmul.f32 0.5, %v3819_v49 }
 0xe1c   :  { %4921 = vtanh.f32 %v3820_v25 }
 0xe1d   :  { %4923 = vtanh.f32 %v3824_v22  ;;  %v4783_v22 = vld [vmem:[#allocation17] sm:$0xff]  }
 0xe1e   :  { %4925 = vtanh.f32 %v3818_v14 }
 0xe1f   :  { %4927 = vtanh.f32 %v3829_v55  ;;  %v5136_v55 = vmov 0.0  }
 0xe26   :  { %v4922_v61 = vpop.eup %4921 }
 0xe27   :  { %v4924_v43 = vpop.eup %4923  ;;  %v3822_v37 = vmul.f32 0.5, %v4922_v61  ;;  %v4784_v61 = vld [vmem:[#allocation17 + $0x8] sm:$0xff]  }
 0xe28   :  { %v3826_v2 = vmul.f32 0.5, %v4924_v43  ;;  %v4926_v3 = vpop.eup %4925  ;;  %v4785_v43 = vld [vmem:[#allocation17 + $0x10] sm:$0xff]  }
 0xe29   :  { %v3823_v42 = vadd.f32 0.5, %v3822_v37  ;;  %v4928_v9 = vpop.eup %4927  ;;  %v4786_v37 = vld [vmem:[#allocation17 + $0x18] sm:$0xff]  }
 0xe2a   :  { %v3827_v5 = vadd.f32 0.5, %v3826_v2  ;;  %v3831_v10 = vmul.f32 0.5, %v4928_v9  ;;  %v4787_v2 = vld [vmem:[#allocation17 + $0x20] sm:$0xff]  }
 0xe2b   :  { %v3834_v6 = vmul.f32 %v4926_v3, %v3823_v42  ;;  %v4788_v42 = vld [vmem:[#allocation17 + $0x28] sm:$0xff]   ;;  %v4789_v3 = vld [vmem:[#allocation17 + $0x30] sm:$0xff]  }
 0xe2c   :  { %v3833_v7 = vmul.f32 %v3827_v5, %v6152_v4  ;;  %v3832_v11 = vadd.f32 0.5, %v3831_v10  ;;  %v4790_v5 = vld [vmem:[#allocation17 + $0x38] sm:$0xff]   ;;  %v6397_v10 = vld [vmem:[#allocation44_spill] sm:$0xff] }
 0xe2e   :  { %v6260_v8 = vadd.f32 %v3834_v6, %v3833_v7  ;;  %v6395_v6 = vld [vmem:[#allocation42_spill] sm:$0xff] }
 0xe2f   :  { %v2841_v7 = vadd.f32 %v6395_v6, %v5929_v33 }
 0xe30   :  { %4929 = vtanh.f32 %v6260_v8 }
 0xe3a   :  { %v4930_v13 = vpop.eup %4929 }
 0xe3b   :  { %v3837_v14 = vmul.f32 %v4930_v13, %v3832_v11  ;;  %v2843_v11 = vadd.f32 %v6397_v10, %v5937_v23  ;;  %v6398_v13 = vld [vmem:[#allocation45_spill] sm:$0xff] }
 0xe3d   :  { %v6265_v16 = vsel %vm3839_vm5, %v3837_v14, %v6157_v54  ;;  %v3849_v18 = vpack.c.bf16 %v3837_v14, %v3837_v14  ;;  %v6392_v54 = vld [vmem:[#allocation39_spill] sm:$0xff]  ;;  %v2916_v14 = vadd.f32 %v6398_v13, %v5939_v0 }
 0xe3f   :  { %3883 = vmatmul.mubr.bf16.vlgmr.msra.gmra.mrb[72].mxu0 %v3849_v18  ;;  %3924 = vmatmul.mubr.bf16.vlgmr.msra.gmra.mrb[72].mxu1 %v3849_v18 }
 0xe40   :  { %3967 = vmatpush1.bf16.msra.mxu0 %v6159_v53  ;;  %4008 = vmatpush1.bf16.msra.mxu1 %v6162_v29  ;;  %v2910_v53 = vadd.f32 %v6392_v54, %v5931_v58  ;;  %v6393_v29 = vld [vmem:[#allocation40_spill] sm:$0xff] }
 0xe41   :  { %3968 = vmatprep.subr.bf16.mxu0 %v6165_v62  ;;  %4009 = vmatprep.subr.bf16.mxu1 %v6168_v47  ;;  %v2839_v62 = vadd.f32 %v6393_v29, %v5937_v23  ;;  %v6394_v47 = vld [vmem:[#allocation41_spill] sm:$0xff] }
 0xe42   :  { %3998 = vmatprep.mubr.bf16.mxu0 %v6375_v52  ;;  %4039 = vmatprep.mubr.bf16.mxu1 %v6375_v52  ;;  %v6391_v52 = vld [vmem:[#allocation38_spill] sm:$0xff] }
 0xe43   :  { %v2837_v4 = vadd.f32 %v6391_v52, %v5929_v33 }
 0xe44   :  { %3969 = vmatpush1.bf16.msra.mxu0 %v6173_v51  ;;  %4010 = vmatpush1.bf16.msra.mxu1 %v6176_v60  ;;  %v2912_v51 = vadd.f32 %v6394_v47, %v5939_v0 }
 0xe45   :  { %3970 = vmatprep.subr.bf16.mxu0 %v6179_v50  ;;  %4011 = vmatprep.subr.bf16.mxu1 %v6182_v27 }
 0xe48   :  { %3971 = vmatpush1.bf16.msra.mxu0 %v6185_v24  ;;  %4012 = vmatpush1.bf16.msra.mxu1 %v6188_v28 }
 0xe49   :  { %3972 = vmatprep.subr.bf16.mxu0 %v6191_v57  ;;  %4013 = vmatprep.subr.bf16.mxu1 %v6194_v59 }
 0xe4c   :  { %3973 = vmatpush1.bf16.msra.mxu0 %v6197_v15  ;;  %4014 = vmatpush1.bf16.msra.mxu1 %v6200_v21 }
 0xe4d   :  { %3974 = vmatprep.subr.bf16.mxu0 %v6203_v20  ;;  %4015 = vmatprep.subr.bf16.mxu1 %v6206_v56 }
 0xe50   :  { %3975 = vmatpush1.bf16.msra.mxu0 %v6209_v30  ;;  %4016 = vmatpush1.bf16.msra.mxu1 %v6212_v32 }
 0xe51   :  { %3976 = vmatprep.subr.bf16.mxu0 %v6215_v46  ;;  %4017 = vmatprep.subr.bf16.mxu1 %v6218_v17 }
 0xe54   :  { %3977 = vmatpush1.bf16.msra.mxu0 %v6221_v26  ;;  %4018 = vmatpush1.bf16.msra.mxu1 %v6224_v45 }
 0xe55   :  { %3978 = vmatprep.subr.bf16.mxu0 %v6227_v63  ;;  %4019 = vmatprep.subr.bf16.mxu1 %v6230_v34 }
 0xe58   :  { %3979 = vmatpush1.bf16.msra.mxu0 %v6233_v35  ;;  %4020 = vmatpush1.bf16.msra.mxu1 %v6236_v36 }
 0xe59   :  { %3980 = vmatprep.subr.bf16.mxu0 %v6239_v38  ;;  %4021 = vmatprep.subr.bf16.mxu1 %v6242_v39 }
 0xe5c   :  { %3981 = vmatpush1.bf16.msra.mxu0 %v6245_v40  ;;  %4022 = vmatpush1.bf16.msra.mxu1 %v6248_v41 }
 0xe5d   :  { %4554 = vmatprep.subr.bf16.mxu0 %v5136_v55 }
 0xf12   :  { %v3884_v60 = vpop.f32.mrb[72].mxu0  ;;  %v3925_v50 = vpop.f32.mrb[72].mxu1 }
 0xf13   :  { %v3932_v27 = vadd.f32 %v3884_v60, %v2837_v4  ;;  %v3934_v24 = vadd.f32 %v3925_v50, %v2910_v53  ;;  %v3886_v28 = vpop.f32.mrb[73].mxu0  ;;  %v3927_v57 = vpop.f32.mrb[73].mxu1 }
 0xf14   :  { %v3933_v59 = vadd.f32 %v3886_v28, %v2839_v62  ;;  %v3935_v15 = vadd.f32 %v3927_v57, %v2912_v51  ;;  %v3888_v21 = vpop.f32.mrb[74].mxu0  ;;  %v3929_v20 = vpop.f32.mrb[74].mxu1 }
 0xf15   :  { %v3936_v56 = vmul.f32 0.5, %v3932_v27  ;;  %v3889_v30 = vpop.f32.mrb[75].mxu0  ;;  %v3930_v32 = vpop.f32.mrb[75].mxu1 }
 0xf16   :  { %v3940_v46 = vmul.f32 0.5, %v3933_v59  ;;  %v3945_v17 = vmul.f32 0.5, %v3935_v15 }
 0xf17   :  { %4931 = vtanh.f32 %v3936_v56 }
 0xf18   :  { %4933 = vtanh.f32 %v3940_v46 }
 0xf19   :  { %4935 = vtanh.f32 %v3934_v24 }
 0xf1a   :  { %4937 = vtanh.f32 %v3945_v17 }
 0xf21   :  { %v4932_v26 = vpop.eup %4931 }
 0xf22   :  { %v4934_v45 = vpop.eup %4933  ;;  %v3938_v63 = vmul.f32 0.5, %v4932_v26 }
 0xf23   :  { %v3942_v34 = vmul.f32 0.5, %v4934_v45  ;;  %v4936_v36 = vpop.eup %4935 }
 0xf24   :  { %v3939_v35 = vadd.f32 0.5, %v3938_v63  ;;  %v4938_v48 = vpop.eup %4937 }
 0xf25   :  { %v3943_v38 = vadd.f32 0.5, %v3942_v34  ;;  %v3947_v49 = vmul.f32 0.5, %v4938_v48  ;;  %v4536_v34 = vld [vmem:[%s6348_s7] ss:$0 sm:$0xff] }
 0xf26   :  { %v3950_v39 = vmul.f32 %v4936_v36, %v3939_v35 }
 0xf27   :  { %v3949_v40 = vmul.f32 %v3943_v38, %v6260_v8  ;;  %v3948_v31 = vadd.f32 0.5, %v3947_v49  ;;  %v6396_v8 = vld [vmem:[#allocation43_spill] sm:$0xff] }
 0xf28   :  { %v2914_v9 = vadd.f32 %v6396_v8, %v5931_v58 }
 0xf29   :  { %v6308_v41 = vadd.f32 %v3950_v39, %v3949_v40 }
 0xf2b   :  { %4939 = vtanh.f32 %v6308_v41 }
 0xf35   :  { %v4940_v19 = vpop.eup %4939 }
 0xf36   :  { %v3953_v25 = vmul.f32 %v4940_v19, %v3948_v31 }
 0xf38   :  { %v3965_v1 = vpack.c.bf16 %v3953_v25, %v3953_v25  ;;  %v6313_v44 = vsel %vm3955_vm6, %v3953_v25, %v6265_v16 }
 0xf3a   :  { %3999 = vmatmul.mubr.bf16.vlgmr.msra.gmra.mrb[76].mxu0 %v3965_v1  ;;  %4040 = vmatmul.mubr.bf16.vlgmr.msra.gmra.mrb[76].mxu1 %v3965_v1 }
 0xf3b   :  { %4555 = vmatpush3.bf16.msra.mxu0 %v4783_v22  ;;  %4570 = vmatprep.mubr.msk.bf16.mxu0 %vm5137_vm7, %v5136_v55 }
 0xf3c   :  { %4556 = vmatprep.subr.bf16.mxu0 %v5136_v55 }
 0xf3f   :  { %4557 = vmatpush3.bf16.msra.mxu0 %v4784_v61 }
 0xf40   :  { %4558 = vmatprep.subr.bf16.mxu0 %v5136_v55 }
 0xf43   :  { %4559 = vmatpush3.bf16.msra.mxu0 %v4785_v43 }
 0xf44   :  { %4560 = vmatprep.subr.bf16.mxu0 %v5136_v55 }
 0xf47   :  { %4561 = vmatpush3.bf16.msra.mxu0 %v4786_v37 }
 0xf48   :  { %4562 = vmatprep.subr.bf16.mxu0 %v5136_v55 }
 0xf4b   :  { %4563 = vmatpush3.bf16.msra.mxu0 %v4787_v2 }
 0xf4c   :  { %4564 = vmatprep.subr.bf16.mxu0 %v5136_v55 }
 0xf4f   :  { %4565 = vmatpush3.bf16.msra.mxu0 %v4788_v42 }
 0xf50   :  { %4566 = vmatprep.subr.bf16.mxu0 %v5136_v55 }
 0xf53   :  { %4567 = vmatpush3.bf16.msra.mxu0 %v4789_v3 }
 0xf54   :  { %4568 = vmatprep.subr.bf16.mxu0 %v5136_v55 }
 0xf57   :  { %4569 = vmatpush3.bf16.msra.mxu0 %v4790_v5 }
0x100d   :  { %v4000_v16 = vpop.f32.mrb[76].mxu0  ;;  %v4041_v18 = vpop.f32.mrb[76].mxu1 }
0x100e   :  { %v4048_v52 = vadd.f32 %v4000_v16, %v2841_v7  ;;  %v4050_v4 = vadd.f32 %v4041_v18, %v2914_v9  ;;  %v4002_v54 = vpop.f32.mrb[77].mxu0  ;;  %v4043_v53 = vpop.f32.mrb[77].mxu1 }
0x100f   :  { %v4049_v29 = vadd.f32 %v4002_v54, %v2843_v11  ;;  %v4051_v62 = vadd.f32 %v4043_v53, %v2916_v14  ;;  %v4004_v47 = vpop.f32.mrb[78].mxu0  ;;  %v4045_v51 = vpop.f32.mrb[78].mxu1 }
0x1010   :  { %v4052_v33 = vmul.f32 0.5, %v4048_v52  ;;  %v4005_v60 = vpop.f32.mrb[79].mxu0  ;;  %v4046_v50 = vpop.f32.mrb[79].mxu1 }
0x1011   :  { %v4056_v58 = vmul.f32 0.5, %v4049_v29  ;;  %v4061_v23 = vmul.f32 0.5, %v4051_v62 }
0x1012   :  { %4941 = vtanh.f32 %v4052_v33 }
0x1013   :  { %4943 = vtanh.f32 %v4056_v58 }
0x1014   :  { %4945 = vtanh.f32 %v4050_v4 }
0x1015   :  { %4947 = vtanh.f32 %v4061_v23 }
0x101c   :  { %v4942_v27 = vpop.eup %4941 }
0x101d   :  { %v4944_v0 = vpop.eup %4943  ;;  %v4054_v24 = vmul.f32 0.5, %v4942_v27 }
0x101e   :  { %v4058_v28 = vmul.f32 0.5, %v4944_v0  ;;  %v4946_v59 = vpop.eup %4945 }
0x101f   :  { %v4055_v57 = vadd.f32 0.5, %v4054_v24  ;;  %v4948_v30 = vpop.eup %4947 }
0x1020   :  { %v4059_v15 = vadd.f32 0.5, %v4058_v28  ;;  %v4063_v32 = vmul.f32 0.5, %v4948_v30 }
0x1021   :  { %v4066_v21 = vmul.f32 %v4946_v59, %v4055_v57 }
0x1022   :  { %v4065_v20 = vmul.f32 %v4059_v15, %v6308_v41  ;;  %v4064_v46 = vadd.f32 0.5, %v4063_v32 }
0x1024   :  { %v4067_v56 = vadd.f32 %v4066_v21, %v4065_v20 }
0x1026   :  { %4949 = vtanh.f32 %v4067_v56 }
0x1030   :  { %v4950_v17 = vpop.eup %4949 }
0x1031   :  { %v4069_v26 = vmul.f32 %v4950_v17, %v4064_v46 }
0x1033   :  { %v4072_v45 = vsel %vm4071_vm8, %v4069_v26, %v6313_v44 }
0x1034   :  { %v4079_v63 = vpack.c.bf16 %v4072_v45, %v4072_v45 }
0x1036   :  { %4571 = vmatmul.mubr.bf16.vlgmr.msra.gmra.mrb[80].mxu0 %v4079_v63 }
0x1109   :  { %v4185_v35 = vpop.f32.mrb[80].mxu0 }
0x110a   :  { %v4186_v36 = vadd.f32 %v4536_v34, %v4185_v35  ;;  %v4572_v38 = vpop.f32.mrb[81].mxu0 }
0x110b   :  { %v4188_v39 = vpop.f32.mrb[82].mxu0 }
0x110c   :  { %4191 = vst [vmem:[#allocation18] sm:$0xff] %v4186_v36  ;;  %v4573_v40 = vpop.f32.mrb[83].mxu0 }
0x110d   :  { %5104 = shalt.err (!%p5101_p2)
}
0x110e   :  { %s5105_s7 = scalar_lea.hbm %s6349_s8, 128 }
0x110f   :  { %p5106_p3 = scmp.ne.s32.totalorder %s6349_s8, %s5105_s7  ;;  %p5109_p4 = scmp.lt.u32.totalorder %s5105_s7, %s6349_s8 }
0x1111   :  { %p5111_p5 = pnand %p5109_p4, %p5106_p3 }
0x1113   :  { %5114 = shalt.err (!%p5111_p5)
}
0x1114   :  { %4201 = dma.vmem_to_hbm [thread:$0]  %s4199_s29, 128, %s6349_s8, [#allocation11]  }
0x1115   :  { %5121 = dma.done.wait [#allocation11], 128  }
0x1116   :  { %5122 = vsyncadd [#allocation11], 4294967168 }
0x1117   :  { %4205 = vsyncpa [#allocation10], 1 }
0x1118   :  { %4206 = vsyncpa [#allocation13], 1 }
0x1119   :  { %4207 = vsyncpa [#allocation16], 1 }
0x111a   :  { %4208 = vsyncpa [#allocation11], 1 }

</bundles_post_ra>
